<compile_context>
chip_gen: v6e
topology: v6e:2x2x1
jax: 0.10.0
libtpu: 0.0.40
codegen_flags: <defaults>
</compile_context>

<pallas_src>
import functools
import math

import jax
import jax.numpy as jnp
from jax import lax
from jax.experimental import pallas as pl
from jax.experimental.pallas import tpu as pltpu


def _layer_norm(x, w, b, eps=1e-5):
    mu = jnp.mean(x, axis=-1, keepdims=True)
    xc = x - mu
    var = jnp.mean(xc * xc, axis=-1, keepdims=True)
    inv = lax.rsqrt(var + eps)
    return xc * inv * w + b


def _gelu_exact(x):
    # nn.GELU() default: exact erf-based GELU
    return 0.5 * x * (1.0 + lax.erf(x * (1.0 / math.sqrt(2.0))))


def _dot_nt(a, b):
    # a @ b.T without materializing a transpose: contract on the last dim of both operands.
    return lax.dot_general(a, b, (((1,), (1,)), ((), ())),
                           preferred_element_type=jnp.float32)


def transformer_block_kernel(
    x_ref,
    wqkv_ref, bqkv_ref, wo_ref, bo_ref,
    ln1w_ref, ln1b_ref,
    fc1w_ref, fc1b_ref, fc2w_ref, fc2b_ref,
    ln2w_ref, ln2b_ref,
    o_ref,
    ctx_ref,                                   # VMEM scratch (S, E) bf16
    *, n_heads,
):
    x = x_ref[0]                               # (S, E) f32 for the current batch element
    S, E = x.shape
    hd = E // n_heads
    scale = 1.0 / math.sqrt(hd)

    # ---- fused QKV in-projection: one (S,E) @ (E,3E) matmul -------------------
    qkv = jnp.dot(x.astype(jnp.bfloat16), wqkv_ref[...],
                  preferred_element_type=jnp.float32) + bqkv_ref[...]
    # fold the 1/sqrt(hd) score scale into q once (equivalent to scaling q @ k^T)
    q_bf = (qkv[:, :E] * scale).astype(jnp.bfloat16)
    k_bf = qkv[:, E:2 * E].astype(jnp.bfloat16)
    v_bf = qkv[:, 2 * E:].astype(jnp.bfloat16)

    # ---- additive float mask, generated in-kernel -----------------------------
    # torch float-mask semantics: tril(ones) is ADDED to the scores (+1 visible, 0 elsewhere).
    rows = lax.broadcasted_iota(jnp.int32, (S, S), 0)
    cols = lax.broadcasted_iota(jnp.int32, (S, S), 1)
    add_mask = (rows >= cols).astype(jnp.float32)

    # ---- per-head softmax attention; contexts go into the (S,E) scratch -------
    for h in range(n_heads):
        sl = slice(h * hd, (h + 1) * hd)
        s = _dot_nt(q_bf[:, sl], k_bf[:, sl]) + add_mask          # (S, S) f32
        m = jnp.max(s, axis=-1, keepdims=True)
        p = jnp.exp(s - m)
        p = p * pl.reciprocal(jnp.sum(p, axis=-1, keepdims=True), approx=True)
        oh = jnp.dot(p.astype(jnp.bfloat16), v_bf[:, sl],
                     preferred_element_type=jnp.float32)          # (S, hd) f32
        ctx_ref[:, sl] = oh.astype(jnp.bfloat16)

    # ---- single output projection: (S,E) @ (E,E), contraction K = E -----------
    attn = jnp.dot(ctx_ref[...], wo_ref[...],
                   preferred_element_type=jnp.float32) + bo_ref[...]

    # ---- residual + LN1 (f32) --------------------------------------------------
    x1 = _layer_norm(x + attn, ln1w_ref[...], ln1b_ref[...])

    # ---- MLP: Linear -> GELU(exact) -> Linear (bf16 MXU inputs, f32 acc) -------
    h1 = jnp.dot(x1.astype(jnp.bfloat16), fc1w_ref[...],
                 preferred_element_type=jnp.float32) + fc1b_ref[...]
    h1 = _gelu_exact(h1)
    h2 = jnp.dot(h1.astype(jnp.bfloat16), fc2w_ref[...],
                 preferred_element_type=jnp.float32) + fc2b_ref[...]

    # ---- residual + LN2 (f32) ---------------------------------------------------
    o_ref[0] = _layer_norm(x1 + h2, ln2w_ref[...], ln2b_ref[...]).astype(o_ref.dtype)


def transformer_block(x, p, n_heads, *, vmem_limit_bytes=16 * 1024 * 1024):
    B, S, E = x.shape
    args = [
        x,
        p["wqkv"], p["bqkv"], p["wo"], p["bo"],
        p["ln1w"], p["ln1b"],
        p["fc1w"], p["fc1b"], p["fc2w"], p["fc2b"],
        p["ln2w"], p["ln2b"],
    ]

    def full_spec(a):
        nd = a.ndim
        return pl.BlockSpec(a.shape, lambda b, _nd=nd: (0,) * _nd)

    in_specs = [pl.BlockSpec((1, S, E), lambda b: (b, 0, 0))]
    in_specs += [full_spec(a) for a in args[1:]]

    return pl.pallas_call(
        functools.partial(transformer_block_kernel, n_heads=n_heads),
        out_shape=jax.ShapeDtypeStruct((B, S, E), x.dtype),
        grid_spec=pltpu.PrefetchScalarGridSpec(
            num_scalar_prefetch=0,
            grid=(B,),
            in_specs=in_specs,
            out_specs=pl.BlockSpec((1, S, E), lambda b: (b, 0, 0)),
            scratch_shapes=[pltpu.VMEM((S, E), jnp.bfloat16)],
        ),
        compiler_params=pltpu.CompilerParams(
            dimension_semantics=("parallel",),
            vmem_limit_bytes=vmem_limit_bytes,   # re-derive for larger S/E tiles
        ),
    )(*args)


# ---------------------------- pure-JAX reference (f32) -----------------------------
def transformer_block_ref(x, p, n_heads):
    B, S, E = x.shape
    hd = E // n_heads
    qkv = x @ p["wqkv"] + p["bqkv"]
    q, k, v = qkv[..., :E], qkv[..., E:2 * E], qkv[..., 2 * E:]
    q = q.reshape(B, S, n_heads, hd).transpose(0, 2, 1, 3)
    k = k.reshape(B, S, n_heads, hd).transpose(0, 2, 1, 3)
    v = v.reshape(B, S, n_heads, hd).transpose(0, 2, 1, 3)
    mask = jnp.tril(jnp.ones((S, S), jnp.float32))      # additive float mask (torch semantics)
    s = jnp.einsum("bhqd,bhkd->bhqk", q, k) / math.sqrt(hd) + mask
    w = jax.nn.softmax(s, axis=-1)
    o = jnp.einsum("bhqk,bhkd->bhqd", w, v).transpose(0, 2, 1, 3).reshape(B, S, E)
    attn = o @ p["wo"] + p["bo"]

    def ln(z, w_, b_, eps=1e-5):
        mu = z.mean(-1, keepdims=True)
        var = ((z - mu) ** 2).mean(-1, keepdims=True)
        return (z - mu) / jnp.sqrt(var + eps) * w_ + b_

    x1 = ln(x + attn, p["ln1w"], p["ln1b"])
    h = jax.nn.gelu(x1 @ p["fc1w"] + p["fc1b"], approximate=False)
    h = h @ p["fc2w"] + p["fc2b"]
    return ln(x1 + h, p["ln2w"], p["ln2b"])


if __name__ == "__main__":
    # Lane-dense small shapes: E = 128, 4E = 512 (multiples of 128), S = 128, 4 heads.
    B, S, E, H = 2, 128, 128, 4

    key = jax.random.PRNGKey(0)
    ks = jax.random.split(key, 16)

    def rnd(k, shape, scale=0.1):
        w = scale * jax.random.normal(k, shape, dtype=jnp.float32)
        # round-trip through bf16 so kernel (bf16 weights) and f32 reference use identical values
        return w.astype(jnp.bfloat16).astype(jnp.float32)

    x = jax.random.normal(ks[0], (B, S, E), dtype=jnp.float32)

    wq, wk, wv = rnd(ks[1], (E, E)), rnd(ks[2], (E, E)), rnd(ks[3], (E, E))
    bq, bk, bv = rnd(ks[4], (1, E)), rnd(ks[5], (1, E)), rnd(ks[6], (1, E))

    params_f32 = dict(
        # attention in/out projections, stored as (in, out) == torch_weight.T; QKV fused
        wqkv=jnp.concatenate([wq, wk, wv], axis=1),        # (E, 3E)
        bqkv=jnp.concatenate([bq, bk, bv], axis=1),        # (1, 3E)
        wo=rnd(ks[7], (E, E)), bo=rnd(ks[8], (1, E)),
        # LayerNorms (torch default init: weight=1, bias=0)
        ln1w=jnp.ones((1, E), jnp.float32), ln1b=jnp.zeros((1, E), jnp.float32),
        ln2w=jnp.ones((1, E), jnp.float32), ln2b=jnp.zeros((1, E), jnp.float32),
        # feed-forward
        fc1w=rnd(ks[9], (E, 4 * E)), fc1b=rnd(ks[10], (1, 4 * E)),
        fc2w=rnd(ks[11], (4 * E, E)), fc2b=rnd(ks[12], (1, E)),
    )

    # Device params: matmul weights in bf16 (halves weight DMA + VMEM); biases / LN stay f32.
    params_dev = dict(params_f32)
    for name in ("wqkv", "wo", "fc1w", "fc2w"):
        params_dev[name] = params_f32[name].astype(jnp.bfloat16)

    out = transformer_block(x, params_dev, H)
    out = jax.block_until_ready(out)

    ref = transformer_block_ref(x, params_f32, H)
    assert out.shape == (B, S, E)
    assert jnp.all(jnp.isfinite(out))
    # tolerance accounts for bf16 MXU inputs (f32 accumulation) + approx reciprocal
    assert jnp.allclose(out, ref, atol=3e-2, rtol=3e-2), float(jnp.max(jnp.abs(out - ref)))

    print("KERNEL_OK")
</pallas_src>

<mosaic_0001>
module attributes {stable_mosaic.version = 11 : i64} {
  func.func @transformer_block_kernel(%arg0: i32, %arg1: memref<1x128x128xf32, #tpu.memory_space<vmem>>, %arg2: memref<128x384xbf16, #tpu.memory_space<vmem>>, %arg3: memref<1x384xf32, #tpu.memory_space<vmem>>, %arg4: memref<128x128xbf16, #tpu.memory_space<vmem>>, %arg5: memref<1x128xf32, #tpu.memory_space<vmem>>, %arg6: memref<1x128xf32, #tpu.memory_space<vmem>>, %arg7: memref<1x128xf32, #tpu.memory_space<vmem>>, %arg8: memref<128x512xbf16, #tpu.memory_space<vmem>>, %arg9: memref<1x512xf32, #tpu.memory_space<vmem>>, %arg10: memref<512x128xbf16, #tpu.memory_space<vmem>>, %arg11: memref<1x128xf32, #tpu.memory_space<vmem>>, %arg12: memref<1x128xf32, #tpu.memory_space<vmem>>, %arg13: memref<1x128xf32, #tpu.memory_space<vmem>>, %arg14: memref<1x128x128xf32, #tpu.memory_space<vmem>>, %arg15: memref<128x128xbf16, #tpu.memory_space<vmem>>) attributes {dimension_semantics = [#tpu.dimension_semantics<parallel>], iteration_bounds = array<i64: 2>, scalar_prefetch = 0 : i64, scratch_operands = 1 : i64, tpu.core_type = #tpu.core_type<tc>, window_params = [{transform_indices = @transform_0, window_bounds = array<i64: 1, 128, 128>}, {pipeline_mode = #tpu.pipeline_mode<synchronous>, transform_indices = @transform_1, window_bounds = array<i64: 128, 384>}, {pipeline_mode = #tpu.pipeline_mode<synchronous>, transform_indices = @transform_2, window_bounds = array<i64: 1, 384>}, {pipeline_mode = #tpu.pipeline_mode<synchronous>, transform_indices = @transform_3, window_bounds = array<i64: 128, 128>}, {pipeline_mode = #tpu.pipeline_mode<synchronous>, transform_indices = @transform_4, window_bounds = array<i64: 1, 128>}, {pipeline_mode = #tpu.pipeline_mode<synchronous>, transform_indices = @transform_5, window_bounds = array<i64: 1, 128>}, {pipeline_mode = #tpu.pipeline_mode<synchronous>, transform_indices = @transform_6, window_bounds = array<i64: 1, 128>}, {pipeline_mode = #tpu.pipeline_mode<synchronous>, transform_indices = @transform_7, window_bounds = array<i64: 128, 512>}, {pipeline_mode = #tpu.pipeline_mode<synchronous>, transform_indices = @transform_8, window_bounds = array<i64: 1, 512>}, {pipeline_mode = #tpu.pipeline_mode<synchronous>, transform_indices = @transform_9, window_bounds = array<i64: 512, 128>}, {pipeline_mode = #tpu.pipeline_mode<synchronous>, transform_indices = @transform_10, window_bounds = array<i64: 1, 128>}, {pipeline_mode = #tpu.pipeline_mode<synchronous>, transform_indices = @transform_11, window_bounds = array<i64: 1, 128>}, {pipeline_mode = #tpu.pipeline_mode<synchronous>, transform_indices = @transform_12, window_bounds = array<i64: 1, 128>}, {transform_indices = @transform_13, window_bounds = array<i64: 1, 128, 128>}]} {
    %c0 = arith.constant 0 : index
    %c0_0 = arith.constant 0 : index
    %c0_1 = arith.constant 0 : index
    %0 = vector.load %arg1[%c0, %c0_0, %c0_1] : memref<1x128x128xf32, #tpu.memory_space<vmem>>, vector<1x128x128xf32>
    %1 = vector.shape_cast %0 : vector<1x128x128xf32> to vector<128x128xf32>
    %2 = arith.truncf %1 : vector<128x128xf32> to vector<128x128xbf16>
    %c0_2 = arith.constant 0 : index
    %c0_3 = arith.constant 0 : index
    %3 = vector.load %arg2[%c0_2, %c0_3] : memref<128x384xbf16, #tpu.memory_space<vmem>>, vector<128x384xbf16>
    %cst = arith.constant dense<0.000000e+00> : vector<128x384xf32>
    %4 = tpu.matmul %2, %3, %cst {dimension_numbers = #tpu.dot_dimension_numbers<[1], [0], [0], [1], [0, 0, 1, 1], [], []>} : vector<128x128xbf16>, vector<128x384xbf16>, vector<128x384xf32> -> vector<128x384xf32>
    %c0_4 = arith.constant 0 : index
    %c0_5 = arith.constant 0 : index
    %5 = vector.load %arg3[%c0_4, %c0_5] : memref<1x384xf32, #tpu.memory_space<vmem>>, vector<1x384xf32>
    %6 = vector.broadcast %5 : vector<1x384xf32> to vector<128x384xf32>
    %7 = arith.addf %4, %6 : vector<128x384xf32>
    %8 = vector.extract_strided_slice %7 {offsets = [0, 0], sizes = [128, 128], strides = [1, 1]} : vector<128x384xf32> to vector<128x128xf32>
    %cst_6 = arith.constant 0.176776692 : f32
    %9 = vector.broadcast %cst_6 : f32 to vector<128x128xf32>
    %10 = arith.mulf %8, %9 : vector<128x128xf32>
    %11 = arith.truncf %10 : vector<128x128xf32> to vector<128x128xbf16>
    %12 = vector.extract_strided_slice %7 {offsets = [0, 128], sizes = [128, 128], strides = [1, 1]} : vector<128x384xf32> to vector<128x128xf32>
    %13 = arith.truncf %12 : vector<128x128xf32> to vector<128x128xbf16>
    %14 = vector.extract_strided_slice %7 {offsets = [0, 256], sizes = [128, 128], strides = [1, 1]} : vector<128x384xf32> to vector<128x128xf32>
    %15 = arith.truncf %14 : vector<128x128xf32> to vector<128x128xbf16>
    %16 = tpu.iota {dimensions = array<i32: 0>} : vector<128x128xi32>
    %17 = tpu.iota {dimensions = array<i32: 1>} : vector<128x128xi32>
    %18 = arith.cmpi sge, %16, %17 : vector<128x128xi32>
    %19 = arith.extui %18 : vector<128x128xi1> to vector<128x128xi32>
    %20 = arith.sitofp %19 : vector<128x128xi32> to vector<128x128xf32>
    %21 = vector.extract_strided_slice %11 {offsets = [0, 0], sizes = [128, 32], strides = [1, 1]} : vector<128x128xbf16> to vector<128x32xbf16>
    %22 = vector.extract_strided_slice %13 {offsets = [0, 0], sizes = [128, 32], strides = [1, 1]} : vector<128x128xbf16> to vector<128x32xbf16>
    %cst_7 = arith.constant dense<0.000000e+00> : vector<128x128xf32>
    %23 = tpu.matmul %21, %22, %cst_7 {dimension_numbers = #tpu.dot_dimension_numbers<[1], [1], [0], [0], [0, 0, 1, 0], [], []>} : vector<128x32xbf16>, vector<128x32xbf16>, vector<128x128xf32> -> vector<128x128xf32>
    %24 = arith.addf %23, %20 : vector<128x128xf32>
    %cst_8 = arith.constant dense<0xFF800000> : vector<128xf32>
    %25 = vector.multi_reduction <maximumf>, %24, %cst_8 [1] : vector<128x128xf32> to vector<128xf32>
    %26 = vector.shape_cast %25 : vector<128xf32> to vector<128x1xf32>
    %27 = vector.broadcast %26 : vector<128x1xf32> to vector<128x128xf32>
    %28 = arith.subf %24, %27 : vector<128x128xf32>
    %29 = math.exp %28 : vector<128x128xf32>
    %cst_9 = arith.constant dense<0.000000e+00> : vector<128xf32>
    %30 = vector.multi_reduction <add>, %29, %cst_9 [1] : vector<128x128xf32> to vector<128xf32>
    %31 = vector.shape_cast %30 : vector<128xf32> to vector<128x1xf32>
    %32 = tpu.reciprocal %31 {approx = true} : vector<128x1xf32> -> vector<128x1xf32>
    %33 = vector.broadcast %32 : vector<128x1xf32> to vector<128x128xf32>
    %34 = arith.mulf %29, %33 : vector<128x128xf32>
    %35 = arith.truncf %34 : vector<128x128xf32> to vector<128x128xbf16>
    %36 = vector.extract_strided_slice %15 {offsets = [0, 0], sizes = [128, 32], strides = [1, 1]} : vector<128x128xbf16> to vector<128x32xbf16>
    %cst_10 = arith.constant dense<0.000000e+00> : vector<128x32xf32>
    %37 = tpu.matmul %35, %36, %cst_10 {dimension_numbers = #tpu.dot_dimension_numbers<[1], [0], [0], [1], [0, 0, 1, 1], [], []>} : vector<128x128xbf16>, vector<128x32xbf16>, vector<128x32xf32> -> vector<128x32xf32>
    %38 = arith.truncf %37 : vector<128x32xf32> to vector<128x32xbf16>
    %c0_11 = arith.constant 0 : index
    %c0_12 = arith.constant 0 : index
    %39 = vector.load %arg15[%c0_11, %c0_12] : memref<128x128xbf16, #tpu.memory_space<vmem>>, vector<128x32xbf16>
    tpu.vector_store %arg15[%c0_11, %c0_12], %38 {strides = array<i32>} : memref<128x128xbf16, #tpu.memory_space<vmem>>, vector<128x32xbf16>,
    %40 = vector.extract_strided_slice %11 {offsets = [0, 32], sizes = [128, 32], strides = [1, 1]} : vector<128x128xbf16> to vector<128x32xbf16>
    %41 = vector.extract_strided_slice %13 {offsets = [0, 32], sizes = [128, 32], strides = [1, 1]} : vector<128x128xbf16> to vector<128x32xbf16>
    %cst_13 = arith.constant dense<0.000000e+00> : vector<128x128xf32>
    %42 = tpu.matmul %40, %41, %cst_13 {dimension_numbers = #tpu.dot_dimension_numbers<[1], [1], [0], [0], [0, 0, 1, 0], [], []>} : vector<128x32xbf16>, vector<128x32xbf16>, vector<128x128xf32> -> vector<128x128xf32>
    %43 = arith.addf %42, %20 : vector<128x128xf32>
    %cst_14 = arith.constant dense<0xFF800000> : vector<128xf32>
    %44 = vector.multi_reduction <maximumf>, %43, %cst_14 [1] : vector<128x128xf32> to vector<128xf32>
    %45 = vector.shape_cast %44 : vector<128xf32> to vector<128x1xf32>
    %46 = vector.broadcast %45 : vector<128x1xf32> to vector<128x128xf32>
    %47 = arith.subf %43, %46 : vector<128x128xf32>
    %48 = math.exp %47 : vector<128x128xf32>
    %cst_15 = arith.constant dense<0.000000e+00> : vector<128xf32>
    %49 = vector.multi_reduction <add>, %48, %cst_15 [1] : vector<128x128xf32> to vector<128xf32>
    %50 = vector.shape_cast %49 : vector<128xf32> to vector<128x1xf32>
    %51 = tpu.reciprocal %50 {approx = true} : vector<128x1xf32> -> vector<128x1xf32>
    %52 = vector.broadcast %51 : vector<128x1xf32> to vector<128x128xf32>
    %53 = arith.mulf %48, %52 : vector<128x128xf32>
    %54 = arith.truncf %53 : vector<128x128xf32> to vector<128x128xbf16>
    %55 = vector.extract_strided_slice %15 {offsets = [0, 32], sizes = [128, 32], strides = [1, 1]} : vector<128x128xbf16> to vector<128x32xbf16>
    %cst_16 = arith.constant dense<0.000000e+00> : vector<128x32xf32>
    %56 = tpu.matmul %54, %55, %cst_16 {dimension_numbers = #tpu.dot_dimension_numbers<[1], [0], [0], [1], [0, 0, 1, 1], [], []>} : vector<128x128xbf16>, vector<128x32xbf16>, vector<128x32xf32> -> vector<128x32xf32>
    %57 = arith.truncf %56 : vector<128x32xf32> to vector<128x32xbf16>
    %c0_17 = arith.constant 0 : index
    %c32 = arith.constant 32 : index
    %58 = vector.load %arg15[%c0_17, %c32] : memref<128x128xbf16, #tpu.memory_space<vmem>>, vector<128x32xbf16>
    tpu.vector_store %arg15[%c0_17, %c32], %57 {strides = array<i32>} : memref<128x128xbf16, #tpu.memory_space<vmem>>, vector<128x32xbf16>,
    %59 = vector.extract_strided_slice %11 {offsets = [0, 64], sizes = [128, 32], strides = [1, 1]} : vector<128x128xbf16> to vector<128x32xbf16>
    %60 = vector.extract_strided_slice %13 {offsets = [0, 64], sizes = [128, 32], strides = [1, 1]} : vector<128x128xbf16> to vector<128x32xbf16>
    %cst_18 = arith.constant dense<0.000000e+00> : vector<128x128xf32>
    %61 = tpu.matmul %59, %60, %cst_18 {dimension_numbers = #tpu.dot_dimension_numbers<[1], [1], [0], [0], [0, 0, 1, 0], [], []>} : vector<128x32xbf16>, vector<128x32xbf16>, vector<128x128xf32> -> vector<128x128xf32>
    %62 = arith.addf %61, %20 : vector<128x128xf32>
    %cst_19 = arith.constant dense<0xFF800000> : vector<128xf32>
    %63 = vector.multi_reduction <maximumf>, %62, %cst_19 [1] : vector<128x128xf32> to vector<128xf32>
    %64 = vector.shape_cast %63 : vector<128xf32> to vector<128x1xf32>
    %65 = vector.broadcast %64 : vector<128x1xf32> to vector<128x128xf32>
    %66 = arith.subf %62, %65 : vector<128x128xf32>
    %67 = math.exp %66 : vector<128x128xf32>
    %cst_20 = arith.constant dense<0.000000e+00> : vector<128xf32>
    %68 = vector.multi_reduction <add>, %67, %cst_20 [1] : vector<128x128xf32> to vector<128xf32>
    %69 = vector.shape_cast %68 : vector<128xf32> to vector<128x1xf32>
    %70 = tpu.reciprocal %69 {approx = true} : vector<128x1xf32> -> vector<128x1xf32>
    %71 = vector.broadcast %70 : vector<128x1xf32> to vector<128x128xf32>
    %72 = arith.mulf %67, %71 : vector<128x128xf32>
    %73 = arith.truncf %72 : vector<128x128xf32> to vector<128x128xbf16>
    %74 = vector.extract_strided_slice %15 {offsets = [0, 64], sizes = [128, 32], strides = [1, 1]} : vector<128x128xbf16> to vector<128x32xbf16>
    %cst_21 = arith.constant dense<0.000000e+00> : vector<128x32xf32>
    %75 = tpu.matmul %73, %74, %cst_21 {dimension_numbers = #tpu.dot_dimension_numbers<[1], [0], [0], [1], [0, 0, 1, 1], [], []>} : vector<128x128xbf16>, vector<128x32xbf16>, vector<128x32xf32> -> vector<128x32xf32>
    %76 = arith.truncf %75 : vector<128x32xf32> to vector<128x32xbf16>
    %c0_22 = arith.constant 0 : index
    %c64 = arith.constant 64 : index
    %77 = vector.load %arg15[%c0_22, %c64] : memref<128x128xbf16, #tpu.memory_space<vmem>>, vector<128x32xbf16>
    tpu.vector_store %arg15[%c0_22, %c64], %76 {strides = array<i32>} : memref<128x128xbf16, #tpu.memory_space<vmem>>, vector<128x32xbf16>,
    %78 = vector.extract_strided_slice %11 {offsets = [0, 96], sizes = [128, 32], strides = [1, 1]} : vector<128x128xbf16> to vector<128x32xbf16>
    %79 = vector.extract_strided_slice %13 {offsets = [0, 96], sizes = [128, 32], strides = [1, 1]} : vector<128x128xbf16> to vector<128x32xbf16>
    %cst_23 = arith.constant dense<0.000000e+00> : vector<128x128xf32>
    %80 = tpu.matmul %78, %79, %cst_23 {dimension_numbers = #tpu.dot_dimension_numbers<[1], [1], [0], [0], [0, 0, 1, 0], [], []>} : vector<128x32xbf16>, vector<128x32xbf16>, vector<128x128xf32> -> vector<128x128xf32>
    %81 = arith.addf %80, %20 : vector<128x128xf32>
    %cst_24 = arith.constant dense<0xFF800000> : vector<128xf32>
    %82 = vector.multi_reduction <maximumf>, %81, %cst_24 [1] : vector<128x128xf32> to vector<128xf32>
    %83 = vector.shape_cast %82 : vector<128xf32> to vector<128x1xf32>
    %84 = vector.broadcast %83 : vector<128x1xf32> to vector<128x128xf32>
    %85 = arith.subf %81, %84 : vector<128x128xf32>
    %86 = math.exp %85 : vector<128x128xf32>
    %cst_25 = arith.constant dense<0.000000e+00> : vector<128xf32>
    %87 = vector.multi_reduction <add>, %86, %cst_25 [1] : vector<128x128xf32> to vector<128xf32>
    %88 = vector.shape_cast %87 : vector<128xf32> to vector<128x1xf32>
    %89 = tpu.reciprocal %88 {approx = true} : vector<128x1xf32> -> vector<128x1xf32>
    %90 = vector.broadcast %89 : vector<128x1xf32> to vector<128x128xf32>
    %91 = arith.mulf %86, %90 : vector<128x128xf32>
    %92 = arith.truncf %91 : vector<128x128xf32> to vector<128x128xbf16>
    %93 = vector.extract_strided_slice %15 {offsets = [0, 96], sizes = [128, 32], strides = [1, 1]} : vector<128x128xbf16> to vector<128x32xbf16>
    %cst_26 = arith.constant dense<0.000000e+00> : vector<128x32xf32>
    %94 = tpu.matmul %92, %93, %cst_26 {dimension_numbers = #tpu.dot_dimension_numbers<[1], [0], [0], [1], [0, 0, 1, 1], [], []>} : vector<128x128xbf16>, vector<128x32xbf16>, vector<128x32xf32> -> vector<128x32xf32>
    %95 = arith.truncf %94 : vector<128x32xf32> to vector<128x32xbf16>
    %c0_27 = arith.constant 0 : index
    %c96 = arith.constant 96 : index
    %96 = vector.load %arg15[%c0_27, %c96] : memref<128x128xbf16, #tpu.memory_space<vmem>>, vector<128x32xbf16>
    tpu.vector_store %arg15[%c0_27, %c96], %95 {strides = array<i32>} : memref<128x128xbf16, #tpu.memory_space<vmem>>, vector<128x32xbf16>,
    %c0_28 = arith.constant 0 : index
    %c0_29 = arith.constant 0 : index
    %97 = vector.load %arg15[%c0_28, %c0_29] : memref<128x128xbf16, #tpu.memory_space<vmem>>, vector<128x128xbf16>
    %c0_30 = arith.constant 0 : index
    %c0_31 = arith.constant 0 : index
    %98 = vector.load %arg4[%c0_30, %c0_31] : memref<128x128xbf16, #tpu.memory_space<vmem>>, vector<128x128xbf16>
    %cst_32 = arith.constant dense<0.000000e+00> : vector<128x128xf32>
    %99 = tpu.matmul %97, %98, %cst_32 {dimension_numbers = #tpu.dot_dimension_numbers<[1], [0], [0], [1], [0, 0, 1, 1], [], []>} : vector<128x128xbf16>, vector<128x128xbf16>, vector<128x128xf32> -> vector<128x128xf32>
    %c0_33 = arith.constant 0 : index
    %c0_34 = arith.constant 0 : index
    %100 = vector.load %arg5[%c0_33, %c0_34] : memref<1x128xf32, #tpu.memory_space<vmem>>, vector<1x128xf32>
    %101 = vector.broadcast %100 : vector<1x128xf32> to vector<128x128xf32>
    %102 = arith.addf %99, %101 : vector<128x128xf32>
    %103 = arith.addf %1, %102 : vector<128x128xf32>
    %c0_35 = arith.constant 0 : index
    %c0_36 = arith.constant 0 : index
    %104 = vector.load %arg6[%c0_35, %c0_36] : memref<1x128xf32, #tpu.memory_space<vmem>>, vector<1x128xf32>
    %c0_37 = arith.constant 0 : index
    %c0_38 = arith.constant 0 : index
    %105 = vector.load %arg7[%c0_37, %c0_38] : memref<1x128xf32, #tpu.memory_space<vmem>>, vector<1x128xf32>
    %cst_39 = arith.constant dense<0.000000e+00> : vector<128xf32>
    %106 = vector.multi_reduction <add>, %103, %cst_39 [1] : vector<128x128xf32> to vector<128xf32>
    %107 = vector.shape_cast %106 : vector<128xf32> to vector<128x1xf32>
    %cst_40 = arith.constant 1.280000e+02 : f32
    %108 = vector.broadcast %cst_40 : f32 to vector<128x1xf32>
    %109 = arith.divf %107, %108 : vector<128x1xf32>
    %110 = vector.broadcast %109 : vector<128x1xf32> to vector<128x128xf32>
    %111 = arith.subf %103, %110 : vector<128x128xf32>
    %112 = arith.mulf %111, %111 : vector<128x128xf32>
    %cst_41 = arith.constant dense<0.000000e+00> : vector<128xf32>
    %113 = vector.multi_reduction <add>, %112, %cst_41 [1] : vector<128x128xf32> to vector<128xf32>
    %114 = vector.shape_cast %113 : vector<128xf32> to vector<128x1xf32>
    %cst_42 = arith.constant 1.280000e+02 : f32
    %115 = vector.broadcast %cst_42 : f32 to vector<128x1xf32>
    %116 = arith.divf %114, %115 : vector<128x1xf32>
    %cst_43 = arith.constant 9.99999974E-6 : f32
    %117 = vector.broadcast %cst_43 : f32 to vector<128x1xf32>
    %118 = arith.addf %116, %117 : vector<128x1xf32>
    %119 = math.rsqrt %118 : vector<128x1xf32>
    %120 = vector.broadcast %119 : vector<128x1xf32> to vector<128x128xf32>
    %121 = arith.mulf %111, %120 : vector<128x128xf32>
    %122 = vector.broadcast %104 : vector<1x128xf32> to vector<128x128xf32>
    %123 = arith.mulf %121, %122 : vector<128x128xf32>
    %124 = vector.broadcast %105 : vector<1x128xf32> to vector<128x128xf32>
    %125 = arith.addf %123, %124 : vector<128x128xf32>
    %126 = arith.truncf %125 : vector<128x128xf32> to vector<128x128xbf16>
    %c0_44 = arith.constant 0 : index
    %c0_45 = arith.constant 0 : index
    %127 = vector.load %arg8[%c0_44, %c0_45] : memref<128x512xbf16, #tpu.memory_space<vmem>>, vector<128x512xbf16>
    %cst_46 = arith.constant dense<0.000000e+00> : vector<128x512xf32>
    %128 = tpu.matmul %126, %127, %cst_46 {dimension_numbers = #tpu.dot_dimension_numbers<[1], [0], [0], [1], [0, 0, 1, 1], [], []>} : vector<128x128xbf16>, vector<128x512xbf16>, vector<128x512xf32> -> vector<128x512xf32>
    %c0_47 = arith.constant 0 : index
    %c0_48 = arith.constant 0 : index
    %129 = vector.load %arg9[%c0_47, %c0_48] : memref<1x512xf32, #tpu.memory_space<vmem>>, vector<1x512xf32>
    %130 = vector.broadcast %129 : vector<1x512xf32> to vector<128x512xf32>
    %131 = arith.addf %128, %130 : vector<128x512xf32>
    %cst_49 = arith.constant 5.000000e-01 : f32
    %132 = vector.broadcast %cst_49 : f32 to vector<128x512xf32>
    %133 = arith.mulf %132, %131 : vector<128x512xf32>
    %cst_50 = arith.constant 0.707106769 : f32
    %134 = vector.broadcast %cst_50 : f32 to vector<128x512xf32>
    %135 = arith.mulf %131, %134 : vector<128x512xf32>
    %136 = math.erf %135 : vector<128x512xf32>
    %cst_51 = arith.constant 1.000000e+00 : f32
    %137 = vector.broadcast %cst_51 : f32 to vector<128x512xf32>
    %138 = arith.addf %137, %136 : vector<128x512xf32>
    %139 = arith.mulf %133, %138 : vector<128x512xf32>
    %140 = arith.truncf %139 : vector<128x512xf32> to vector<128x512xbf16>
    %c0_52 = arith.constant 0 : index
    %c0_53 = arith.constant 0 : index
    %141 = vector.load %arg10[%c0_52, %c0_53] : memref<512x128xbf16, #tpu.memory_space<vmem>>, vector<512x128xbf16>
    %cst_54 = arith.constant dense<0.000000e+00> : vector<128x128xf32>
    %142 = tpu.matmul %140, %141, %cst_54 {dimension_numbers = #tpu.dot_dimension_numbers<[1], [0], [0], [1], [0, 0, 1, 1], [], []>} : vector<128x512xbf16>, vector<512x128xbf16>, vector<128x128xf32> -> vector<128x128xf32>
    %c0_55 = arith.constant 0 : index
    %c0_56 = arith.constant 0 : index
    %143 = vector.load %arg11[%c0_55, %c0_56] : memref<1x128xf32, #tpu.memory_space<vmem>>, vector<1x128xf32>
    %144 = vector.broadcast %143 : vector<1x128xf32> to vector<128x128xf32>
    %145 = arith.addf %142, %144 : vector<128x128xf32>
    %146 = arith.addf %125, %145 : vector<128x128xf32>
    %c0_57 = arith.constant 0 : index
    %c0_58 = arith.constant 0 : index
    %147 = vector.load %arg12[%c0_57, %c0_58] : memref<1x128xf32, #tpu.memory_space<vmem>>, vector<1x128xf32>
    %c0_59 = arith.constant 0 : index
    %c0_60 = arith.constant 0 : index
    %148 = vector.load %arg13[%c0_59, %c0_60] : memref<1x128xf32, #tpu.memory_space<vmem>>, vector<1x128xf32>
    %cst_61 = arith.constant dense<0.000000e+00> : vector<128xf32>
    %149 = vector.multi_reduction <add>, %146, %cst_61 [1] : vector<128x128xf32> to vector<128xf32>
    %150 = vector.shape_cast %149 : vector<128xf32> to vector<128x1xf32>
    %cst_62 = arith.constant 1.280000e+02 : f32
    %151 = vector.broadcast %cst_62 : f32 to vector<128x1xf32>
    %152 = arith.divf %150, %151 : vector<128x1xf32>
    %153 = vector.broadcast %152 : vector<128x1xf32> to vector<128x128xf32>
    %154 = arith.subf %146, %153 : vector<128x128xf32>
    %155 = arith.mulf %154, %154 : vector<128x128xf32>
    %cst_63 = arith.constant dense<0.000000e+00> : vector<128xf32>
    %156 = vector.multi_reduction <add>, %155, %cst_63 [1] : vector<128x128xf32> to vector<128xf32>
    %157 = vector.shape_cast %156 : vector<128xf32> to vector<128x1xf32>
    %cst_64 = arith.constant 1.280000e+02 : f32
    %158 = vector.broadcast %cst_64 : f32 to vector<128x1xf32>
    %159 = arith.divf %157, %158 : vector<128x1xf32>
    %cst_65 = arith.constant 9.99999974E-6 : f32
    %160 = vector.broadcast %cst_65 : f32 to vector<128x1xf32>
    %161 = arith.addf %159, %160 : vector<128x1xf32>
    %162 = math.rsqrt %161 : vector<128x1xf32>
    %163 = vector.broadcast %162 : vector<128x1xf32> to vector<128x128xf32>
    %164 = arith.mulf %154, %163 : vector<128x128xf32>
    %165 = vector.broadcast %147 : vector<1x128xf32> to vector<128x128xf32>
    %166 = arith.mulf %164, %165 : vector<128x128xf32>
    %167 = vector.broadcast %148 : vector<1x128xf32> to vector<128x128xf32>
    %168 = arith.addf %166, %167 : vector<128x128xf32>
    %c0_66 = arith.constant 0 : index
    %c0_67 = arith.constant 0 : index
    %c0_68 = arith.constant 0 : index
    %169 = vector.load %arg14[%c0_66, %c0_67, %c0_68] : memref<1x128x128xf32, #tpu.memory_space<vmem>>, vector<1x128x128xf32>
    %170 = vector.shape_cast %169 : vector<1x128x128xf32> to vector<128x128xf32>
    %171 = vector.shape_cast %168 : vector<128x128xf32> to vector<1x128x128xf32>
    tpu.vector_store %arg14[%c0_66, %c0_67, %c0_68], %171 {strides = array<i32>} : memref<1x128x128xf32, #tpu.memory_space<vmem>>, vector<1x128x128xf32>,
    return
  }
  func.func @transform_0(%arg0: i32) -> (i32, i32, i32) {
    %c0_i32 = arith.constant 0 : i32
    %c0_i32_0 = arith.constant 0 : i32
    %c0_i32_1 = arith.constant 0 : i32
    return %arg0, %c0_i32, %c0_i32_0 : i32, i32, i32
  }
  func.func @transform_1(%arg0: i32) -> (i32, i32) {
    %c0_i32 = arith.constant 0 : i32
    %c0_i32_0 = arith.constant 0 : i32
    %c0_i32_1 = arith.constant 0 : i32
    return %c0_i32, %c0_i32_0 : i32, i32
  }
  func.func @transform_2(%arg0: i32) -> (i32, i32) {
    %c0_i32 = arith.constant 0 : i32
    %c0_i32_0 = arith.constant 0 : i32
    %c0_i32_1 = arith.constant 0 : i32
    return %c0_i32, %c0_i32_0 : i32, i32
  }
  func.func @transform_3(%arg0: i32) -> (i32, i32) {
    %c0_i32 = arith.constant 0 : i32
    %c0_i32_0 = arith.constant 0 : i32
    %c0_i32_1 = arith.constant 0 : i32
    return %c0_i32, %c0_i32_0 : i32, i32
  }
  func.func @transform_4(%arg0: i32) -> (i32, i32) {
    %c0_i32 = arith.constant 0 : i32
    %c0_i32_0 = arith.constant 0 : i32
    %c0_i32_1 = arith.constant 0 : i32
    return %c0_i32, %c0_i32_0 : i32, i32
  }
  func.func @transform_5(%arg0: i32) -> (i32, i32) {
    %c0_i32 = arith.constant 0 : i32
    %c0_i32_0 = arith.constant 0 : i32
    %c0_i32_1 = arith.constant 0 : i32
    return %c0_i32, %c0_i32_0 : i32, i32
  }
  func.func @transform_6(%arg0: i32) -> (i32, i32) {
    %c0_i32 = arith.constant 0 : i32
    %c0_i32_0 = arith.constant 0 : i32
    %c0_i32_1 = arith.constant 0 : i32
    return %c0_i32, %c0_i32_0 : i32, i32
  }
  func.func @transform_7(%arg0: i32) -> (i32, i32) {
    %c0_i32 = arith.constant 0 : i32
    %c0_i32_0 = arith.constant 0 : i32
    %c0_i32_1 = arith.constant 0 : i32
    return %c0_i32, %c0_i32_0 : i32, i32
  }
  func.func @transform_8(%arg0: i32) -> (i32, i32) {
    %c0_i32 = arith.constant 0 : i32
    %c0_i32_0 = arith.constant 0 : i32
    %c0_i32_1 = arith.constant 0 : i32
    return %c0_i32, %c0_i32_0 : i32, i32
  }
  func.func @transform_9(%arg0: i32) -> (i32, i32) {
    %c0_i32 = arith.constant 0 : i32
    %c0_i32_0 = arith.constant 0 : i32
    %c0_i32_1 = arith.constant 0 : i32
    return %c0_i32, %c0_i32_0 : i32, i32
  }
  func.func @transform_10(%arg0: i32) -> (i32, i32) {
    %c0_i32 = arith.constant 0 : i32
    %c0_i32_0 = arith.constant 0 : i32
    %c0_i32_1 = arith.constant 0 : i32
    return %c0_i32, %c0_i32_0 : i32, i32
  }
  func.func @transform_11(%arg0: i32) -> (i32, i32) {
    %c0_i32 = arith.constant 0 : i32
    %c0_i32_0 = arith.constant 0 : i32
    %c0_i32_1 = arith.constant 0 : i32
    return %c0_i32, %c0_i32_0 : i32, i32
  }
  func.func @transform_12(%arg0: i32) -> (i32, i32) {
    %c0_i32 = arith.constant 0 : i32
    %c0_i32_0 = arith.constant 0 : i32
    %c0_i32_1 = arith.constant 0 : i32
    return %c0_i32, %c0_i32_0 : i32, i32
  }
  func.func @transform_13(%arg0: i32) -> (i32, i32, i32) {
    %c0_i32 = arith.constant 0 : i32
    %c0_i32_0 = arith.constant 0 : i32
    %c0_i32_1 = arith.constant 0 : i32
    return %arg0, %c0_i32, %c0_i32_0 : i32, i32, i32
  }
}

</mosaic_0001>

<bundles_post_ra>
// kernel: tpu_custom_call.1
= control target key start
LH: loop header
LB: loop body
LE: loop exit
PB: predicated region body
PF: predicated region fallthrough
CT: control target
= control target key end

     0   :  { %s9886_s0 = inlined_call_operand.hbm [shape: f32[2,128,128], index: 0, kind: input, shape index: {}]   ;;  %s9887_s1 = inlined_call_operand.hbm [shape: bf16[128,384], index: 1, kind: input, shape index: {}]   ;;  %s9888_s2 = inlined_call_operand.vmem [shape: f32[1,384], index: 2, kind: input, shape index: {}]   ;;  %s9889_s3 = inlined_call_operand.hbm [shape: bf16[128,128], index: 3, kind: input, shape index: {}]   ;;  %s9890_s4 = inlined_call_operand.hbm [shape: f32[1,128], index: 4, kind: input, shape index: {}]   ;;  %s9891_s5 = inlined_call_operand.vmem [shape: f32[1,128], index: 5, kind: input, shape index: {}]   ;;  %s9892_s6 = inlined_call_operand.vmem [shape: f32[1,128], index: 6, kind: input, shape index: {}]   ;;  %s9893_s7 = inlined_call_operand.hbm [shape: bf16[128,512], index: 7, kind: input, shape index: {}]   ;;  %s9894_s8 = inlined_call_operand.vmem [shape: f32[1,512], index: 8, kind: input, shape index: {}]   ;;  %s9895_s9 = inlined_call_operand.hbm [shape: bf16[512,128], index: 9, kind: input, shape index: {}]   ;;  %s9896_s10 = inlined_call_operand.vmem [shape: f32[1,128], index: 10, kind: input, shape index: {}]   ;;  %s9897_s11 = inlined_call_operand.vmem [shape: f32[1,128], index: 11, kind: input, shape index: {}]   ;;  %s9898_s12 = inlined_call_operand.vmem [shape: f32[1,128], index: 12, kind: input, shape index: {}]   ;;  %s9899_s13 = inlined_call_operand.hbm [shape: f32[2,128,128], index: 13, kind: output, shape index: {}]  }
   0x1   :  { %9961 = sst [smem:[#allocation48_spill]] %s9887_s1 }
   0x2   :  { %9962 = sst [smem:[#allocation49_spill]] %s9889_s3 }
   0x3   :  { %9963 = sst [smem:[#allocation50_spill]] %s9890_s4 }
   0x4   :  { %9964 = sst [smem:[#allocation51_spill]] %s9893_s7 }
   0x5   :  { %9965 = sst [smem:[#allocation52_spill]] %s9895_s9 }
   0x6   :  { %9966 = sst [smem:[#allocation53_spill]] %s9898_s12 }
   0x7   :  { %9967 = sst [smem:[#allocation54_spill]] %s9899_s13 }
   0x8   :  { %18 = vsyncpa [#allocation4], 0 }
   0x9   :  { %20 = vsyncpa [#allocation4 + $0x1], 0 }
   0xa   :  { %21 = vsyncpa [#allocation7], 0 }
   0xb   :  { %22 = vsyncpa [#allocation10], 0 }
   0xc   :  { %23 = vsyncpa [#allocation13], 0 }
   0xd   :  { %24 = vsyncpa [#allocation5], 0 }
   0xe   :  { %26 = vsyncpa [#allocation5 + $0x1], 0  ;;  %s7355_s25 = smov 0   ;;  %s7357_s26 = smov 0  }
   0xf   :  { %s7359_s27 = smov 0   ;;  %s7361_s28 = smov 0  }
  0x10 LB: > { %s7263_s29 = smov [#allocation6]   ;;  %s7376_s14 = sadd.s32 4294967295, %s7261_s28   ;;  %s7261_s28 = sphi %s7361_s28, %s10118_s28   ;;  %s7257_s27 = sphi %s7359_s27, %s10117_s27   ;;  %s7253_s26 = sphi %s7357_s26, %s10116_s26   ;;  %s7249_s25 = sphi %s7355_s25, %s10115_s25  }
  0x11   : > { %s353_s30 = sshll.u32 %s7263_s29, 4  ;;  %p5356_p0 = scmp.ge.s32.totalorder %s7261_s28, 1  ;;  %s354_s30 = int_to_ptr.vmem [resolvable:$true] %s353_s30 }
  0x12   : > { %p9901_p1 = scmp.eq.s32.totalorder %s7376_s14, 0  ;;  %p341_p2 = scmp.lt.s32.totalorder %s7261_s28, 3 }
  0x13   : > { %s7264_s16 = smov [#allocation9]   ;;  %s7265_s19 = smov [#allocation8]  }
  0x14   : > { %p7381_p3 = pnand %p5356_p0, %p341_p2  ;;  %s383_s17 = sshll.u32 %s7264_s16, 4  ;;  %s384_s17 = int_to_ptr.vmem [resolvable:$true] %s383_s17 }
  0x15   : > { %s369_s20 = sshll.u32 %s7265_s19, 4  ;;  %s7038_s22 = scalar_lea.vmem %s354_s30, 3072  ;;  %s7394_s20 = int_to_ptr.vmem [resolvable:$true] %s369_s20 }
  0x16   : > { %s9968_s15 = scalar_select %p7381_p3, 1, 0 }
  0x17   : > { %p6347_p5 = pneg %p7381_p3  ;;  %p7039_p8 = scmp.ne.s32.totalorder %s354_s30, %s7038_s22 }
  0x18   : > { %p7046_p11 = scmp.lt.s32.totalorder %s354_s30, %s354_s30  ;;  %p7047_p12 = scmp.lt.s32.totalorder %s7038_s22, %s7038_s22 }
  0x19   : > { %p7390_p6 = pnand %p6347_p5, %p9901_p1 }
  0x1a   : > { %p7048_p13 = por %p7047_p12, %p7046_p11 }
  0x1b   : > { %p7398_p7 = pneg %p7390_p6 }
  0x1d   : > { %p7041_p9 = pnand %p7039_p8, %p7398_p7 }
  0x1f   : > { %p7042_p10 = pneg %p7041_p9 }
  0x21   : > { %p7049_p0 = pnand %p7048_p13, %p7042_p10 }
  0x23   : > { %7052 = shalt.err (!%p7049_p0)
}
  0x24   : > { %s7266_s23 = smov 192   ;;  %s7267_s24 = smov 12  }
  0x25   : > { %s9971_s1 = sld [smem:[#allocation48_spill]]  ;;  %s7064_s19 = scalar_lea.vmem %s384_s17, 16 }
  0x26   : > { %p7065_p2 = scmp.ne.s32.totalorder %s384_s17, %s7064_s19  ;;  %s7071_s13 = scalar_lea.vmem %s384_s17, 32 }
  0x27   : > { %p7072_p9 = scmp.lt.s32.totalorder %s384_s17, %s384_s17  ;;  %p7073_p4 = scmp.lt.s32.totalorder %s7071_s13, %s7064_s19 }
  0x28   : > { %p7067_p5 = pnand %p7065_p2, %p7398_p7 }
  0x29   : > { %p7074_p11 = por %p7073_p4, %p7072_p9 }
  0x2a   : > { %p7068_p8 = pneg %p7067_p5 }
  0x2b   : > { %6350 = dma.hbm_to_vmem [thread:$0]  (!%p7390_p6), %s9971_s1, 3072, %s354_s30, [#allocation7], %s7266_s23, %s7266_s23, %s7267_s24  }
  0x2c   : > { %p7075_p10 = pnand %p7074_p11, %p7068_p8 }
  0x2e   : > { %7078 = shalt.err (!%p7075_p10)
}
  0x2f   : > { %s9972_s4 = sld [smem:[#allocation50_spill]]  ;;  %s7090_s30 = scalar_lea.vmem %s7394_s20, 1024 }
  0x30   : > { %p7091_p12 = scmp.ne.s32.totalorder %s7394_s20, %s7090_s30  ;;  %p7098_p2 = scmp.lt.s32.totalorder %s7394_s20, %s7394_s20 }
  0x31   : > { %p7099_p4 = scmp.lt.s32.totalorder %s7090_s30, %s7090_s30 }
  0x32   : > { %p7093_p13 = pnand %p7091_p12, %p7398_p7 }
  0x33   : > { %p7100_p5 = por %p7099_p4, %p7098_p2 }
  0x34   : > { %p7094_p0 = pneg %p7093_p13 }
  0x35   : > { %6356 = dma.hbm_to_vmem [thread:$0]  (!%p7390_p6), %s9972_s4, 16, %s384_s17, [#allocation10]  }
  0x36   : > { %p7101_p8 = pnand %p7100_p5, %p7094_p0 }
  0x38   : > { %7104 = shalt.err (!%p7101_p8)
}
  0x39   : > { %s7268_s13 = smov 64   ;;  %s7269_s12 = smov 4  }
  0x3a   : > { %s9973_s3 = sld [smem:[#allocation49_spill]]  ;;  %s7270_s24 = smov [#allocation11]  }
  0x3b   : > { %s399_s29 = sshll.u32 %s7270_s24, 4  ;;  %s400_s29 = int_to_ptr.vmem [resolvable:$true] %s399_s29 }
  0x3c   : > { %s7116_s16 = scalar_lea.vmem %s400_s29, 4096  ;;  %p7124_p12 = scmp.lt.s32.totalorder %s400_s29, %s400_s29 }
  0x3d   : > { %p7117_p9 = scmp.ne.s32.totalorder %s400_s29, %s7116_s16  ;;  %p7125_p13 = scmp.lt.s32.totalorder %s7116_s16, %s7116_s16 }
  0x3f   : > { %p7119_p11 = pnand %p7117_p9, %p7398_p7  ;;  %p7126_p0 = por %p7125_p13, %p7124_p12 }
  0x40   : > { %6353 = dma.hbm_to_vmem [thread:$0]  (!%p7390_p6), %s9973_s3, 1024, %s7394_s20, [#allocation7], %s7268_s13, %s7268_s13, %s7269_s12  }
  0x41   : > { %p7120_p10 = pneg %p7119_p11 }
  0x43   : > { %p7127_p2 = pnand %p7126_p0, %p7120_p10 }
  0x45   : > { %7130 = shalt.err (!%p7127_p2)
}
  0x46   : > { %s7271_s19 = smov 256   ;;  %s7272_s22 = smov 16  }
  0x47   : > { %s9974_s7 = sld [smem:[#allocation51_spill]]  ;;  %s7273_s17 = smov [#allocation12]  }
  0x48   : > { %s415_s23 = sshll.u32 %s7273_s17, 4  ;;  %s416_s23 = int_to_ptr.vmem [resolvable:$true] %s415_s23 }
  0x49   : > { %s7142_s24 = scalar_lea.vmem %s416_s23, 4096  ;;  %p7150_p9 = scmp.lt.s32.totalorder %s416_s23, %s416_s23 }
  0x4a   : > { %p7143_p4 = scmp.ne.s32.totalorder %s416_s23, %s7142_s24  ;;  %p7151_p11 = scmp.lt.s32.totalorder %s7142_s24, %s7142_s24 }
  0x4c   : > { %p7145_p5 = pnand %p7143_p4, %p7398_p7  ;;  %p7152_p10 = por %p7151_p11, %p7150_p9 }
  0x4d   : > { %6359 = dma.hbm_to_vmem [thread:$0]  (!%p7390_p6), %s9974_s7, 4096, %s400_s29, [#allocation10], %s7271_s19, %s7271_s19, %s7272_s22  }
  0x4e   : > { %p7146_p8 = pneg %p7145_p5 }
  0x50   : > { %p7153_p12 = pnand %p7152_p10, %p7146_p8 }
  0x52   : > { %7156 = shalt.err (!%p7153_p12)
}
  0x53   : > { %s9975_s9 = sld [smem:[#allocation52_spill]]  ;;  %s5355_s18 = sadd.s32 4294967294, %s7261_s28  }
  0x54   : > { %s7450_s21 = sadd.s32 1, %s7261_s28   ;;  %s39_s19 = sadd.s32 1, %s7257_s27 }
  0x55   : > { %s36_s22 = ssub.s32 %s7261_s28, %s7450_s21  ;;  %p46_p7 = scmp.ne.s32.totalorder %s7257_s27, %s7253_s26 }
  0x56   : > { %p37_p13 = scmp.eq.s32.totalorder %s36_s22, 0  ;;  %p47_p0 = scmp.eq.s32.totalorder %s7261_s28, 0 }
  0x57   : > { %p52_p2 = scmp.ne.s32.totalorder %s7253_s26, %s7249_s25  ;;  %p328_p4 = scmp.eq.s32.totalorder %s7376_s14, 1 }
  0x58   : > { %s7462_s30 = scalar_select %p37_p13, %s7257_s27, %s39_s19  }
  0x59   : > { %6362 = dma.hbm_to_vmem [thread:$0]  (!%p7390_p6), %s9975_s9, 4096, %s416_s23, [#allocation13], %s7268_s13, %s7268_s13, %s7269_s12  }
  0x5a   : > { %p48_p5 = por %p47_p0, %p46_p7  ;;  %p7466_p8 = por %p9901_p1, %p52_p2 }
  0x5b   : > { %p7470_p6 = por %p328_p4, %p46_p7  ;;  %p334_p9 = scmp.eq.s32.totalorder %s5355_s18, 1 }
  0x5c   : > { %s9976_s20 = scalar_select %p7466_p8, 1, 0 }
  0x5d   : > { %s9977_s13 = scalar_select %p7470_p6, 1, 0 }
  0x5e   : > { %p6376_p11 = scmp.lt.s32.totalorder %s7261_s28, 2  ;;  %s438_s12 = sand.u32 1, %s7257_s27  }
  0x5f   : > { %p7476_p10 = por %p334_p9, %p52_p2  ;;  %s5363_s23 = sshll.u32 %s438_s12, 7 }
  0x60   : > { %s5601_s24 = sshll.u32 %s7261_s28, 11  ;;  %s442_s22 = scalar_lea.vmem [#allocation3], %s5363_s23 }
  0x61   : > { %s9978_s17 = scalar_select %p7476_p10, 1, 0 }
  0x62   : > { %s7484_s19 = scalar_lea.hbm %s9886_s0, %s5601_s24  ;;  %s449_s1 = sshll.u32 %s442_s22, 4  ;;  %s7490_s1 = int_to_ptr.vmem [resolvable:$true] %s449_s1 }
  0x63   : > { %p7486_p12 = pnand %p6376_p11, %p48_p5  ;;  %s7492_s3 = scalar_lea.sflag [#allocation4], %s438_s12 }
  0x64   : > { %s7157_s4 = scalar_lea.hbm %s7484_s19, 2048  ;;  %s7162_s23 = scalar_lea.hbm %s9886_s0, 4096 }
  0x65   : > { %p7158_p7 = scmp.ne.s32.totalorder %s7484_s19, %s7157_s4  ;;  %p7159_p13 = pneg %p7486_p12 }
  0x66   : > { %p7163_p4 = scmp.lt.s32.totalorder %s7484_s19, %s9886_s0  ;;  %p7164_p5 = scmp.lt.s32.totalorder %s7162_s23, %s7157_s4 }
  0x67   : > { %p7160_p0 = pnand %p7159_p13, %p7158_p7 }
  0x68   : > { %p7165_p9 = por %p7164_p5, %p7163_p4 }
  0x69   : > { %p7161_p2 = pneg %p7160_p0 }
  0x6b   : > { %p7166_p11 = pnand %p7165_p9, %p7161_p2 }
  0x6d   : > { %7169 = shalt.err (!%p7166_p11)
}
  0x6e   : > { %s7170_s12 = scalar_lea.vmem %s7490_s1, 2048  ;;  %s7274_s7 = smov [#allocation3]  }
  0x6f   : > { %p7171_p1 = scmp.ne.s32.totalorder %s7490_s1, %s7170_s12  ;;  %s7175_s9 = sshll.u32 %s7274_s7, 4  ;;  %s7176_s9 = int_to_ptr.vmem [resolvable:$false] %s7175_s9 }
  0x70   : > { %s7177_s24 = scalar_lea.vmem %s7176_s9, 4096  ;;  %p7178_p0 = scmp.lt.s32.totalorder %s7490_s1, %s7176_s9 }
  0x71   : > { %p7173_p10 = pnand %p7171_p1, %p7159_p13  ;;  %p7179_p6 = scmp.lt.s32.totalorder %s7177_s24, %s7170_s12 }
  0x73   : > { %p7174_p7 = pneg %p7173_p10  ;;  %p7180_p8 = por %p7179_p6, %p7178_p0 }
  0x75   : > { %p7181_p3 = pnand %p7180_p8, %p7174_p7 }
  0x77   : > { %7184 = shalt.err (!%p7181_p3)
}
  0x78   : > { %s7275_s4 = smov 128   ;;  %s7276_s16 = smov 8  }
  0x79   : > { %6366 = dma.hbm_to_vmem [thread:$0]  (!%p7486_p12), %s7484_s19, 2048, %s7490_s1, %s7492_s3, %s7275_s4, %s7275_s4, %s7276_s16  }
  0x7a   : > { %p9980_p1 = scmp.ne.s32.totalorder %s9968_s15, 0 }
  0x7c   : > { %461 = sbr.rel (%p9980_p1) target bundleno = 4532 (0x11b4), region = 72 }
  0x81   : > { %s7516_s7 = sand.u32 1, %s7253_s26   ;;  %p9981_p3 = scmp.ne.s32.totalorder %s9976_s20, 0 }
  0x82   : > { %s5367_s9 = sshll.u32 %s7516_s7, 7  ;;  %s464_s23 = scalar_lea.sflag [#allocation4], %s7516_s7 }
  0x83   : > { %s7522_s29 = scalar_lea.vmem [#allocation3], %s5367_s9 }
  0x84   : > { %7228 = dma.done.wait (%p9981_p3), %s464_s23, 2048  }
  0x85   : > { %7230 = vsyncadd (%p9981_p3), %s464_s23, 4294965248  ;;  %p9982_p8 = scmp.eq.s32.totalorder %s7376_s14, 0 }
  0x87   : > { %7232 = dma.done.wait (%p9982_p8), [#allocation7], 4096   ;;  %p9983_p6 = pmov %p9982_p8 }
  0x89   : > { %7234 = vsyncadd (%p9983_p6), [#allocation7], 4294963200  ;;  %p9984_p10 = pmov %p9983_p6 }
  0x8a   : > { %p9985_p12 = pmov %p9983_p6 }
  0x8b   : > { %7236 = dma.done.wait (%p9984_p10), [#allocation10], 4112  }
  0x8c   : > { %7238 = vsyncadd (%p9985_p12), [#allocation10], 4294963184  ;;  %p9986_p13 = pmov %p9983_p6 }
  0x8d   : > { %p9987_p2 = pmov %p9983_p6 }
  0x8e   : > { %7240 = dma.done.wait (%p9986_p13), [#allocation13], 4096  }
  0x8f   : > { %7242 = vsyncadd (%p9987_p2), [#allocation13], 4294963200  ;;  %v9908_v0 = vmov 0   ;;  %v6435_v1 = vld [vmem:[#allocation6 + $0xac] ss:$12 sps:$4 sm:$0xff]   ;;  %v531_v8 = vld [vmem:[%s7522_s29] sm:$0xff]  ;;  %v589_v49 = vlaneseq }
  0x90   : > { %764 = vmatprep.mubr.bf16.mxu0 %v9908_v0  ;;  %v6437_v2 = vld [vmem:[#allocation6 + $0xa8] ss:$12 sps:$4 sm:$0xff]   ;;  %732 = vmatprep.subr.bf16.mxu0 %v6435_v1  ;;  %v6440_v4 = vld [vmem:[#allocation6 + $0x90] ss:$12 sps:$4 sm:$0xff]   ;;  %v6443_v6 = vld [vmem:[#allocation6 + $0x78] ss:$12 sps:$4 sm:$0xff]  }
  0x91   : > { %v6438_v3 = vld [vmem:[#allocation6 + $0x94] ss:$12 sps:$4 sm:$0xff]   ;;  %733 = vmatpush1.bf16.msra.mxu0 %v6437_v2  ;;  %v6441_v5 = vld [vmem:[#allocation6 + $0x7c] ss:$12 sps:$4 sm:$0xff]   ;;  %v6444_v7 = vld [vmem:[#allocation6 + $0x64] ss:$12 sps:$4 sm:$0xff]  }
  0x92   : > { %734 = vmatprep.subr.bf16.mxu0 %v6438_v3  ;;  %v6446_v9 = vld [vmem:[#allocation6 + $0x60] ss:$12 sps:$4 sm:$0xff]   ;;  %v6449_v13 = vld [vmem:[#allocation6 + $0x48] ss:$12 sps:$4 sm:$0xff]   ;;  %v6459_v15 = vld [vmem:[#allocation6 + $0xb0] ss:$12 sps:$4 sm:$0xff]  }
  0x93   : > { %v532_v10 = vld [vmem:[%s7522_s29 + $0x8] sm:$0xff]  ;;  %v6450_v14 = vld [vmem:[#allocation6 + $0x34] ss:$12 sps:$4 sm:$0xff]   ;;  %v6460_v16 = vld [vmem:[#allocation6 + $0x98] ss:$12 sps:$4 sm:$0xff]   ;;  %5955 = vmatprep.subr.bf16.mxu1 %v6459_v15  ;;  %v7565_v50 = vshrl.u32 %v589_v49, 7 }
  0x94   : > { %v6447_v11 = vld [vmem:[#allocation6 + $0x4c] ss:$12 sps:$4 sm:$0xff]   ;;  %v547_v12 = vpack.c.bf16 %v532_v10, %v531_v8  ;;  %v6452_v17 = vld [vmem:[#allocation6 + $0x30] ss:$12 sps:$4 sm:$0xff]   ;;  %5956 = vmatpush3.bf16.msra.mxu1 %v6459_v15  ;;  %v6462_v22 = vld [vmem:[#allocation6 + $0x68] ss:$12 sps:$4 sm:$0xff]  }
  0x95   : > { %735 = vmatpush1.bf16.msra.mxu0 %v6440_v4  ;;  %v6453_v18 = vld [vmem:[#allocation6 + $0x1c] ss:$12 sps:$4 sm:$0xff]   ;;  %5957 = vmatprep.subr.bf16.mxu1 %v6460_v16  ;;  %v6461_v19 = vld [vmem:[#allocation6 + $0x80] ss:$12 sps:$4 sm:$0xff]   ;;  %v6455_v20 = vld [vmem:[#allocation6 + $0x18] ss:$12 sps:$4 sm:$0xff]  }
  0x96   : > { %736 = vmatprep.subr.bf16.mxu0 %v6441_v5  ;;  %5971 = vmatprep.mubr.bf16.mxu1 %v547_v12  ;;  %v6456_v21 = vld [vmem:[#allocation6 + $0x4] ss:$12 sps:$4 sm:$0xff]   ;;  %v6458_v23 = vld [vmem:[#allocation6] ss:$12 sps:$4 sm:$0xff]   ;;  %v534_v27 = vld [vmem:[%s7522_s29 + $0x18] sm:$0xff]  ;;  %9988 = vst [vmem:[#allocation20_spill] sm:$0xff] %v7565_v50 }
  0x97   : > { %v6463_v24 = vld [vmem:[#allocation6 + $0x50] ss:$12 sps:$4 sm:$0xff]   ;;  %v6464_v25 = vld [vmem:[#allocation6 + $0x38] ss:$12 sps:$4 sm:$0xff]   ;;  %v6465_v28 = vld [vmem:[#allocation6 + $0x20] ss:$12 sps:$4 sm:$0xff]  }
  0x98   : > { %5958 = vmatpush3.bf16.msra.mxu1 %v6460_v16  ;;  %v533_v26 = vld [vmem:[%s7522_s29 + $0x10] sm:$0xff]  ;;  %v535_v31 = vld [vmem:[%s7522_s29 + $0x20] sm:$0xff]  ;;  %v536_v32 = vld [vmem:[%s7522_s29 + $0x28] sm:$0xff]  ;;  %v9907_v51 = vsub.s32 0, %v7565_v50  ;;  %vm1049_vm0 = vcmask 261120   ;;  %s7278_s15 = smov 96  }
  0x99   : > { %737 = vmatpush1.bf16.msra.mxu0 %v6443_v6  ;;  %5959 = vmatprep.subr.bf16.mxu1 %v6461_v19  ;;  %v548_v29 = vpack.c.bf16 %v534_v27, %v533_v26  ;;  %v6466_v30 = vld [vmem:[#allocation6 + $0x8] ss:$12 sps:$4 sm:$0xff]   ;;  %v549_v33 = vpack.c.bf16 %v536_v32, %v535_v31  ;;  %v538_v35 = vld [vmem:[%s7522_s29 + $0x38] sm:$0xff]  ;;  %v539_v36 = vld [vmem:[%s7522_s29 + $0x40] sm:$0xff]  ;;  %s7280_s20 = smov 64   ;;  %s7281_s19 = smov 32  }
  0x9a   : > { %738 = vmatprep.subr.bf16.mxu0 %v6444_v7  ;;  %v537_v34 = vld [vmem:[%s7522_s29 + $0x30] sm:$0xff]  ;;  %v540_v37 = vld [vmem:[%s7522_s29 + $0x48] sm:$0xff]  ;;  %v542_v41 = vld [vmem:[%s7522_s29 + $0x58] sm:$0xff]  ;;  %s9774_s18 = scalar_lea.vmem [#allocation14], %s5367_s9  ;;  %s5666_s9 = sshll.u32 %s7376_s14, 11 }
  0x9b   : > { %v550_v38 = vpack.c.bf16 %v538_v35, %v537_v34  ;;  %v551_v39 = vpack.c.bf16 %v540_v37, %v539_v36  ;;  %v541_v40 = vld [vmem:[%s7522_s29 + $0x50] sm:$0xff]  ;;  %v543_v42 = vld [vmem:[%s7522_s29 + $0x60] sm:$0xff]  ;;  %v544_v43 = vld [vmem:[%s7522_s29 + $0x68] sm:$0xff]  ;;  %s5234_s22 = sshll.u32 %s9774_s18, 4  ;;  %s10111_s4 = sld [smem:[#allocation54_spill]]  ;;  %s9841_s22 = int_to_ptr.vmem [resolvable:$true] %s5234_s22 }
  0x9c   : > { %5960 = vmatpush3.bf16.msra.mxu1 %v6461_v19  ;;  %v552_v44 = vpack.c.bf16 %v542_v41, %v541_v40  ;;  %v553_v45 = vpack.c.bf16 %v544_v43, %v543_v42  ;;  %v545_v46 = vld [vmem:[%s7522_s29 + $0x70] sm:$0xff]  ;;  %v546_v47 = vld [vmem:[%s7522_s29 + $0x78] sm:$0xff]  ;;  %v7571_v52 = vld [vmem:[%s9888_s2] sm:$0x7]  ;;  %v9906_v40 = vsub.s32 2, %v7565_v50  ;;  %s5221_s23 = scalar_lea.sflag [#allocation5], %s7516_s7 }
  0x9d   : > { %739 = vmatpush1.bf16.msra.mxu0 %v6446_v9  ;;  %5961 = vmatprep.subr.bf16.mxu1 %v6462_v22  ;;  %v554_v48 = vpack.c.bf16 %v546_v47, %v545_v46  ;;  %v7576_v53 = vrot.slane %v7571_v52, %v9907_v51  ;;  %p10112_p5 = scmp.ne.s32.totalorder %s9977_s13, 0  ;;  %s7282_s14 = smov [#allocation14]  }
  0x9e   : > { %740 = vmatprep.subr.bf16.mxu0 %v6447_v11  ;;  %s7189_s1 = sshll.u32 %s7282_s14, 4  ;;  %s7190_s1 = int_to_ptr.vmem [resolvable:$false] %s7189_s1 }
  0x9f   : > { %s7191_s3 = scalar_lea.vmem %s7190_s1, 4096  ;;  %p7192_p7 = scmp.lt.s32.totalorder %s9841_s22, %s7190_s1 }
  0xa0   : > { %5962 = vmatpush3.bf16.msra.mxu1 %v6462_v22 }
  0xa1   : > { %741 = vmatpush1.bf16.msra.mxu0 %v6449_v13  ;;  %5963 = vmatprep.subr.bf16.mxu1 %v6463_v24  ;;  %s9839_s16 = scalar_lea.hbm %s10111_s4, %s5666_s9 }
  0xa2   : > { %742 = vmatprep.subr.bf16.mxu0 %v6450_v14 }
  0xa4   : > { %5964 = vmatpush3.bf16.msra.mxu1 %v6463_v24 }
  0xa5   : > { %743 = vmatpush1.bf16.msra.mxu0 %v6452_v17  ;;  %5965 = vmatprep.subr.bf16.mxu1 %v6464_v25 }
  0xa6   : > { %744 = vmatprep.subr.bf16.mxu0 %v6453_v18 }
  0xa8   : > { %5966 = vmatpush3.bf16.msra.mxu1 %v6464_v25 }
  0xa9   : > { %745 = vmatpush1.bf16.msra.mxu0 %v6455_v20  ;;  %5967 = vmatprep.subr.bf16.mxu1 %v6465_v28 }
  0xaa   : > { %746 = vmatprep.subr.bf16.mxu0 %v6456_v21 }
  0xac   : > { %5968 = vmatpush3.bf16.msra.mxu1 %v6465_v28 }
  0xad   : > { %747 = vmatpush1.bf16.msra.mxu0 %v6458_v23  ;;  %5969 = vmatprep.subr.bf16.mxu1 %v6466_v30 }
  0xb0   : > { %765 = vmatmul.mubr.bf16.vlgmr.msra.gmra.mxu0 %v547_v12  ;;  %5970 = vmatpush3.bf16.msra.mxu1 %v6466_v30 }
  0xb1   : > { %774 = vmatprep.mubr.bf16.mxu0 %v9908_v0 }
  0xb3   : > { %5972 = vmatmul.mubr.bf16.vlgmr.msra.gmra.mxu1 %v548_v29 }
  0xb4   : > { %5975 = vmatprep.mubr.bf16.mxu1 %v549_v33 }
  0xb8   : > { %775 = vmatmul.mubr.bf16.gmra.mxu0 %v548_v29 }
  0xb9   : > { %784 = vmatprep.mubr.bf16.mxu0 %v9908_v0 }
  0xbb   : > { %5976 = vmatmul.mubr.bf16.gmra.mxu1 %v550_v38 }
  0xbc   : > { %5979 = vmatprep.mubr.bf16.mxu1 %v551_v39 }
  0xc0   : > { %785 = vmatmul.mubr.bf16.gmra.mxu0 %v549_v33 }
  0xc1   : > { %794 = vmatprep.mubr.bf16.mxu0 %v9908_v0 }
  0xc3   : > { %5980 = vmatmul.mubr.bf16.gmra.mxu1 %v552_v44 }
  0xc4   : > { %5983 = vmatprep.mubr.bf16.mxu1 %v553_v45 }
  0xc8   : > { %795 = vmatmul.mubr.bf16.gmra.mxu0 %v550_v38 }
  0xc9   : > { %804 = vmatprep.mubr.bf16.mxu0 %v9908_v0 }
  0xcb   : > { %5984 = vmatmul.mubr.bf16.gmra.mxu1 %v554_v48 }
  0xd0   : > { %805 = vmatmul.mubr.bf16.gmra.mxu0 %v551_v39 }
  0xd1   : > { %814 = vmatprep.mubr.bf16.mxu0 %v9908_v0 }
  0xd8   : > { %815 = vmatmul.mubr.bf16.gmra.mxu0 %v552_v44 }
  0xd9   : > { %824 = vmatprep.mubr.bf16.mxu0 %v9908_v0 }
  0xe0   : > { %825 = vmatmul.mubr.bf16.gmra.mxu0 %v553_v45 }
  0xe1   : > { %834 = vmatprep.mubr.bf16.mxu0 %v9908_v0 }
  0xe8   : > { %835 = vmatmul.mubr.bf16.gmra.mxu0 %v554_v48  ;;  %v7636_v48 = vrot.slane %v7571_v52, %v9906_v40 }
 0x170   : > { %v766_v54 = vpop.f32.mrf.mxu0 }
 0x171   : > { %v767_v56 = vadd.f32 %v766_v54, %v7576_v53 }
 0x172   : > { %v7578_v55 = vpop.f32.mrf.mxu0 }
 0x173   : > { %v942_v60 = vmul.f32 0.17677669, %v767_v56  ;;  %v7594_v9 = vpop.f32.mrf.mxu1 }
 0x174   : > { %v770_v57 = vpop.f32.mrf.mxu0 }
 0x175   : > { %v771_v58 = vadd.f32 %v770_v57, %v7576_v53  ;;  %v7601_v13 = vpop.f32.mrf.mxu1 }
 0x176   : > { %v7582_v59 = vpop.f32.mrf.mxu0 }
 0x177   : > { %v943_v61 = vmul.f32 0.17677669, %v771_v58  ;;  %v7603_v15 = vpop.f32.mrf.mxu1 }
 0x178   : > { %v776_v62 = vpop.f32.mrf.mxu0 }
 0x179   : > { %v7584_v63 = vpack.c.bf16 %v943_v61, %v942_v60  ;;  %v777_v1 = vadd.f32 %v776_v62, %v7576_v53  ;;  %v7608_v18 = vpop.f32.mrf.mxu1 }
 0x17a   : > { %v7587_v2 = vpop.f32.mrf.mxu0 }
 0x17b   : > { %6003 = vmatprep.mubr.msk.bf16.mxu0 %vm1049_vm0, %v7584_v63  ;;  %v944_v6 = vmul.f32 0.17677669, %v777_v1  ;;  %v7610_v22 = vpop.f32.mrf.mxu1 }
 0x17c   : > { %v780_v3 = vpop.f32.mrf.mxu0 }
 0x17d   : > { %v781_v4 = vadd.f32 %v780_v3, %v7576_v53  ;;  %v7617_v26 = vpop.f32.mrf.mxu1 }
 0x17e   : > { %v7592_v5 = vpop.f32.mrf.mxu0 }
 0x17f   : > { %v945_v7 = vmul.f32 0.17677669, %v781_v4  ;;  %v5978_v28 = vpop.f32.mrf.mxu1 }
 0x180   : > { %v786_v8 = vpop.f32.mrf.mxu0 }
 0x181   : > { %v7596_v10 = vpack.c.bf16 %v945_v7, %v944_v6  ;;  %v787_v11 = vadd.f32 %v786_v8, %v7576_v53  ;;  %v7622_v31 = vpop.f32.mrf.mxu1 }
 0x182   : > { %v7599_v12 = vpop.f32.mrf.mxu0 }
 0x183   : > { %v946_v19 = vmul.f32 0.17677669, %v787_v11  ;;  %v5981_v35 = vpop.f32.mrf.mxu1 }
 0x184   : > { %v790_v14 = vpop.f32.mrf.mxu0  ;;  %v920_v11 = vadd.f32 %v5981_v35, %v7636_v48 }
 0x185   : > { %v791_v16 = vadd.f32 %v790_v14, %v7576_v53  ;;  %v911_v39 = vpop.f32.mrf.mxu1 }
 0x186   : > { %v7606_v17 = vpop.f32.mrf.mxu0 }
 0x187   : > { %v947_v20 = vmul.f32 0.17677669, %v791_v16  ;;  %v5982_v42 = vpop.f32.mrf.mxu1 }
 0x188   : > { %v796_v21 = vpop.f32.mrf.mxu0  ;;  %v923_v14 = vadd.f32 %v5982_v42, %v7636_v48 }
 0x189   : > { %v7612_v23 = vpack.c.bf16 %v947_v20, %v946_v19  ;;  %v797_v24 = vadd.f32 %v796_v21, %v7576_v53  ;;  %v914_v45 = vpop.f32.mrf.mxu1 }
 0x18a   : > { %v7615_v25 = vpop.f32.mrf.mxu0  ;;  %v7664_v42 = vpack.c.bf16 %v923_v14, %v920_v11  ;;  %v896_v11 = vadd.f32 %v7617_v26, %v7636_v48  ;;  %v899_v14 = vadd.f32 %v7622_v31, %v7636_v48 }
 0x18b   : > { %v948_v32 = vmul.f32 0.17677669, %v797_v24  ;;  %v5985_v56 = vpop.f32.mrf.mxu1 }
 0x18c   : > { %v800_v27 = vpop.f32.mrf.mxu0  ;;  %v936_v62 = vadd.f32 %v5985_v56, %v7636_v48  ;;  %v7706_v31 = vpack.c.bf16 %v899_v14, %v896_v11  ;;  %v986_v14 = vadd.s32 24, %v7565_v50 }
 0x18d   : > { %v801_v29 = vadd.f32 %v800_v27, %v7576_v53  ;;  %v927_v61 = vpop.f32.mrf.mxu1 }
 0x18e   : > { %v7620_v30 = vpop.f32.mrf.mxu0  ;;  %v928_v6 = vadd.f32 %v927_v61, %v7636_v48 }
 0x18f   : > { %v949_v33 = vmul.f32 0.17677669, %v801_v29  ;;  %v5986_v3 = vpop.f32.mrf.mxu1  ;;  %v9905_v29 = vsub.s32 1, %v7565_v50 }
 0x190   : > { %v806_v34 = vpop.f32.mrf.mxu0  ;;  %v939_v7 = vadd.f32 %v5986_v3, %v7636_v48 }
 0x191   : > { %v7624_v36 = vpack.c.bf16 %v949_v33, %v948_v32  ;;  %v807_v37 = vadd.f32 %v806_v34, %v7576_v53  ;;  %v930_v16 = vpop.f32.mrf.mxu1 }
 0x192   : > { %v7627_v38 = vpop.f32.mrf.mxu0  ;;  %v7651_v21 = vpack.c.bf16 %v939_v7, %v936_v62  ;;  %v931_v24 = vadd.f32 %v930_v16, %v7636_v48 }
 0x193   : > { %v950_v46 = vmul.f32 0.17677669, %v807_v37  ;;  %v912_v37 = vadd.f32 %v911_v39, %v7636_v48  ;;  %v904_v39 = vadd.f32 %v7610_v22, %v7636_v48 }
 0x194   : > { %v810_v41 = vpop.f32.mrf.mxu0  ;;  %v7658_v34 = vpack.c.bf16 %v931_v24, %v928_v6  ;;  %6019 = vmatprep.subr.bf16.mxu1 %v7651_v21  ;;  %v891_v24 = vadd.f32 %v7603_v15, %v7636_v48  ;;  %v880_v15 = vadd.f32 %v7601_v13, %v7636_v48 }
 0x195   : > { %v811_v43 = vadd.f32 %v810_v41, %v7576_v53  ;;  %v915_v41 = vadd.f32 %v914_v45, %v7636_v48  ;;  %6020 = vmatpush3.bf16.msra.mxu1 %v7651_v21  ;;  %v907_v45 = vadd.f32 %v5978_v28, %v7636_v48 }
 0x196   : > { %v7631_v44 = vpop.f32.mrf.mxu0  ;;  %6021 = vmatprep.subr.bf16.mxu1 %v7658_v34 }
 0x197   : > { %v951_v47 = vmul.f32 0.17677669, %v811_v43  ;;  %v7676_v56 = vpack.c.bf16 %v915_v41, %v912_v37  ;;  %v7690_v6 = vpack.c.bf16 %v907_v45, %v904_v39 }
 0x198   : > { %v816_v54 = vpop.f32.mrf.mxu0 }
 0x199   : > { %v7638_v57 = vpack.c.bf16 %v951_v47, %v950_v46  ;;  %v817_v58 = vadd.f32 %v816_v54, %v7576_v53  ;;  %v7670_v46 = vrot.slane %v7571_v52, %v9905_v29  ;;  %6022 = vmatpush3.bf16.msra.mxu1 %v7658_v34 }
 0x19a   : > { %v7641_v60 = vpop.f32.mrf.mxu0  ;;  %6023 = vmatprep.subr.bf16.mxu1 %v7664_v42 }
 0x19b   : > { %v952_v19 = vmul.f32 0.17677669, %v817_v58  ;;  %v819_v13 = vadd.f32 %v7641_v60, %v7670_v46  ;;  %v809_v60 = vadd.f32 %v7627_v38, %v7670_v46 }
 0x19c   : > { %v820_v1 = vpop.f32.mrf.mxu0 }
 0x19d   : > { %v821_v4 = vadd.f32 %v820_v1, %v7576_v53  ;;  %6024 = vmatpush3.bf16.msra.mxu1 %v7664_v42 }
 0x19e   : > { %v7647_v8 = vpop.f32.mrf.mxu0  ;;  %6025 = vmatprep.subr.bf16.mxu1 %v7676_v56 }
 0x19f   : > { %v953_v20 = vmul.f32 0.17677669, %v821_v4 }
 0x1a0   : > { %v826_v27 = vpop.f32.mrf.mxu0 }
 0x1a1   : > { %v7655_v32 = vpack.c.bf16 %v953_v20, %v952_v19  ;;  %v827_v33 = vadd.f32 %v826_v27, %v7576_v53  ;;  %v888_v20 = vadd.f32 %v7594_v9, %v7636_v48  ;;  %6026 = vmatpush3.bf16.msra.mxu1 %v7676_v56 }
 0x1a2   : > { %v828_v35 = vpop.f32.mrf.mxu0  ;;  %6027 = vmatprep.subr.bf16.mxu1 %v7690_v6 }
 0x1a3   : > { %v954_v58 = vmul.f32 0.17677669, %v827_v33  ;;  %v829_v61 = vadd.f32 %v828_v35, %v7670_v46  ;;  %v7721_v41 = vpack.c.bf16 %v891_v24, %v888_v20 }
 0x1a4   : > { %v830_v43 = vpop.f32.mrf.mxu0 }
 0x1a5   : > { %v831_v47 = vadd.f32 %v830_v43, %v7576_v53  ;;  %6028 = vmatpush3.bf16.msra.mxu1 %v7690_v6  ;;  %9990 = vst [vmem:[#allocation22_spill] sm:$0xff] %v7721_v41  ;;  %v883_v43 = vadd.f32 %v7608_v18, %v7636_v48 }
 0x1a6   : > { %v832_v54 = vpop.f32.mrf.mxu0  ;;  %6029 = vmatprep.subr.bf16.mxu1 %v7706_v31 }
 0x1a7   : > { %v955_v62 = vmul.f32 0.17677669, %v831_v47  ;;  %v833_v1 = vadd.f32 %v832_v54, %v7670_v46  ;;  %v823_v47 = vadd.f32 %v7647_v8, %v7670_v46  ;;  %v7731_v54 = vpack.c.bf16 %v883_v43, %v880_v15 }
 0x1a8   : > { %v836_v52 = vpop.f32.mrf.mxu0  ;;  %v813_v8 = vadd.f32 %v7631_v44, %v7670_v46  ;;  %v793_v44 = vadd.f32 %v7606_v17, %v7670_v46  ;;  %v773_v17 = vadd.f32 %v7582_v59, %v7670_v46  ;;  %v985_v59 = vadd.s32 16, %v7565_v50 }
 0x1a9   : > { %v7682_v3 = vpack.c.bf16 %v955_v62, %v954_v58  ;;  %v7684_v4 = vpack.c.bf16 %v833_v1, %v829_v61  ;;  %v837_v22 = vadd.f32 %v836_v52, %v7576_v53  ;;  %6030 = vmatpush3.bf16.msra.mxu1 %v7706_v31  ;;  %9991 = vst [vmem:[#allocation23_spill] sm:$0xff] %v7731_v54  ;;  %v990_v15 = vadd.s32 56, %v7565_v50 }
 0x1aa   : > { %v838_v28 = vpop.f32.mrf.mxu0  ;;  %6031 = vmatprep.subr.bf16.mxu1 %v7721_v41  ;;  %v7737_v18 = vpack.c.bf16 %v823_v47, %v819_v13  ;;  %v7749_v39 = vpack.c.bf16 %v813_v8, %v809_v60  ;;  %v803_v58 = vadd.f32 %v7620_v30, %v7670_v46  ;;  %v799_v61 = vadd.f32 %v7615_v25, %v7670_v46 }
 0x1ab   : > { %1569 = vrot.lane.b32.xlu1 %v7684_v4, %s7278_s15  ;;  %v956_v27 = vmul.f32 0.17677669, %v837_v22  ;;  %v839_v33 = vadd.f32 %v838_v28, %v7670_v46  ;;  %v1093_v48 = vsel %vm1049_vm0, %v7684_v4, 0  ;;  %v789_v1 = vadd.f32 %v7599_v12, %v7670_v46 }
 0x1ac   : > { %v840_v7 = vpop.f32.mrf.mxu0  ;;  %9992 = vst [vmem:[#allocation24_spill] sm:$0xff] %v7737_v18  ;;  %v1090_v45 = vsel %vm1049_vm0, %v7737_v18, 0  ;;  %v7759_v62 = vpack.c.bf16 %v803_v58, %v799_v61  ;;  %v1087_v38 = vsel %vm1049_vm0, %v7749_v39, 0  ;;  %v783_v30 = vadd.f32 %v7592_v5, %v7670_v46 }
 0x1ad   : > { %v841_v16 = vadd.f32 %v840_v7, %v7576_v53  ;;  %6032 = vmatpush3.bf16.msra.mxu1 %v7721_v41  ;;  %v7769_v52 = vpack.c.bf16 %v793_v44, %v789_v1  ;;  %v779_v22 = vadd.f32 %v7587_v2, %v7670_v46  ;;  %v769_v7 = vadd.f32 %v7578_v55, %v7670_v46 }
 0x1ae   : > { %v842_v19 = vpop.f32.mrf.mxu0  ;;  %6033 = vmatprep.subr.bf16.mxu1 %v7731_v54  ;;  %9993 = vst [vmem:[#allocation25_spill] sm:$0xff] %v7759_v62  ;;  %v1084_v25 = vsel %vm1049_vm0, %v7759_v62, 0 }
 0x1af   : > { %v957_v35 = vmul.f32 0.17677669, %v841_v16  ;;  %v843_v26 = vadd.f32 %v842_v19, %v7670_v46  ;;  %9994 = vst [vmem:[#allocation26_spill] sm:$0xff] %v7769_v52  ;;  %v7779_v28 = vpack.c.bf16 %v783_v30, %v779_v22  ;;  %v1081_v12 = vsel %vm1049_vm0, %v7769_v52, 0 }
 0x1b0   : > { %v7789_v11 = vpack.c.bf16 %v773_v17, %v769_v7  ;;  %v7817_v46 = vand.u32 127, %v589_v49  ;;  %v984_v16 = vadd.s32 8, %v7565_v50  ;;  %v7279_v19 = vmov 0.0  }
 0x1b1   : > { %v7708_v53 = vpack.c.bf16 %v957_v35, %v956_v27  ;;  %v7710_v37 = vpack.c.bf16 %v843_v26, %v839_v33  ;;  %6034 = vmatpush3.bf16.msra.mxu1 %v7731_v54  ;;  %v1078_v2 = vsel %vm1049_vm0, %v7779_v28, 0  ;;  %v989_v33 = vadd.s32 48, %v7565_v50 }
 0x1b2   : > { %v1075_v5 = vsel %vm1049_vm0, %v7789_v11, 0  ;;  %vm1003_vm1 = vcmp.ge.s32.totalorder %v985_v59, %v7817_v46  ;;  %vm1001_vm2 = vcmp.ge.s32.totalorder %v7565_v50, %v7817_v46  ;;  %vm1004_vm3 = vcmp.ge.s32.totalorder %v986_v14, %v7817_v46 }
 0x1b3   : > { %9989 = vst [vmem:[#allocation21_spill] sm:$0xff] %v7710_v37  ;;  %1571 = vrot.lane.b32.xlu0 %v7710_v37, %s7278_s15  ;;  %6291 = vmatprep.subr.msk.bf16.mxu0 %vm1049_vm0, %v7710_v37  ;;  %v1096_v9 = vsel %vm1049_vm0, %v7710_v37, 0  ;;  %v7825_v20 = vsel %vm1003_vm1, 1.0, %v7279_v19  ;;  %v7829_v27 = vsel %vm1001_vm2, 1.0, %v7279_v19  ;;  %vm1002_vm4 = vcmp.ge.s32.totalorder %v984_v16, %v7817_v46 }
 0x1b4   : > { %5988 = vmatpush3.bf16.xpose.msra.mxu0 %v1096_v9  ;;  %v7837_v26 = vsel %vm1004_vm3, 1.0, %v7279_v19  ;;  %v7845_v47 = vsel %vm1002_vm4, 1.0, %v7279_v19  ;;  %vm1007_vm5 = vcmp.ge.s32.totalorder %v989_v33, %v7817_v46  ;;  %vm1008_vm6 = vcmp.ge.s32.totalorder %v990_v15, %v7817_v46 }
 0x1b5   : > { %6292 = vmatprep.subr.msk.bf16.mxu0 %vm1049_vm0, %v7684_v4  ;;  %v7860_v58 = vsel %vm1007_vm5, 1.0, %v7279_v19  ;;  %v7866_v1 = vsel %vm1008_vm6, 1.0, %v7279_v19  ;;  %v994_v30 = vadd.s32 88, %v7565_v50  ;;  %v991_v7 = vadd.s32 64, %v7565_v50 }
 0x1b6   : > { %9995 = vst [vmem:[#allocation27_spill] sm:$0xff] %v7860_v58  ;;  %v992_v14 = vadd.s32 72, %v7565_v50  ;;  %vm1508_vm2 = vcmask 257024   ;;  %vm2658_vm3 = vcmask 781824   ;;  %vm3221_vm4 = vcmask 1044224  }
 0x1b7   : > { %vm1012_vm10 = vcmp.ge.s32.totalorder %v994_v30, %v7817_v46  ;;  %vm1009_vm11 = vcmp.ge.s32.totalorder %v991_v7, %v7817_v46 }
 0x1b8   : > { %vm1010_vm12 = vcmp.ge.s32.totalorder %v992_v14, %v7817_v46 }
 0x1b9   : > { %v7918_v30 = vsel %vm1010_vm12, 1.0, %v7279_v19 }
 0x1bc   : > { %5990 = vmatpush3.bf16.xpose.msra.mxu0 %v1093_v48  ;;  %v987_v48 = vadd.s32 32, %v7565_v50 }
 0x1bd   : > { %6293 = vmatprep.subr.msk.bf16.mxu0 %vm1049_vm0, %v7737_v18 }
 0x1be   : > { %vm1005_vm7 = vcmp.ge.s32.totalorder %v987_v48, %v7817_v46 }
 0x1bf   : > { %v7874_v22 = vsel %vm1005_vm7, 1.0, %v7279_v19 }
 0x1c0   : > { %9996 = vst [vmem:[#allocation28_spill] sm:$0xff] %v7874_v22 }
 0x1c4   : > { %5992 = vmatpush3.bf16.xpose.msra.mxu0 %v1090_v45  ;;  %v988_v45 = vadd.s32 40, %v7565_v50 }
 0x1c5   : > { %6294 = vmatprep.subr.msk.bf16.mxu0 %vm1049_vm0, %v7749_v39 }
 0x1c6   : > { %vm1006_vm8 = vcmp.ge.s32.totalorder %v988_v45, %v7817_v46 }
 0x1cc   : > { %5994 = vmatpush3.bf16.xpose.msra.mxu0 %v1087_v38  ;;  %v993_v38 = vadd.s32 80, %v7565_v50 }
 0x1cd   : > { %6295 = vmatprep.subr.msk.bf16.mxu0 %vm1049_vm0, %v7759_v62 }
 0x1ce   : > { %vm1011_vm9 = vcmp.ge.s32.totalorder %v993_v38, %v7817_v46  ;;  %v995_v38 = vadd.s32 96, %v7565_v50 }
 0x1cf   : > { %v7892_v16 = vsel %vm1011_vm9, 1.0, %v7279_v19 }
 0x1d0   : > { %9997 = vst [vmem:[#allocation29_spill] sm:$0xff] %v7892_v16  ;;  %vm1013_vm14 = vcmp.ge.s32.totalorder %v995_v38, %v7817_v46  ;;  %v998_v38 = vadd.s32 120, %v7565_v50 }
 0x1d2   : > { %vm1016_vm15 = vcmp.ge.s32.totalorder %v998_v38, %v7817_v46 }
 0x1d4   : > { %5996 = vmatpush3.bf16.xpose.msra.mxu0 %v1084_v25 }
 0x1d5   : > { %6296 = vmatprep.subr.msk.bf16.mxu0 %vm1049_vm0, %v7769_v52 }
 0x1dc   : > { %5998 = vmatpush3.bf16.xpose.msra.mxu0 %v1081_v12 }
 0x1dd   : > { %6297 = vmatprep.subr.msk.bf16.mxu0 %vm1049_vm0, %v7779_v28 }
 0x1e4   : > { %6000 = vmatpush3.bf16.xpose.msra.mxu0 %v1078_v2 }
 0x1e5   : > { %6298 = vmatprep.subr.msk.bf16.mxu0 %vm1049_vm0, %v7789_v11 }
 0x1ec   : > { %6002 = vmatpush3.bf16.xpose.msra.mxu0 %v1075_v5  ;;  %v7883_v5 = vsel %vm1006_vm8, 1.0, %v7279_v19 }
 0x1f3   : > { %6004 = vmatmul.mubr.msk.bf16.vlgmr.msra.gmra.mxu0 %vm1049_vm0, %v7596_v10 }
 0x1f4   : > { %6007 = vmatprep.mubr.msk.bf16.mxu0 %vm1049_vm0, %v7612_v23 }
 0x1fb   : > { %6008 = vmatmul.mubr.msk.bf16.gmra.mxu0 %vm1049_vm0, %v7624_v36 }
 0x1fc   : > { %6011 = vmatprep.mubr.msk.bf16.mxu0 %vm1049_vm0, %v7638_v57 }
 0x203   : > { %6012 = vmatmul.mubr.msk.bf16.gmra.mxu0 %vm1049_vm0, %v7655_v32 }
 0x204   : > { %6015 = vmatprep.mubr.msk.bf16.mxu0 %vm1049_vm0, %v7682_v3 }
 0x20b   : > { %6016 = vmatmul.mubr.msk.bf16.gmra.mxu0 %vm1049_vm0, %v7708_v53 }
 0x21d   : > { %v7966_v38 = vpop.permute.xlu1 %1569 }
 0x225   : > { %v7811_v55 = vpop.permute.xlu0 %1571 }
 0x226   : > { %6299 = vmatprep.subr.msk.bf16.mxu1 %vm1049_vm0, %v7811_v55 }
 0x2b3   : > { %v6005_v24 = vpop.f32.mrf.mxu0 }
 0x2b4   : > { %v7832_v49 = vadd.f32 %v6005_v24, %v7825_v20 }
 0x2b5   : > { %v1132_v35 = vpop.f32.mrf.mxu0 }
 0x2b6   : > { %v7840_v9 = vadd.f32 %v7829_v27, %v1132_v35  ;;  %1199 = vmax.xlane.f32.xlu1 %v7832_v49  ;;  %v997_v35 = vadd.s32 112, %v7565_v50 }
 0x2b7   : > { %v6006_v43 = vpop.f32.mrf.mxu0 }
 0x2b8   : > { %v7848_v13 = vadd.f32 %v6006_v43, %v7837_v26  ;;  %1195 = vmax.xlane.f32.xlu0 %v7840_v9  ;;  %v7901_v43 = vsel %vm1012_vm10, 1.0, %v7279_v19  ;;  %vm1015_vm13 = vcmp.ge.s32.totalorder %v997_v35, %v7817_v46  ;;  %v7937_v35 = vsel %vm1013_vm14, 1.0, %v7279_v19 }
 0x2b9   : > { %v1135_v8 = vpop.f32.mrf.mxu0  ;;  %v7925_v7 = vsel %vm1015_vm13, 1.0, %v7279_v19  ;;  %10000 = vst [vmem:[#allocation32_spill] sm:$0xff] %v7937_v35 }
 0x2ba   : > { %1201 = vmax.xlane.f32.xlu1 %v7848_v13  ;;  %v7855_v60 = vadd.f32 %v7845_v47, %v1135_v8  ;;  %v7909_v8 = vsel %vm1009_vm11, 1.0, %v7279_v19  ;;  %9999 = vst [vmem:[#allocation31_spill] sm:$0xff] %v7925_v7 }
 0x2bb   : > { %v6009_v61 = vpop.f32.mrf.mxu0  ;;  %9998 = vst [vmem:[#allocation30_spill] sm:$0xff] %v7909_v8 }
 0x2bc   : > { %1197 = vmax.xlane.f32.xlu0 %v7855_v60  ;;  %v7869_v25 = vadd.f32 %v6009_v61, %v7860_v58 }
 0x2bd   : > { %v1148_v44 = vpop.f32.mrf.mxu0 }
 0x2be   : > { %v7886_v59 = vadd.f32 %v7874_v22, %v1148_v44 }
 0x2bf   : > { %v6010_v12 = vpop.f32.mrf.mxu0 }
 0x2c0   : > { %v7877_v17 = vadd.f32 %v6010_v12, %v7866_v1  ;;  %1207 = vmax.xlane.f32.xlu0 %v7869_v25 }
 0x2c1   : > { %v1151_v2 = vpop.f32.mrf.mxu0 }
 0x2c2   : > { %1209 = vmax.xlane.f32.xlu1 %v7877_v17  ;;  %v7897_v33 = vadd.f32 %v7883_v5, %v1151_v2 }
 0x2c3   : > { %v6013_v24 = vpop.f32.mrf.mxu0 }
 0x2c4   : > { %1203 = vmax.xlane.f32.xlu0 %v7886_v59  ;;  %v7904_v48 = vadd.f32 %v6013_v24, %v7892_v16 }
 0x2c5   : > { %v1164_v15 = vpop.f32.mrf.mxu0 }
 0x2c6   : > { %1205 = vmax.xlane.f32.xlu1 %v7897_v33  ;;  %v7921_v12 = vadd.f32 %v7909_v8, %v1164_v15 }
 0x2c7   : > { %v6014_v45 = vpop.f32.mrf.mxu0 }
 0x2c8   : > { %v7912_v61 = vadd.f32 %v6014_v45, %v7901_v43  ;;  %1215 = vmax.xlane.f32.xlu0 %v7904_v48 }
 0x2c9   : > { %v1167_v44 = vpop.f32.mrf.mxu0 }
 0x2ca   : > { %1217 = vmax.xlane.f32.xlu1 %v7912_v61  ;;  %v7930_v14 = vadd.f32 %v7918_v30, %v1167_v44  ;;  %v996_v44 = vadd.s32 104, %v7565_v50 }
 0x2cb   : > { %v6017_v2 = vpop.f32.mrf.mxu0 }
 0x2cc   : > { %1211 = vmax.xlane.f32.xlu0 %v7921_v12  ;;  %v7933_v24 = vadd.f32 %v6017_v2, %v7925_v7  ;;  %v7952_v2 = vsel %vm1016_vm15, 1.0, %v7279_v19  ;;  %vm1014_vm1 = vcmp.ge.s32.totalorder %v996_v44, %v7817_v46 }
 0x2cd   : > { %v1180_v15 = vpop.f32.mrf.mxu0  ;;  %10001 = vst [vmem:[#allocation33_spill] sm:$0xff] %v7952_v2  ;;  %v7959_v51 = vsel %vm1014_vm1, 1.0, %v7279_v19 }
 0x2ce   : > { %1213 = vmax.xlane.f32.xlu1 %v7930_v14  ;;  %v7941_v45 = vadd.f32 %v7937_v35, %v1180_v15  ;;  %10002 = vst [vmem:[#allocation34_spill] sm:$0xff] %v7959_v51 }
 0x2cf   : > { %v6018_v29 = vpop.f32.mrf.mxu0 }
 0x2d0   : > { %1223 = vmax.xlane.f32.xlu0 %v7933_v24  ;;  %v7956_v15 = vadd.f32 %v6018_v29, %v7952_v2 }
 0x2d1   : > { %v1183_v40 = vpop.f32.mrf.mxu0 }
 0x2d2   : > { %v7963_v0 = vadd.f32 %v7959_v51, %v1183_v40 }
 0x2d4   : > { %1219 = vmax.xlane.f32.xlu0 %v7941_v45 }
 0x2df   : > { %1565 = vrot.lane.b32.xlu1 %v7749_v39, %s7278_s15 }
 0x2ea   : > { %1567 = vrot.lane.b32.xlu0 %v7737_v18, %s7278_s15 }
 0x303   : > { %1225 = vmax.xlane.f32.xlu1 %v7956_v15 }
 0x307   : > { %1221 = vmax.xlane.f32.xlu1 %v7963_v0 }
 0x33f   : > { %v1200_v50 = vpop.xlane.xlu1 %1199 }
 0x340   : > { %v1229_v18 = vsub.f32 %v7832_v49, %v1200_v50 }
 0x341   : > { %v1196_v46 = vpop.xlane.xlu0 %1195 }
 0x342   : > { %v1247_v44 = vmul.f32 1.442695, %v1229_v18  ;;  %v1227_v29 = vsub.f32 %v7840_v9, %v1196_v46 }
 0x343   : > { %v1202_v37 = vpop.xlane.xlu1 %1201 }
 0x344   : > { %6563 = vpow2.f32 %v1247_v44  ;;  %v1243_v19 = vmul.f32 1.442695, %v1227_v29  ;;  %v1230_v2 = vsub.f32 %v7848_v13, %v1202_v37 }
 0x345   : > { %v1198_v35 = vpop.xlane.xlu0 %1197 }
 0x346   : > { %v1249_v7 = vmul.f32 1.442695, %v1230_v2  ;;  %v1228_v40 = vsub.f32 %v7855_v60, %v1198_v35  ;;  %6565 = vpow2.f32 %v1243_v19 }
 0x348   : > { %6567 = vpow2.f32 %v1249_v7  ;;  %v1245_v51 = vmul.f32 1.442695, %v1228_v40 }
 0x349   : > { %v1208_v49 = vpop.xlane.xlu0 %1207 }
 0x34a   : > { %6569 = vpow2.f32 %v1245_v51  ;;  %v1233_v7 = vsub.f32 %v7869_v25, %v1208_v49 }
 0x34b   : > { %v1210_v13 = vpop.xlane.xlu1 %1209 }
 0x34c   : > { %v1255_v44 = vmul.f32 1.442695, %v1233_v7  ;;  %v1234_v19 = vsub.f32 %v7877_v17, %v1210_v13 }
 0x34d   : > { %v1204_v9 = vpop.xlane.xlu0 %1203 }
 0x34e   : > { %v1231_v2 = vsub.f32 %v7886_v59, %v1204_v9  ;;  %6571 = vpow2.f32 %v1255_v44  ;;  %v1257_v58 = vmul.f32 1.442695, %v1234_v19 }
 0x34f   : > { %v1206_v35 = vpop.xlane.xlu1 %1205 }
 0x350   : > { %v1232_v29 = vsub.f32 %v7897_v33, %v1206_v35  ;;  %v1251_v40 = vmul.f32 1.442695, %v1231_v2 }
 0x351   : > { %v7972_v8 = vpop.eup %6563  ;;  %v1216_v51 = vpop.xlane.xlu0 %1215 }
 0x352   : > { %1279 = vadd.xlane.f32.xlu0 %v7972_v8  ;;  %6573 = vpow2.f32 %v1251_v40  ;;  %v1237_v25 = vsub.f32 %v7904_v48, %v1216_v51 }
 0x353   : > { %v7975_v50 = vpop.eup %6565  ;;  %v1218_v16 = vpop.xlane.xlu1 %1217 }
 0x354   : > { %v1263_v33 = vmul.f32 1.442695, %v1237_v25  ;;  %v1238_v7 = vsub.f32 %v7912_v61, %v1218_v16 }
 0x355   : > { %v7977_v18 = vpop.eup %6567  ;;  %v1212_v60 = vpop.xlane.xlu0 %1211 }
 0x356   : > { %1281 = vadd.xlane.f32.xlu1 %v7977_v18  ;;  %1275 = vadd.xlane.f32.xlu0 %v7975_v50  ;;  %v1235_v17 = vsub.f32 %v7921_v12, %v1212_v60 }
 0x357   : > { %v7981_v37 = vpop.eup %6569  ;;  %v1214_v9 = vpop.xlane.xlu1 %1213 }
 0x358   : > { %v1259_v35 = vmul.f32 1.442695, %v1235_v17 }
 0x359   : > { %v1224_v46 = vpop.xlane.xlu0 %1223 }
 0x35a   : > { %1277 = vadd.xlane.f32.xlu1 %v7981_v37  ;;  %v1241_v22 = vsub.f32 %v7933_v24, %v1224_v46 }
 0x35b   : > { %v7997_v24 = vpop.permute.xlu1 %1565  ;;  %v7999_v2 = vpop.eup %6571 }
 0x35c   : > { %v1271_v49 = vmul.f32 1.442695, %v1241_v22 }
 0x35f   : > { %v8002_v22 = vpop.eup %6573 }
 0x36b   : > { %1561 = vrot.lane.b32.xlu1 %v7769_v52, %s7278_s15  ;;  %v1253_v52 = vmul.f32 1.442695, %v1232_v29 }
 0x36c   : > { %1563 = vrot.lane.b32.xlu0 %v7759_v62, %s7278_s15  ;;  %v1220_v62 = vpop.xlane.xlu0 %1219 }
 0x36d   : > { %6575 = vpow2.f32 %v1253_v52  ;;  %v1239_v59 = vsub.f32 %v7941_v45, %v1220_v62  ;;  %v1265_v52 = vmul.f32 1.442695, %v1238_v7 }
 0x36e   : > { %6577 = vpow2.f32 %v1257_v58  ;;  %v1236_v58 = vsub.f32 %v7930_v14, %v1214_v9 }
 0x36f   : > { %6579 = vpow2.f32 %v1271_v49  ;;  %v1267_v13 = vmul.f32 1.442695, %v1239_v59 }
 0x370   : > { %6581 = vpow2.f32 %v1263_v33  ;;  %v1261_v51 = vmul.f32 1.442695, %v1236_v58  ;;  %v1568_v49 = vpop.permute.xlu0 %1567 }
 0x371   : > { %6583 = vpow2.f32 %v1267_v13 }
 0x372   : > { %6585 = vpow2.f32 %v1259_v35 }
 0x373   : > { %6587 = vpow2.f32 %v1265_v52 }
 0x37a   : > { %v8006_v12 = vpop.eup %6575 }
 0x37b   : > { %v8010_v45 = vpop.eup %6577 }
 0x37c   : > { %v8013_v46 = vpop.eup %6579 }
 0x37d   : > { %v8017_v14 = vpop.eup %6581 }
 0x37e   : > { %v8019_v44 = vpop.eup %6583 }
 0x37f   : > { %v8023_v29 = vpop.eup %6585 }
 0x38b   : > { %1287 = vadd.xlane.f32.xlu0 %v7999_v2 }
 0x38c   : > { %v1226_v62 = vpop.xlane.xlu1 %1225 }
 0x38d   : > { %v1242_v48 = vsub.f32 %v7956_v15, %v1226_v62 }
 0x38f   : > { %v1273_v16 = vmul.f32 1.442695, %v1242_v48  ;;  %1285 = vadd.xlane.f32.xlu0 %v8006_v12  ;;  %1283 = vadd.xlane.f32.xlu1 %v8002_v22 }
 0x390   : > { %v1222_v61 = vpop.xlane.xlu1 %1221 }
 0x391   : > { %6589 = vpow2.f32 %v1273_v16  ;;  %v1240_v60 = vsub.f32 %v7963_v0, %v1222_v61  ;;  %v8026_v0 = vpop.eup %6587 }
 0x392   : > { %6591 = vpow2.f32 %v1261_v51 }
 0x393   : > { %1289 = vadd.xlane.f32.xlu1 %v8010_v45  ;;  %1303 = vadd.xlane.f32.xlu0 %v8013_v46  ;;  %v1269_v15 = vmul.f32 1.442695, %v1240_v60  ;;  %v1619_v60 = vsel %vm1049_vm0, %v7811_v55, 0 }
 0x395   : > { %6593 = vpow2.f32 %v1269_v15 }
 0x397   : > { %1295 = vadd.xlane.f32.xlu1 %v8017_v14  ;;  %1299 = vadd.xlane.f32.xlu0 %v8019_v44 }
 0x39b   : > { %1291 = vadd.xlane.f32.xlu1 %v8023_v29 }
 0x39e   : > { %v8028_v19 = vpop.eup %6589 }
 0x39f   : > { %1297 = vadd.xlane.f32.xlu1 %v8026_v0  ;;  %1305 = vadd.xlane.f32.xlu0 %v8028_v19  ;;  %v8032_v40 = vpop.eup %6591 }
 0x3a2   : > { %v8035_v25 = vpop.eup %6593 }
 0x3a3   : > { %1293 = vadd.xlane.f32.xlu1 %v8032_v40 }
 0x3a7   : > { %1301 = vadd.xlane.f32.xlu1 %v8035_v25 }
 0x3b5   : > { %1559 = vrot.lane.b32.xlu0 %v7779_v28, %s7278_s15 }
 0x3b8   : > { %1557 = vrot.lane.b32.xlu1 %v7789_v11, %s7278_s15 }
 0x3b9   : > { %1533 = vrot.lane.b32.xlu0 %v7584_v63, %s7278_s15 }
 0x3bc   : > { %1535 = vrot.lane.b32.xlu1 %v7596_v10, %s7278_s15 }
 0x3bd   : > { %1537 = vrot.lane.b32.xlu0 %v7612_v23, %s7278_s15 }
 0x3c0   : > { %1539 = vrot.lane.b32.xlu1 %v7624_v36, %s7278_s15 }
 0x3c1   : > { %1541 = vrot.lane.b32.xlu0 %v7638_v57, %s7278_s15 }
 0x3c4   : > { %1543 = vrot.lane.b32.xlu1 %v7655_v32, %s7278_s15 }
 0x3c5   : > { %1545 = vrot.lane.b32.xlu0 %v7682_v3, %s7278_s15 }
 0x3c8   : > { %1547 = vrot.lane.b32.xlu1 %v7708_v53, %s7278_s15 }
 0x3c9   : > { %1892 = vrot.lane.b32.xlu0 %v7651_v21, %s7278_s15 }
 0x3cc   : > { %1890 = vrot.lane.b32.xlu1 %v7658_v34, %s7278_s15 }
 0x3cd   : > { %1888 = vrot.lane.b32.xlu0 %v7664_v42, %s7278_s15 }
 0x3d0   : > { %1882 = vrot.lane.b32.xlu1 %v7706_v31, %s7278_s15 }
 0x3d1   : > { %1886 = vrot.lane.b32.xlu0 %v7676_v56, %s7278_s15 }
 0x3d4   : > { %1878 = vrot.lane.b32.xlu1 %v7731_v54, %s7278_s15 }
 0x3d5   : > { %1884 = vrot.lane.b32.xlu0 %v7690_v6, %s7278_s15 }
 0x3db   : > { %v1280_v59 = vpop.xlane.xlu0 %1279 }
 0x3df   : > { %v1282_v9 = vpop.xlane.xlu1 %1281  ;;  %v1276_v33 = vpop.xlane.xlu0 %1275 }
 0x3e0   : > { %6595 = vrcp.f32 %v1282_v9 }
 0x3e1   : > { %6597 = vrcp.f32 %v1276_v33 }
 0x3e2   : > { %6599 = vrcp.f32 %v1280_v59 }
 0x3e3   : > { %v1278_v17 = vpop.xlane.xlu1 %1277  ;;  %v1564_v55 = vpop.permute.xlu0 %1563 }
 0x3e4   : > { %6601 = vrcp.f32 %v1278_v17 }
 0x3ed   : > { %v6596_v13 = vpop.eup %6595 }
 0x3ee   : > { %v6598_v7 = vpop.eup %6597  ;;  %v1326_v62 = vmul.f32 %v6596_v13, %v7977_v18  ;;  %v1616_v18 = vsel %vm1049_vm0, %v7966_v38, 0 }
 0x3ef   : > { %v6600_v35 = vpop.eup %6599  ;;  %v1323_v58 = vmul.f32 %v6598_v7, %v7975_v50  ;;  %v1613_v50 = vsel %vm1049_vm0, %v1568_v49, 0 }
 0x3f0   : > { %v1325_v16 = vmul.f32 %v6600_v35, %v7972_v8  ;;  %v1610_v8 = vsel %vm1049_vm0, %v7997_v24, 0 }
 0x3f1   : > { %v6602_v52 = vpop.eup %6601 }
 0x3f2   : > { %v1324_v48 = vmul.f32 %v6602_v52, %v7981_v37  ;;  %v1340_v51 = vpack.c.bf16 %v1326_v62, %v1325_v16  ;;  %v1562_v37 = vpop.permute.xlu1 %1561 }
 0x3f4   : > { %v1339_v61 = vpack.c.bf16 %v1324_v48, %v1323_v58 }
 0x3f6   : > { %6035 = vmatprep.mubr.bf16.mxu1 %v1339_v61 }
 0x3f7   : > { %6036 = vmatmul.mubr.bf16.vlgmr.msra.gmra.mxu1 %v1340_v51 }
 0x3f8   : > { %6052 = vmatpush3.bf16.xpose.msra.mxu1 %v1619_v60 }
 0x3f9   : > { %6300 = vmatprep.subr.msk.bf16.mxu1 %vm1049_vm0, %v7966_v38  ;;  %v1607_v38 = vsel %vm1049_vm0, %v1564_v55, 0 }
 0x400   : > { %6054 = vmatpush3.bf16.xpose.msra.mxu1 %v1616_v18 }
 0x401   : > { %6301 = vmatprep.subr.msk.bf16.mxu1 %vm1049_vm0, %v1568_v49 }
 0x408   : > { %6056 = vmatpush3.bf16.xpose.msra.mxu1 %v1613_v50 }
 0x409   : > { %6302 = vmatprep.subr.msk.bf16.mxu1 %vm1049_vm0, %v7997_v24  ;;  %v1604_v24 = vsel %vm1049_vm0, %v1562_v37, 0 }
 0x410   : > { %6058 = vmatpush3.bf16.xpose.msra.mxu1 %v1610_v8 }
 0x411   : > { %6303 = vmatprep.subr.msk.bf16.mxu1 %vm1049_vm0, %v1564_v55 }
 0x414   : > { %v1288_v15 = vpop.xlane.xlu0 %1287 }
 0x418   : > { %6060 = vmatpush3.bf16.xpose.msra.mxu1 %v1607_v38  ;;  %v1284_v59 = vpop.xlane.xlu1 %1283  ;;  %v1286_v9 = vpop.xlane.xlu0 %1285 }
 0x419   : > { %6603 = vrcp.f32 %v1284_v59  ;;  %6304 = vmatprep.subr.msk.bf16.mxu1 %vm1049_vm0, %v1562_v37 }
 0x41a   : > { %6605 = vrcp.f32 %v1286_v9 }
 0x41b   : > { %6607 = vrcp.f32 %v1288_v15 }
 0x41c   : > { %v1290_v49 = vpop.xlane.xlu1 %1289  ;;  %v1304_v33 = vpop.xlane.xlu0 %1303 }
 0x41d   : > { %6609 = vrcp.f32 %v1290_v49 }
 0x420   : > { %6062 = vmatpush3.bf16.xpose.msra.mxu1 %v1604_v24  ;;  %v1296_v17 = vpop.xlane.xlu1 %1295  ;;  %v1300_v13 = vpop.xlane.xlu0 %1299 }
 0x424   : > { %v1292_v7 = vpop.xlane.xlu1 %1291 }
 0x426   : > { %v6604_v35 = vpop.eup %6603 }
 0x427   : > { %v6606_v52 = vpop.eup %6605  ;;  %v1327_v62 = vmul.f32 %v6604_v35, %v8002_v22 }
 0x428   : > { %v6608_v58 = vpop.eup %6607  ;;  %v1298_v48 = vpop.xlane.xlu1 %1297  ;;  %v1328_v61 = vmul.f32 %v6606_v52, %v8006_v12 }
 0x429   : > { %v1306_v16 = vpop.xlane.xlu0 %1305  ;;  %6611 = vrcp.f32 %v1298_v48  ;;  %v1329_v18 = vmul.f32 %v6608_v58, %v7999_v2 }
 0x42a   : > { %v6610_v51 = vpop.eup %6609  ;;  %v1341_v60 = vpack.c.bf16 %v1328_v61, %v1327_v62  ;;  %6613 = vrcp.f32 %v1292_v7 }
 0x42b   : > { %v1330_v50 = vmul.f32 %v6610_v51, %v8010_v45  ;;  %6615 = vrcp.f32 %v1296_v17 }
 0x42c   : > { %6039 = vmatprep.mubr.bf16.mxu1 %v1341_v60  ;;  %v1294_v8 = vpop.xlane.xlu1 %1293 }
 0x42d   : > { %v1560_v55 = vpop.permute.xlu0 %1559  ;;  %6617 = vrcp.f32 %v1294_v8  ;;  %v1342_v37 = vpack.c.bf16 %v1330_v50, %v1329_v18 }
 0x42e   : > { %6305 = vmatprep.subr.msk.bf16.mxu1 %vm1049_vm0, %v1560_v55  ;;  %v1601_v22 = vsel %vm1049_vm0, %v1560_v55, 0  ;;  %6619 = vrcp.f32 %v1300_v13 }
 0x42f   : > { %6064 = vmatpush3.bf16.xpose.msra.mxu1 %v1601_v22 }
 0x430   : > { %6040 = vmatmul.mubr.bf16.gmra.mxu1 %v1342_v37  ;;  %v1302_v12 = vpop.xlane.xlu1 %1301 }
 0x431   : > { %v1534_v15 = vpop.permute.xlu0 %1533  ;;  %6621 = vrcp.f32 %v1302_v12 }
 0x432   : > { %6623 = vrcp.f32 %v1306_v16 }
 0x433   : > { %6625 = vrcp.f32 %v1304_v33 }
 0x434   : > { %v1558_v2 = vpop.permute.xlu1 %1557 }
 0x435   : > { %v1538_v45 = vpop.permute.xlu0 %1537  ;;  %6306 = vmatprep.subr.msk.bf16.mxu1 %vm1049_vm0, %v1558_v2  ;;  %v1598_v38 = vsel %vm1049_vm0, %v1558_v2, 0 }
 0x436   : > { %v6612_v59 = vpop.eup %6611 }
 0x437   : > { %6066 = vmatpush3.bf16.xpose.msra.mxu1 %v1598_v38  ;;  %v6614_v9 = vpop.eup %6613  ;;  %v1334_v13 = vmul.f32 %v6612_v59, %v8026_v0 }
 0x438   : > { %v1536_v49 = vpop.permute.xlu1 %1535  ;;  %v6616_v17 = vpop.eup %6615  ;;  %v1331_v35 = vmul.f32 %v6614_v9, %v8023_v29 }
 0x439   : > { %v1542_v24 = vpop.permute.xlu0 %1541  ;;  %v1333_v48 = vmul.f32 %v6616_v17, %v8017_v14 }
 0x43a   : > { %v6618_v7 = vpop.eup %6617 }
 0x43b   : > { %v1332_v52 = vmul.f32 %v6618_v7, %v8032_v40  ;;  %v6620_v33 = vpop.eup %6619  ;;  %v1344_v51 = vpack.c.bf16 %v1334_v13, %v1333_v48 }
 0x43c   : > { %v1540_v62 = vpop.permute.xlu1 %1539  ;;  %v1335_v18 = vmul.f32 %v6620_v33, %v8019_v44 }
 0x43d   : > { %v1546_v58 = vpop.permute.xlu0 %1545  ;;  %v1343_v16 = vpack.c.bf16 %v1332_v52, %v1331_v35 }
 0x43e   : > { %v6622_v61 = vpop.eup %6621 }
 0x43f   : > { %v6624_v60 = vpop.eup %6623  ;;  %6043 = vmatprep.mubr.bf16.mxu1 %v1343_v16  ;;  %v1336_v50 = vmul.f32 %v6622_v61, %v8035_v25 }
 0x440   : > { %v1544_v8 = vpop.permute.xlu1 %1543  ;;  %6044 = vmatmul.mubr.bf16.gmra.mxu1 %v1344_v51  ;;  %v6626_v29 = vpop.eup %6625  ;;  %v1338_v40 = vmul.f32 %v6624_v60, %v8028_v19 }
 0x441   : > { %v1893_v0 = vpop.permute.xlu0 %1892  ;;  %v1345_v55 = vpack.c.bf16 %v1336_v50, %v1335_v18  ;;  %v1337_v22 = vmul.f32 %v6626_v29, %v8013_v46 }
 0x442   : > { %6083 = vmatprep.subr.bf16.mxu0 %v1893_v0 }
 0x443   : > { %6084 = vmatpush3.bf16.msra.mxu0 %v1893_v0  ;;  %6047 = vmatprep.mubr.bf16.mxu1 %v1345_v55  ;;  %v1346_v12 = vpack.c.bf16 %v1338_v40, %v1337_v22 }
 0x444   : > { %v1548_v14 = vpop.permute.xlu1 %1547 }
 0x445   : > { %v1889_v37 = vpop.permute.xlu0 %1888 }
 0x448   : > { %v1891_v2 = vpop.permute.xlu1 %1890  ;;  %6048 = vmatmul.mubr.bf16.gmra.mxu1 %v1346_v12 }
 0x449   : > { %6067 = vmatprep.mubr.msk.bf16.mxu1 %vm1049_vm0, %v1534_v15  ;;  %6085 = vmatprep.subr.bf16.mxu0 %v1891_v2  ;;  %v1887_v44 = vpop.permute.xlu0 %1886 }
 0x44a   : > { %6086 = vmatpush3.bf16.msra.mxu0 %v1891_v2 }
 0x44b   : > { %6087 = vmatprep.subr.bf16.mxu0 %v1889_v37 }
 0x44c   : > { %v1883_v46 = vpop.permute.xlu1 %1882 }
 0x44d   : > { %v1885_v19 = vpop.permute.xlu0 %1884 }
 0x44e   : > { %6088 = vmatpush3.bf16.msra.mxu0 %v1889_v37 }
 0x44f   : > { %6089 = vmatprep.subr.bf16.mxu0 %v1887_v44 }
 0x450   : > { %6068 = vmatmul.mubr.msk.bf16.vlgmr.msra.gmra.mxu1 %vm1049_vm0, %v1536_v49 }
 0x451   : > { %6071 = vmatprep.mubr.msk.bf16.mxu1 %vm1049_vm0, %v1538_v45 }
 0x452   : > { %6090 = vmatpush3.bf16.msra.mxu0 %v1887_v44 }
 0x453   : > { %6091 = vmatprep.subr.bf16.mxu0 %v1885_v19 }
 0x456   : > { %6092 = vmatpush3.bf16.msra.mxu0 %v1885_v19 }
 0x457   : > { %6093 = vmatprep.subr.bf16.mxu0 %v1883_v46 }
 0x458   : > { %6072 = vmatmul.mubr.msk.bf16.gmra.mxu1 %vm1049_vm0, %v1540_v62 }
 0x459   : > { %6075 = vmatprep.mubr.msk.bf16.mxu1 %vm1049_vm0, %v1542_v24 }
 0x45a   : > { %6094 = vmatpush3.bf16.msra.mxu0 %v1883_v46 }
 0x460   : > { %6076 = vmatmul.mubr.msk.bf16.gmra.mxu1 %vm1049_vm0, %v1544_v8 }
 0x461   : > { %6079 = vmatprep.mubr.msk.bf16.mxu1 %vm1049_vm0, %v1546_v58 }
 0x468   : > { %6080 = vmatmul.mubr.msk.bf16.gmra.mxu1 %vm1049_vm0, %v1548_v14 }
 0x4b7   : > { %v6037_v25 = vpop.f32.mrf.mxu1 }
 0x4b8   : > { %v5604_v15 = vpack.c.bf16 %v6037_v25, %v6037_v25 }
 0x4b9   : > { %v1381_v45 = vpop.f32.mrf.mxu1 }
 0x4ba   : > { %1511 = vst.msk [vmem:[#allocation2 + $0x8] sm:$0xf] %vm1508_vm2, %v5604_v15  ;;  %v5602_v38 = vpack.c.bf16 %v1381_v45, %v1381_v45 }
 0x4bb   : > { %v6038_v59 = vpop.f32.mrf.mxu1 }
 0x4bc   : > { %1509 = vst.msk [vmem:[#allocation2] sm:$0xf] %vm1508_vm2, %v5602_v38  ;;  %v5605_v9 = vpack.c.bf16 %v6038_v59, %v6038_v59 }
 0x4bd   : > { %v1384_v49 = vpop.f32.mrf.mxu1 }
 0x4be   : > { %1512 = vst.msk [vmem:[#allocation2 + $0xc] sm:$0xf] %vm1508_vm2, %v5605_v9  ;;  %v5603_v24 = vpack.c.bf16 %v1384_v49, %v1384_v49 }
 0x4c0   : > { %1510 = vst.msk [vmem:[#allocation2 + $0x4] sm:$0xf] %vm1508_vm2, %v5603_v24 }
 0x4f0   : > { %v6041_v17 = vpop.f32.mrf.mxu1 }
 0x4f1   : > { %v5608_v7 = vpack.c.bf16 %v6041_v17, %v6041_v17 }
 0x4f2   : > { %v1397_v13 = vpop.f32.mrf.mxu1 }
 0x4f3   : > { %1515 = vst.msk [vmem:[#allocation2 + $0x18] sm:$0xf] %vm1508_vm2, %v5608_v7  ;;  %v5606_v35 = vpack.c.bf16 %v1397_v13, %v1397_v13 }
 0x4f4   : > { %v6042_v52 = vpop.f32.mrf.mxu1 }
 0x4f5   : > { %1513 = vst.msk [vmem:[#allocation2 + $0x10] sm:$0xf] %vm1508_vm2, %v5606_v35  ;;  %v5609_v33 = vpack.c.bf16 %v6042_v52, %v6042_v52 }
 0x4f6   : > { %v1400_v62 = vpop.f32.mrf.mxu1 }
 0x4f7   : > { %1516 = vst.msk [vmem:[#allocation2 + $0x1c] sm:$0xf] %vm1508_vm2, %v5609_v33  ;;  %v5607_v58 = vpack.c.bf16 %v1400_v62, %v1400_v62 }
 0x4f9   : > { %1514 = vst.msk [vmem:[#allocation2 + $0x14] sm:$0xf] %vm1508_vm2, %v5607_v58 }
 0x500   : > { %v6045_v48 = vpop.f32.mrf.mxu1 }
 0x501   : > { %v5612_v16 = vpack.c.bf16 %v6045_v48, %v6045_v48  ;;  %v10003_v48 = vld [vmem:[#allocation27_spill] sm:$0xff] }
 0x502   : > { %v1413_v61 = vpop.f32.mrf.mxu1 }
 0x503   : > { %1519 = vst.msk [vmem:[#allocation2 + $0x28] sm:$0xf] %vm1508_vm2, %v5612_v16  ;;  %v5610_v51 = vpack.c.bf16 %v1413_v61, %v1413_v61  ;;  %v10004_v61 = vld [vmem:[#allocation28_spill] sm:$0xff] }
 0x504   : > { %v6046_v60 = vpop.f32.mrf.mxu1 }
 0x505   : > { %1517 = vst.msk [vmem:[#allocation2 + $0x20] sm:$0xf] %vm1508_vm2, %v5610_v51  ;;  %v5613_v18 = vpack.c.bf16 %v6046_v60, %v6046_v60  ;;  %v10005_v60 = vld [vmem:[#allocation29_spill] sm:$0xff] }
 0x506   : > { %v1416_v50 = vpop.f32.mrf.mxu1 }
 0x507   : > { %1520 = vst.msk [vmem:[#allocation2 + $0x2c] sm:$0xf] %vm1508_vm2, %v5613_v18  ;;  %v5611_v8 = vpack.c.bf16 %v1416_v50, %v1416_v50 }
 0x508   : > { %v6049_v0 = vpop.f32.mrf.mxu1 }
 0x509   : > { %1518 = vst.msk [vmem:[#allocation2 + $0x24] sm:$0xf] %vm1508_vm2, %v5611_v8  ;;  %v5616_v29 = vpack.c.bf16 %v6049_v0, %v6049_v0  ;;  %v10006_v8 = vld [vmem:[#allocation30_spill] sm:$0xff] }
 0x50a   : > { %v1429_v55 = vpop.f32.mrf.mxu1 }
 0x50b   : > { %1523 = vst.msk [vmem:[#allocation2 + $0x38] sm:$0xf] %vm1508_vm2, %v5616_v29  ;;  %v5614_v40 = vpack.c.bf16 %v1429_v55, %v1429_v55  ;;  %v10007_v55 = vld [vmem:[#allocation31_spill] sm:$0xff] }
 0x50c   : > { %v6050_v14 = vpop.f32.mrf.mxu1 }
 0x50d   : > { %1521 = vst.msk [vmem:[#allocation2 + $0x30] sm:$0xf] %vm1508_vm2, %v5614_v40  ;;  %v5617_v22 = vpack.c.bf16 %v6050_v14, %v6050_v14 }
 0x50e   : > { %v1432_v37 = vpop.f32.mrf.mxu1 }
 0x50f   : > { %1524 = vst.msk [vmem:[#allocation2 + $0x3c] sm:$0xf] %vm1508_vm2, %v5617_v22  ;;  %v5615_v12 = vpack.c.bf16 %v1432_v37, %v1432_v37  ;;  %v10008_v22 = vld [vmem:[#allocation32_spill] sm:$0xff] }
 0x510   : > { %v6069_v2 = vpop.f32.mrf.mxu1 }
 0x511   : > { %1522 = vst.msk [vmem:[#allocation2 + $0x34] sm:$0xf] %vm1508_vm2, %v5615_v12  ;;  %v1664_v44 = vadd.f32 %v6069_v2, %v7825_v20  ;;  %v10009_v12 = vld [vmem:[#allocation33_spill] sm:$0xff] }
 0x512   : > { %v1655_v19 = vpop.f32.mrf.mxu1 }
 0x513   : > { %1722 = vmax.xlane.f32.xlu0 %v1664_v44  ;;  %v1656_v25 = vadd.f32 %v7829_v27, %v1655_v19 }
 0x514   : > { %v6070_v46 = vpop.f32.mrf.mxu1 }
 0x515   : > { %v1667_v59 = vadd.f32 %v6070_v46, %v7837_v26  ;;  %v10010_v46 = vld [vmem:[#allocation34_spill] sm:$0xff] }
 0x516   : > { %v1658_v15 = vpop.f32.mrf.mxu1 }
 0x517   : > { %1718 = vmax.xlane.f32.xlu0 %v1656_v25  ;;  %v1659_v45 = vadd.f32 %v7845_v47, %v1658_v15 }
 0x518   : > { %v6073_v38 = vpop.f32.mrf.mxu1 }
 0x519   : > { %1720 = vmax.xlane.f32.xlu1 %v1659_v45  ;;  %v1680_v16 = vadd.f32 %v6073_v38, %v10003_v48  ;;  %v10011_v38 = vld [vmem:[#allocation21_spill] sm:$0xff] }
 0x51a   : > { %v1671_v9 = vpop.f32.mrf.mxu1 }
 0x51b   : > { %1724 = vmax.xlane.f32.xlu0 %v1667_v59  ;;  %v8160_v51 = vadd.f32 %v10004_v61, %v1671_v9  ;;  %v10012_v9 = vld [vmem:[#allocation24_spill] sm:$0xff] }
 0x51c   : > { %v6074_v49 = vpop.f32.mrf.mxu1 }
 0x51d   : > { %v8137_v24 = vadd.f32 %v6074_v49, %v7866_v1  ;;  %v10013_v49 = vld [vmem:[#allocation25_spill] sm:$0xff] }
 0x51e   : > { %v1674_v17 = vpop.f32.mrf.mxu1 }
 0x51f   : > { %1732 = vmax.xlane.f32.xlu1 %v8137_v24  ;;  %v8141_v13 = vadd.f32 %v7883_v5, %v1674_v17 }
 0x520   : > { %v6077_v7 = vpop.f32.mrf.mxu1 }
 0x521   : > { %v8164_v18 = vadd.f32 %v6077_v7, %v10005_v60 }
 0x522   : > { %v1687_v35 = vpop.f32.mrf.mxu1 }
 0x523   : > { %1728 = vmax.xlane.f32.xlu1 %v8141_v13  ;;  %v8168_v0 = vadd.f32 %v10006_v8, %v1687_v35  ;;  %v1879_v35 = vpop.permute.xlu1 %1878 }
 0x524   : > { %v6078_v52 = vpop.f32.mrf.mxu1 }
 0x525   : > { %v8145_v33 = vadd.f32 %v6078_v52, %v7901_v43 }
 0x526   : > { %v1690_v62 = vpop.f32.mrf.mxu1 }
 0x527   : > { %1740 = vmax.xlane.f32.xlu1 %v8145_v33  ;;  %v8149_v58 = vadd.f32 %v7918_v30, %v1690_v62 }
 0x528   : > { %v6081_v50 = vpop.f32.mrf.mxu1 }
 0x529   : > { %v8172_v40 = vadd.f32 %v6081_v50, %v10007_v55 }
 0x52a   : > { %v1703_v29 = vpop.f32.mrf.mxu1 }
 0x52b   : > { %1736 = vmax.xlane.f32.xlu1 %v8149_v58  ;;  %v8176_v37 = vadd.f32 %v10008_v22, %v1703_v29 }
 0x52c   : > { %v6082_v14 = vpop.f32.mrf.mxu1 }
 0x52d   : > { %v8179_v2 = vadd.f32 %v6082_v14, %v10009_v12 }
 0x52e   : > { %v1706_v19 = vpop.f32.mrf.mxu1 }
 0x52f   : > { %v8184_v15 = vadd.f32 %v10010_v46, %v1706_v19 }
 0x531   : > { %1880 = vrot.lane.b32.xlu0 %v7721_v41, %s7278_s15 }
 0x53c   : > { %2140 = vrot.lane.b32.xlu1 %v7684_v4, %s7280_s20 }
 0x540   : > { %2136 = vrot.lane.b32.xlu1 %v7749_v39, %s7280_s20 }
 0x550   : > { %1730 = vmax.xlane.f32.xlu0 %v1680_v16 }
 0x554   : > { %1726 = vmax.xlane.f32.xlu0 %v8160_v51 }
 0x558   : > { %1738 = vmax.xlane.f32.xlu0 %v8164_v18 }
 0x55c   : > { %1734 = vmax.xlane.f32.xlu0 %v8168_v0 }
 0x560   : > { %1746 = vmax.xlane.f32.xlu0 %v8172_v40 }
 0x564   : > { %1748 = vmax.xlane.f32.xlu1 %v8179_v2  ;;  %1742 = vmax.xlane.f32.xlu0 %v8176_v37 }
 0x568   : > { %1744 = vmax.xlane.f32.xlu1 %v8184_v15 }
 0x57a   : > { %2142 = vrot.lane.b32.xlu0 %v10011_v38, %s7280_s20 }
 0x57e   : > { %2138 = vrot.lane.b32.xlu0 %v10012_v9, %s7280_s20 }
 0x582   : > { %2134 = vrot.lane.b32.xlu0 %v10013_v49, %s7280_s20 }
 0x59c   : > { %v1723_v17 = vpop.xlane.xlu0 %1722 }
 0x59d   : > { %v1752_v7 = vsub.f32 %v1664_v44, %v1723_v17 }
 0x59f   : > { %v1770_v52 = vmul.f32 1.442695, %v1752_v7 }
 0x5a0   : > { %v1719_v62 = vpop.xlane.xlu0 %1718 }
 0x5a1   : > { %6627 = vpow2.f32 %v1770_v52  ;;  %v1750_v50 = vsub.f32 %v1656_v25, %v1719_v62 }
 0x5a2   : > { %v1721_v29 = vpop.xlane.xlu1 %1720 }
 0x5a3   : > { %v1766_v14 = vmul.f32 1.442695, %v1750_v50  ;;  %v1751_v46 = vsub.f32 %v1659_v45, %v1721_v29 }
 0x5a4   : > { %v1725_v19 = vpop.xlane.xlu0 %1724 }
 0x5a5   : > { %6629 = vpow2.f32 %v1766_v14  ;;  %v1753_v12 = vsub.f32 %v1667_v59, %v1725_v19  ;;  %v1768_v55 = vmul.f32 1.442695, %v1751_v46 }
 0x5a7   : > { %v1772_v38 = vmul.f32 1.442695, %v1753_v12 }
 0x5a8   : > { %v1881_v22 = vpop.permute.xlu0 %1880  ;;  %v1733_v59 = vpop.xlane.xlu1 %1732 }
 0x5a9   : > { %6631 = vpow2.f32 %v1772_v38  ;;  %6095 = vmatprep.subr.bf16.mxu0 %v1881_v22  ;;  %v1757_v52 = vsub.f32 %v8137_v24, %v1733_v59 }
 0x5aa   : > { %6096 = vmatpush3.bf16.msra.mxu0 %v1881_v22  ;;  %6633 = vpow2.f32 %v1768_v55  ;;  %v10014_v55 = vld [vmem:[#allocation26_spill] sm:$0xff] }
 0x5ab   : > { %6097 = vmatprep.subr.bf16.mxu0 %v1879_v35  ;;  %v1780_v49 = vmul.f32 1.442695, %v1757_v52 }
 0x5ac   : > { %v1729_v22 = vpop.xlane.xlu1 %1728 }
 0x5ad   : > { %v1755_v46 = vsub.f32 %v8141_v13, %v1729_v22 }
 0x5ae   : > { %v8193_v44 = vpop.eup %6627  ;;  %6098 = vmatpush3.bf16.msra.mxu0 %v1879_v35 }
 0x5af   : > { %1802 = vadd.xlane.f32.xlu1 %v8193_v44  ;;  %v1776_v62 = vmul.f32 1.442695, %v1755_v46 }
 0x5b0   : > { %v1741_v12 = vpop.xlane.xlu1 %1740 }
 0x5b2   : > { %v8196_v25 = vpop.eup %6629 }
 0x5b3   : > { %1798 = vadd.xlane.f32.xlu1 %v8196_v25 }
 0x5b4   : > { %v1737_v50 = vpop.xlane.xlu1 %1736 }
 0x5b6   : > { %v8199_v17 = vpop.eup %6631 }
 0x5b7   : > { %1804 = vadd.xlane.f32.xlu1 %v8199_v17  ;;  %v8202_v45 = vpop.eup %6633 }
 0x5b8   : > { %v8211_v8 = vpop.permute.xlu1 %2140 }
 0x5bb   : > { %1800 = vadd.xlane.f32.xlu1 %v8202_v45 }
 0x5cc   : > { %2132 = vrot.lane.b32.xlu1 %v10014_v55, %s7280_s20 }
 0x5d9   : > { %v1731_v38 = vpop.xlane.xlu0 %1730 }
 0x5da   : > { %v1756_v7 = vsub.f32 %v1680_v16, %v1731_v38  ;;  %v1761_v16 = vsub.f32 %v8145_v33, %v1741_v12 }
 0x5dc   : > { %v1778_v35 = vmul.f32 1.442695, %v1756_v7  ;;  %v1788_v46 = vmul.f32 1.442695, %v1761_v16  ;;  %v1759_v7 = vsub.f32 %v8149_v58, %v1737_v50 }
 0x5dd   : > { %v1727_v29 = vpop.xlane.xlu0 %1726 }
 0x5de   : > { %6635 = vpow2.f32 %v1778_v35  ;;  %v1754_v14 = vsub.f32 %v8160_v51, %v1727_v29  ;;  %v8215_v51 = vpop.permute.xlu1 %2136 }
 0x5df   : > { %6637 = vpow2.f32 %v1776_v62 }
 0x5e0   : > { %v1774_v19 = vmul.f32 1.442695, %v1754_v14 }
 0x5e1   : > { %v1739_v9 = vpop.xlane.xlu0 %1738 }
 0x5e2   : > { %6639 = vpow2.f32 %v1774_v19  ;;  %v1760_v55 = vsub.f32 %v8164_v18, %v1739_v9 }
 0x5e3   : > { %6641 = vpow2.f32 %v1780_v49 }
 0x5e4   : > { %v1786_v13 = vmul.f32 1.442695, %v1760_v55 }
 0x5e5   : > { %v1735_v24 = vpop.xlane.xlu0 %1734 }
 0x5e6   : > { %6643 = vpow2.f32 %v1786_v13  ;;  %v1758_v59 = vsub.f32 %v8168_v0, %v1735_v24  ;;  %v1784_v0 = vmul.f32 1.442695, %v1759_v7 }
 0x5e8   : > { %v1782_v22 = vmul.f32 1.442695, %v1758_v59 }
 0x5e9   : > { %v1747_v38 = vpop.xlane.xlu0 %1746 }
 0x5ea   : > { %6645 = vpow2.f32 %v1782_v22  ;;  %v1764_v18 = vsub.f32 %v8172_v40, %v1747_v38 }
 0x5eb   : > { %v8219_v9 = vpop.eup %6635  ;;  %6647 = vpow2.f32 %v1788_v46 }
 0x5ec   : > { %v1794_v55 = vmul.f32 1.442695, %v1764_v18  ;;  %1810 = vadd.xlane.f32.xlu0 %v8219_v9  ;;  %v8222_v12 = vpop.eup %6637 }
 0x5ed   : > { %v1749_v33 = vpop.xlane.xlu1 %1748  ;;  %v1743_v49 = vpop.xlane.xlu0 %1742 }
 0x5ee   : > { %6649 = vpow2.f32 %v1794_v55  ;;  %v1762_v35 = vsub.f32 %v8176_v37, %v1743_v49  ;;  %v1765_v58 = vsub.f32 %v8179_v2, %v1749_v33 }
 0x5ef   : > { %v8225_v52 = vpop.eup %6639  ;;  %6651 = vpow2.f32 %v1784_v0 }
 0x5f0   : > { %v1790_v62 = vmul.f32 1.442695, %v1762_v35  ;;  %1808 = vadd.xlane.f32.xlu1 %v8222_v12  ;;  %1806 = vadd.xlane.f32.xlu0 %v8225_v52  ;;  %v8232_v29 = vpop.eup %6641  ;;  %v1796_v19 = vmul.f32 1.442695, %v1765_v58 }
 0x5f1   : > { %v1745_v40 = vpop.xlane.xlu1 %1744  ;;  %v8230_v50 = vpop.permute.xlu0 %2142 }
 0x5f2   : > { %v1763_v14 = vsub.f32 %v8184_v15, %v1745_v40  ;;  %6307 = vmatprep.subr.msk.bf16.mxu0 %vm1049_vm0, %v8230_v50  ;;  %6653 = vpow2.f32 %v1790_v62 }
 0x5f3   : > { %v8237_v37 = vpop.eup %6643 }
 0x5f4   : > { %v1792_v2 = vmul.f32 1.442695, %v1763_v14  ;;  %1812 = vadd.xlane.f32.xlu0 %v8232_v29  ;;  %1818 = vadd.xlane.f32.xlu1 %v8237_v37 }
 0x5f6   : > { %6655 = vpow2.f32 %v1792_v2 }
 0x5f7   : > { %v8241_v13 = vpop.eup %6645  ;;  %6657 = vpow2.f32 %v1796_v19 }
 0x5f8   : > { %1814 = vadd.xlane.f32.xlu1 %v8241_v13  ;;  %v8244_v16 = vpop.eup %6647 }
 0x5fb   : > { %v8246_v15 = vpop.eup %6649 }
 0x5fc   : > { %1820 = vadd.xlane.f32.xlu1 %v8244_v16  ;;  %1826 = vadd.xlane.f32.xlu0 %v8246_v15  ;;  %v8250_v24 = vpop.eup %6651 }
 0x5ff   : > { %v8252_v59 = vpop.eup %6653 }
 0x600   : > { %1816 = vadd.xlane.f32.xlu1 %v8250_v24  ;;  %1822 = vadd.xlane.f32.xlu0 %v8252_v59 }
 0x603   : > { %v8256_v22 = vpop.eup %6655 }
 0x604   : > { %v8258_v46 = vpop.eup %6657  ;;  %1824 = vadd.xlane.f32.xlu1 %v8256_v22 }
 0x605   : > { %1828 = vadd.xlane.f32.xlu0 %v8258_v46 }
 0x615   : > { %2128 = vrot.lane.b32.xlu1 %v7789_v11, %s7280_s20 }
 0x619   : > { %2114 = vrot.lane.b32.xlu1 %v7596_v10, %s7280_s20 }
 0x61b   : > { %2130 = vrot.lane.b32.xlu0 %v7779_v28, %s7280_s20 }
 0x61d   : > { %2118 = vrot.lane.b32.xlu1 %v7624_v36, %s7280_s20 }
 0x61f   : > { %2112 = vrot.lane.b32.xlu0 %v7584_v63, %s7280_s20 }
 0x621   : > { %2122 = vrot.lane.b32.xlu1 %v7655_v32, %s7280_s20 }
 0x623   : > { %2116 = vrot.lane.b32.xlu0 %v7612_v23, %s7280_s20 }
 0x625   : > { %2126 = vrot.lane.b32.xlu1 %v7708_v53, %s7280_s20 }
 0x627   : > { %2120 = vrot.lane.b32.xlu0 %v7638_v57, %s7280_s20 }
 0x629   : > { %2453 = vrot.lane.b32.xlu1 %v7658_v34, %s7280_s20 }
 0x62b   : > { %2124 = vrot.lane.b32.xlu0 %v7682_v3, %s7280_s20 }
 0x62d   : > { %2445 = vrot.lane.b32.xlu1 %v7706_v31, %s7280_s20 }
 0x62f   : > { %2455 = vrot.lane.b32.xlu0 %v7651_v21, %s7280_s20 }
 0x631   : > { %2441 = vrot.lane.b32.xlu1 %v7731_v54, %s7280_s20 }
 0x633   : > { %2451 = vrot.lane.b32.xlu0 %v7664_v42, %s7280_s20 }
 0x637   : > { %2449 = vrot.lane.b32.xlu0 %v7676_v56, %s7280_s20 }
 0x638   : > { %v1803_v38 = vpop.xlane.xlu1 %1802 }
 0x63b   : > { %2447 = vrot.lane.b32.xlu0 %v7690_v6, %s7280_s20 }
 0x63c   : > { %v1799_v7 = vpop.xlane.xlu1 %1798 }
 0x640   : > { %v1805_v18 = vpop.xlane.xlu1 %1804 }
 0x641   : > { %6659 = vrcp.f32 %v1805_v18 }
 0x642   : > { %6661 = vrcp.f32 %v1799_v7  ;;  %v2139_v7 = vpop.permute.xlu0 %2138 }
 0x643   : > { %6663 = vrcp.f32 %v1803_v38  ;;  %v2190_v38 = vsel %vm1049_vm0, %v8230_v50, 0 }
 0x644   : > { %v1801_v55 = vpop.xlane.xlu1 %1800 }
 0x645   : > { %6665 = vrcp.f32 %v1801_v55 }
 0x648   : > { %v2133_v50 = vpop.permute.xlu1 %2132 }
 0x64e   : > { %v6660_v33 = vpop.eup %6659 }
 0x64f   : > { %v6662_v49 = vpop.eup %6661  ;;  %v1849_v58 = vmul.f32 %v6660_v33, %v8199_v17  ;;  %v2187_v17 = vsel %vm1049_vm0, %v8211_v8, 0 }
 0x650   : > { %v6664_v0 = vpop.eup %6663  ;;  %v1846_v62 = vmul.f32 %v6662_v49, %v8196_v25  ;;  %v2181_v25 = vsel %vm1049_vm0, %v8215_v51, 0 }
 0x651   : > { %v1848_v14 = vmul.f32 %v6664_v0, %v8193_v44  ;;  %v2184_v44 = vsel %vm1049_vm0, %v2139_v7, 0 }
 0x652   : > { %v6666_v35 = vpop.eup %6665 }
 0x653   : > { %v1847_v40 = vmul.f32 %v6666_v35, %v8202_v45  ;;  %v1863_v2 = vpack.c.bf16 %v1849_v58, %v1848_v14  ;;  %v2135_v45 = vpop.permute.xlu0 %2134 }
 0x655   : > { %v1862_v19 = vpack.c.bf16 %v1847_v40, %v1846_v62 }
 0x657   : > { %6099 = vmatprep.mubr.bf16.mxu0 %v1862_v19 }
 0x658   : > { %6100 = vmatmul.mubr.bf16.vlgmr.msra.gmra.mxu0 %v1863_v2 }
 0x659   : > { %6116 = vmatpush3.bf16.xpose.msra.mxu0 %v2190_v38 }
 0x65a   : > { %6308 = vmatprep.subr.msk.bf16.mxu0 %vm1049_vm0, %v8211_v8  ;;  %v2178_v8 = vsel %vm1049_vm0, %v2135_v45, 0 }
 0x661   : > { %6118 = vmatpush3.bf16.xpose.msra.mxu0 %v2187_v17 }
 0x662   : > { %6309 = vmatprep.subr.msk.bf16.mxu0 %vm1049_vm0, %v2139_v7 }
 0x669   : > { %6120 = vmatpush3.bf16.xpose.msra.mxu0 %v2184_v44 }
 0x66a   : > { %6310 = vmatprep.subr.msk.bf16.mxu0 %vm1049_vm0, %v8215_v51  ;;  %v2175_v51 = vsel %vm1049_vm0, %v2133_v50, 0 }
 0x671   : > { %6122 = vmatpush3.bf16.xpose.msra.mxu0 %v2181_v25 }
 0x672   : > { %6311 = vmatprep.subr.msk.bf16.mxu0 %vm1049_vm0, %v2135_v45 }
 0x675   : > { %v1811_v18 = vpop.xlane.xlu0 %1810 }
 0x679   : > { %6124 = vmatpush3.bf16.xpose.msra.mxu0 %v2178_v8  ;;  %v1809_v55 = vpop.xlane.xlu1 %1808  ;;  %v1807_v33 = vpop.xlane.xlu0 %1806 }
 0x67a   : > { %6667 = vrcp.f32 %v1809_v55  ;;  %6312 = vmatprep.subr.msk.bf16.mxu0 %vm1049_vm0, %v2133_v50 }
 0x67b   : > { %6669 = vrcp.f32 %v1807_v33 }
 0x67c   : > { %6671 = vrcp.f32 %v1811_v18 }
 0x67d   : > { %v1819_v49 = vpop.xlane.xlu1 %1818  ;;  %v1813_v0 = vpop.xlane.xlu0 %1812 }
 0x67e   : > { %6673 = vrcp.f32 %v1813_v0 }
 0x681   : > { %6126 = vmatpush3.bf16.xpose.msra.mxu0 %v2175_v51  ;;  %v1815_v35 = vpop.xlane.xlu1 %1814 }
 0x685   : > { %v1821_v58 = vpop.xlane.xlu1 %1820  ;;  %v1827_v62 = vpop.xlane.xlu0 %1826 }
 0x686   : > { %6675 = vrcp.f32 %v1821_v58 }
 0x687   : > { %v6668_v40 = vpop.eup %6667  ;;  %6677 = vrcp.f32 %v1815_v35 }
 0x688   : > { %v6670_v14 = vpop.eup %6669  ;;  %v1851_v19 = vmul.f32 %v6668_v40, %v8222_v12  ;;  %6679 = vrcp.f32 %v1819_v49 }
 0x689   : > { %v1817_v2 = vpop.xlane.xlu1 %1816  ;;  %v1850_v38 = vmul.f32 %v6670_v14, %v8225_v52  ;;  %v6672_v17 = vpop.eup %6671 }
 0x68a   : > { %6681 = vrcp.f32 %v1817_v2  ;;  %v1823_v7 = vpop.xlane.xlu0 %1822  ;;  %v1852_v50 = vmul.f32 %v6672_v17, %v8219_v9 }
 0x68b   : > { %v1864_v44 = vpack.c.bf16 %v1851_v19, %v1850_v38  ;;  %v6674_v25 = vpop.eup %6673  ;;  %6683 = vrcp.f32 %v1823_v7 }
 0x68c   : > { %v1853_v18 = vmul.f32 %v6674_v25, %v8232_v29 }
 0x68d   : > { %6103 = vmatprep.mubr.bf16.mxu0 %v1864_v44  ;;  %v1825_v45 = vpop.xlane.xlu1 %1824 }
 0x68e   : > { %6685 = vrcp.f32 %v1825_v45  ;;  %v1829_v8 = vpop.xlane.xlu0 %1828  ;;  %v1865_v12 = vpack.c.bf16 %v1853_v18, %v1852_v50 }
 0x68f   : > { %6687 = vrcp.f32 %v1829_v8 }
 0x690   : > { %6689 = vrcp.f32 %v1827_v62  ;;  %6104 = vmatmul.mubr.bf16.gmra.mxu0 %v1865_v12 }
 0x691   : > { %v2129_v55 = vpop.permute.xlu1 %2128 }
 0x692   : > { %v2131_v52 = vpop.permute.xlu0 %2130  ;;  %v2169_v44 = vsel %vm1049_vm0, %v2129_v55, 0 }
 0x693   : > { %6313 = vmatprep.subr.msk.bf16.mxu0 %vm1049_vm0, %v2131_v52  ;;  %v2172_v33 = vsel %vm1049_vm0, %v2131_v52, 0  ;;  %v6676_v49 = vpop.eup %6675 }
 0x694   : > { %6128 = vmatpush3.bf16.xpose.msra.mxu0 %v2172_v33  ;;  %v6678_v0 = vpop.eup %6677  ;;  %v1857_v58 = vmul.f32 %v6676_v49, %v8244_v16 }
 0x695   : > { %6314 = vmatprep.subr.msk.bf16.mxu0 %vm1049_vm0, %v2129_v55  ;;  %v2115_v9 = vpop.permute.xlu1 %2114  ;;  %v6680_v51 = vpop.eup %6679  ;;  %v1854_v62 = vmul.f32 %v6678_v0, %v8241_v13 }
 0x696   : > { %v2113_v29 = vpop.permute.xlu0 %2112  ;;  %v1856_v2 = vmul.f32 %v6680_v51, %v8237_v37 }
 0x697   : > { %v6682_v35 = vpop.eup %6681 }
 0x698   : > { %v1855_v40 = vmul.f32 %v6682_v35, %v8250_v24  ;;  %v6684_v14 = vpop.eup %6683  ;;  %v1867_v25 = vpack.c.bf16 %v1857_v58, %v1856_v2 }
 0x699   : > { %v2119_v19 = vpop.permute.xlu1 %2118  ;;  %v1858_v50 = vmul.f32 %v6684_v14, %v8252_v59 }
 0x69a   : > { %v2117_v38 = vpop.permute.xlu0 %2116  ;;  %v1866_v17 = vpack.c.bf16 %v1855_v40, %v1854_v62 }
 0x69b   : > { %v6686_v7 = vpop.eup %6685 }
 0x69c   : > { %v6688_v45 = vpop.eup %6687  ;;  %6130 = vmatpush3.bf16.xpose.msra.mxu0 %v2169_v44  ;;  %6107 = vmatprep.mubr.bf16.mxu0 %v1866_v17  ;;  %v1859_v16 = vmul.f32 %v6686_v7, %v8256_v22 }
 0x69d   : > { %v2123_v13 = vpop.permute.xlu1 %2122  ;;  %6108 = vmatmul.mubr.bf16.gmra.mxu0 %v1867_v25  ;;  %v6690_v24 = vpop.eup %6689  ;;  %v1861_v37 = vmul.f32 %v6688_v45, %v8258_v46 }
 0x69e   : > { %v2121_v18 = vpop.permute.xlu0 %2120  ;;  %v1868_v8 = vpack.c.bf16 %v1859_v16, %v1858_v50  ;;  %v1860_v12 = vmul.f32 %v6690_v24, %v8246_v15 }
 0x6a0   : > { %6111 = vmatprep.mubr.bf16.mxu0 %v1868_v8  ;;  %v1869_v33 = vpack.c.bf16 %v1861_v37, %v1860_v12 }
 0x6a1   : > { %v2127_v52 = vpop.permute.xlu1 %2126 }
 0x6a2   : > { %v2125_v55 = vpop.permute.xlu0 %2124 }
 0x6a5   : > { %6112 = vmatmul.mubr.bf16.gmra.mxu0 %v1869_v33  ;;  %v2454_v59 = vpop.permute.xlu1 %2453 }
 0x6a6   : > { %v2456_v49 = vpop.permute.xlu0 %2455  ;;  %6131 = vmatprep.mubr.msk.bf16.mxu0 %vm1049_vm0, %v2113_v29 }
 0x6a7   : > { %6147 = vmatprep.subr.bf16.mxu1 %v2456_v49 }
 0x6a8   : > { %6148 = vmatpush3.bf16.msra.mxu1 %v2456_v49 }
 0x6a9   : > { %6149 = vmatprep.subr.bf16.mxu1 %v2454_v59  ;;  %v2446_v0 = vpop.permute.xlu1 %2445 }
 0x6aa   : > { %v2452_v22 = vpop.permute.xlu0 %2451 }
 0x6ac   : > { %6150 = vmatpush3.bf16.msra.mxu1 %v2454_v59 }
 0x6ad   : > { %6151 = vmatprep.subr.bf16.mxu1 %v2452_v22  ;;  %6132 = vmatmul.mubr.msk.bf16.vlgmr.msra.gmra.mxu0 %vm1049_vm0, %v2115_v9 }
 0x6ae   : > { %v2450_v46 = vpop.permute.xlu0 %2449  ;;  %6135 = vmatprep.mubr.msk.bf16.mxu0 %vm1049_vm0, %v2117_v38 }
 0x6b0   : > { %6152 = vmatpush3.bf16.msra.mxu1 %v2452_v22 }
 0x6b1   : > { %6153 = vmatprep.subr.bf16.mxu1 %v2450_v46 }
 0x6b2   : > { %v2448_v15 = vpop.permute.xlu0 %2447 }
 0x6b4   : > { %6154 = vmatpush3.bf16.msra.mxu1 %v2450_v46 }
 0x6b5   : > { %6155 = vmatprep.subr.bf16.mxu1 %v2448_v15  ;;  %6136 = vmatmul.mubr.msk.bf16.gmra.mxu0 %vm1049_vm0, %v2119_v19 }
 0x6b6   : > { %6139 = vmatprep.mubr.msk.bf16.mxu0 %vm1049_vm0, %v2121_v18 }
 0x6b8   : > { %6156 = vmatpush3.bf16.msra.mxu1 %v2448_v15 }
 0x6b9   : > { %6157 = vmatprep.subr.bf16.mxu1 %v2446_v0 }
 0x6bc   : > { %6158 = vmatpush3.bf16.msra.mxu1 %v2446_v0 }
 0x6bd   : > { %6140 = vmatmul.mubr.msk.bf16.gmra.mxu0 %vm1049_vm0, %v2123_v13 }
 0x6be   : > { %6143 = vmatprep.mubr.msk.bf16.mxu0 %vm1049_vm0, %v2125_v55 }
 0x6c5   : > { %6144 = vmatmul.mubr.msk.bf16.gmra.mxu0 %vm1049_vm0, %v2127_v52 }
 0x718   : > { %v8340_v9 = vpop.f32.mrf.mxu0 }
 0x719   : > { %10015 = vst [vmem:[#allocation27_spill] sm:$0xff] %v8340_v9 }
 0x71a   : > { %v8342_v51 = vpop.f32.mrf.mxu0 }
 0x71b   : > { %10016 = vst [vmem:[#allocation28_spill] sm:$0xff] %v8342_v51 }
 0x71c   : > { %v8344_v29 = vpop.f32.mrf.mxu0 }
 0x71d   : > { %10017 = vst [vmem:[#allocation29_spill] sm:$0xff] %v8344_v29 }
 0x71e   : > { %v8346_v35 = vpop.f32.mrf.mxu0 }
 0x71f   : > { %10018 = vst [vmem:[#allocation35_spill] sm:$0xff] %v8346_v35 }
 0x750   : > { %v8348_v58 = vpop.f32.mrf.mxu0 }
 0x751   : > { %10019 = vst [vmem:[#allocation36_spill] sm:$0xff] %v8348_v58 }
 0x752   : > { %v8350_v62 = vpop.f32.mrf.mxu0 }
 0x753   : > { %10020 = vst [vmem:[#allocation37_spill] sm:$0xff] %v8350_v62 }
 0x754   : > { %v8352_v40 = vpop.f32.mrf.mxu0 }
 0x755   : > { %10021 = vst [vmem:[#allocation38_spill] sm:$0xff] %v8352_v40  ;;  %v2442_v40 = vpop.permute.xlu1 %2441 }
 0x756   : > { %v8354_v14 = vpop.f32.mrf.mxu0 }
 0x757   : > { %10022 = vst [vmem:[#allocation39_spill] sm:$0xff] %v8354_v14 }
 0x75d   : > { %v8356_v19 = vpop.f32.mrf.mxu0 }
 0x75e   : > { %10023 = vst [vmem:[#allocation40_spill] sm:$0xff] %v8356_v19 }
 0x75f   : > { %v8358_v2 = vpop.f32.mrf.mxu0 }
 0x760   : > { %10024 = vst [vmem:[#allocation41_spill] sm:$0xff] %v8358_v2 }
 0x761   : > { %v8360_v38 = vpop.f32.mrf.mxu0 }
 0x762   : > { %10025 = vst [vmem:[#allocation42_spill] sm:$0xff] %v8360_v38 }
 0x763   : > { %v8362_v17 = vpop.f32.mrf.mxu0 }
 0x764   : > { %10026 = vst [vmem:[#allocation43_spill] sm:$0xff] %v8362_v17  ;;  %v10037_v17 = vld [vmem:[#allocation24_spill] sm:$0xff] }
 0x765   : > { %v8364_v7 = vpop.f32.mrf.mxu0 }
 0x766   : > { %10027 = vst [vmem:[#allocation44_spill] sm:$0xff] %v8364_v7 }
 0x767   : > { %v8366_v44 = vpop.f32.mrf.mxu0 }
 0x768   : > { %10028 = vst [vmem:[#allocation45_spill] sm:$0xff] %v8366_v44 }
 0x769   : > { %v8368_v25 = vpop.f32.mrf.mxu0 }
 0x76a   : > { %10029 = vst [vmem:[#allocation46_spill] sm:$0xff] %v8368_v25 }
 0x76b   : > { %v8370_v45 = vpop.f32.mrf.mxu0 }
 0x76c   : > { %10030 = vst [vmem:[#allocation47_spill] sm:$0xff] %v8370_v45 }
 0x76d   : > { %v6133_v50 = vpop.f32.mrf.mxu0 }
 0x76e   : > { %v2235_v16 = vadd.f32 %v6133_v50, %v7825_v20 }
 0x76f   : > { %v2226_v13 = vpop.f32.mrf.mxu0 }
 0x770   : > { %2293 = vmax.xlane.f32.xlu0 %v2235_v16  ;;  %v2227_v18 = vadd.f32 %v7829_v27, %v2226_v13 }
 0x771   : > { %v6134_v24 = vpop.f32.mrf.mxu0 }
 0x772   : > { %v2238_v52 = vadd.f32 %v6134_v24, %v7837_v26 }
 0x773   : > { %v2229_v8 = vpop.f32.mrf.mxu0 }
 0x774   : > { %v8375_v37 = vadd.f32 %v7845_v47, %v2229_v8  ;;  %2289 = vmax.xlane.f32.xlu0 %v2227_v18 }
 0x775   : > { %v6137_v12 = vpop.f32.mrf.mxu0 }
 0x776   : > { %2291 = vmax.xlane.f32.xlu1 %v8375_v37  ;;  %v2251_v8 = vadd.f32 %v6137_v12, %v10003_v48 }
 0x777   : > { %v2242_v55 = vpop.f32.mrf.mxu0 }
 0x778   : > { %2295 = vmax.xlane.f32.xlu0 %v2238_v52 }
 0x779   : > { %v6138_v33 = vpop.f32.mrf.mxu0 }
 0x77a   : > { %v8380_v49 = vadd.f32 %v6138_v33, %v7866_v1  ;;  %v8403_v33 = vadd.f32 %v10004_v61, %v2242_v55  ;;  %v10033_v55 = vld [vmem:[#allocation32_spill] sm:$0xff] }
 0x77b   : > { %v2245_v59 = vpop.f32.mrf.mxu0 }
 0x77c   : > { %2303 = vmax.xlane.f32.xlu1 %v8380_v49  ;;  %v8384_v46 = vadd.f32 %v7883_v5, %v2245_v59 }
 0x77d   : > { %v6141_v22 = vpop.f32.mrf.mxu0 }
 0x77e   : > { %v8407_v59 = vadd.f32 %v6141_v22, %v10005_v60  ;;  %v10034_v22 = vld [vmem:[#allocation33_spill] sm:$0xff] }
 0x77f   : > { %v2258_v15 = vpop.f32.mrf.mxu0 }
 0x780   : > { %2299 = vmax.xlane.f32.xlu1 %v8384_v46 }
 0x781   : > { %v6142_v0 = vpop.f32.mrf.mxu0 }
 0x782   : > { %v8388_v50 = vadd.f32 %v6142_v0, %v7901_v43 }
 0x783   : > { %v2261_v13 = vpop.f32.mrf.mxu0 }
 0x784   : > { %2311 = vmax.xlane.f32.xlu1 %v8388_v50  ;;  %v8392_v24 = vadd.f32 %v7918_v30, %v2261_v13  ;;  %v10031_v13 = vld [vmem:[#allocation30_spill] sm:$0xff] }
 0x785   : > { %v6145_v0 = vpop.f32.mrf.mxu0  ;;  %v8411_v25 = vadd.f32 %v10031_v13, %v2258_v15  ;;  %v10035_v15 = vld [vmem:[#allocation34_spill] sm:$0xff] }
 0x788   : > { %2307 = vmax.xlane.f32.xlu1 %v8392_v24 }
 0x78e   : > { %2443 = vrot.lane.b32.xlu0 %v7721_v41, %s7280_s20 }
 0x799   : > { %2703 = vrot.lane.b32.xlu1 %v7684_v4, %s7281_s19  ;;  %v2274_v4 = vpop.f32.mrf.mxu0 }
 0x79a   : > { %v8419_v45 = vadd.f32 %v10033_v55, %v2274_v4  ;;  %v10038_v4 = vld [vmem:[#allocation25_spill] sm:$0xff] }
 0x79b   : > { %v6146_v7 = vpop.f32.mrf.mxu0 }
 0x79c   : > { %v8422_v44 = vadd.f32 %v6146_v7, %v10034_v22 }
 0x79d   : > { %2699 = vrot.lane.b32.xlu1 %v7749_v39, %s7281_s19  ;;  %v10032_v39 = vld [vmem:[#allocation31_spill] sm:$0xff]  ;;  %v2277_v38 = vpop.f32.mrf.mxu0 }
 0x79e   : > { %v8415_v12 = vadd.f32 %v6145_v0, %v10032_v39  ;;  %v8427_v19 = vadd.f32 %v10035_v15, %v2277_v38  ;;  %v10036_v0 = vld [vmem:[#allocation21_spill] sm:$0xff] }
 0x7ad   : > { %2301 = vmax.xlane.f32.xlu0 %v2251_v8 }
 0x7b1   : > { %2297 = vmax.xlane.f32.xlu0 %v8403_v33 }
 0x7b5   : > { %2309 = vmax.xlane.f32.xlu0 %v8407_v59 }
 0x7b9   : > { %2305 = vmax.xlane.f32.xlu0 %v8411_v25 }
 0x7bd   : > { %2317 = vmax.xlane.f32.xlu0 %v8415_v12 }
 0x7c1   : > { %2319 = vmax.xlane.f32.xlu1 %v8422_v44  ;;  %2313 = vmax.xlane.f32.xlu0 %v8419_v45 }
 0x7c5   : > { %2315 = vmax.xlane.f32.xlu1 %v8427_v19 }
 0x7d7   : > { %2705 = vrot.lane.b32.xlu0 %v10036_v0, %s7281_s19 }
 0x7db   : > { %2701 = vrot.lane.b32.xlu0 %v10037_v17, %s7281_s19 }
 0x7df   : > { %2697 = vrot.lane.b32.xlu0 %v10038_v4, %s7281_s19 }
 0x7f9   : > { %v2294_v7 = vpop.xlane.xlu0 %2293 }
 0x7fa   : > { %v2323_v2 = vsub.f32 %v2235_v16, %v2294_v7 }
 0x7fc   : > { %v2341_v58 = vmul.f32 1.442695, %v2323_v2 }
 0x7fd   : > { %v2290_v14 = vpop.xlane.xlu0 %2289 }
 0x7fe   : > { %6691 = vpow2.f32 %v2341_v58  ;;  %v2321_v62 = vsub.f32 %v2227_v18, %v2290_v14 }
 0x7ff   : > { %v2292_v38 = vpop.xlane.xlu1 %2291 }
 0x800   : > { %v2337_v29 = vmul.f32 1.442695, %v2321_v62  ;;  %v2322_v9 = vsub.f32 %v8375_v37, %v2292_v38 }
 0x801   : > { %v2296_v51 = vpop.xlane.xlu0 %2295 }
 0x802   : > { %6693 = vpow2.f32 %v2337_v29  ;;  %v2324_v0 = vsub.f32 %v2238_v52, %v2296_v51  ;;  %v2339_v17 = vmul.f32 1.442695, %v2322_v9  ;;  %v10039_v9 = vld [vmem:[#allocation26_spill] sm:$0xff] }
 0x804   : > { %v2343_v35 = vmul.f32 1.442695, %v2324_v0 }
 0x805   : > { %v2444_v41 = vpop.permute.xlu0 %2443 }
 0x806   : > { %6695 = vpow2.f32 %v2343_v35  ;;  %6159 = vmatprep.subr.bf16.mxu1 %v2444_v41 }
 0x807   : > { %6160 = vmatpush3.bf16.msra.mxu1 %v2444_v41  ;;  %6697 = vpow2.f32 %v2339_v17  ;;  %v2304_v41 = vpop.xlane.xlu1 %2303 }
 0x808   : > { %6161 = vmatprep.subr.bf16.mxu1 %v2442_v40  ;;  %v2328_v37 = vsub.f32 %v8380_v49, %v2304_v41 }
 0x80a   : > { %v2351_v17 = vmul.f32 1.442695, %v2328_v37 }
 0x80b   : > { %v8437_v16 = vpop.eup %6691  ;;  %6162 = vmatpush3.bf16.msra.mxu1 %v2442_v40  ;;  %v2300_v35 = vpop.xlane.xlu1 %2299 }
 0x80c   : > { %2373 = vadd.xlane.f32.xlu1 %v8437_v16  ;;  %v2326_v40 = vsub.f32 %v8384_v46, %v2300_v35 }
 0x80e   : > { %v2347_v52 = vmul.f32 1.442695, %v2326_v40 }
 0x80f   : > { %v8440_v58 = vpop.eup %6693  ;;  %v2312_v62 = vpop.xlane.xlu1 %2311 }
 0x810   : > { %2369 = vadd.xlane.f32.xlu1 %v8440_v58 }
 0x813   : > { %v8443_v29 = vpop.eup %6695  ;;  %v2308_v4 = vpop.xlane.xlu1 %2307 }
 0x814   : > { %2375 = vadd.xlane.f32.xlu1 %v8443_v29  ;;  %v8446_v51 = vpop.eup %6697 }
 0x817   : > { %v8455_v15 = vpop.permute.xlu1 %2703 }
 0x818   : > { %2371 = vadd.xlane.f32.xlu1 %v8446_v51 }
 0x829   : > { %2695 = vrot.lane.b32.xlu1 %v10039_v9, %s7281_s19 }
 0x836   : > { %v2302_v14 = vpop.xlane.xlu0 %2301 }
 0x837   : > { %v2327_v2 = vsub.f32 %v2251_v8, %v2302_v14  ;;  %v2332_v8 = vsub.f32 %v8388_v50, %v2312_v62 }
 0x839   : > { %v2349_v18 = vmul.f32 1.442695, %v2327_v2  ;;  %v2359_v40 = vmul.f32 1.442695, %v2332_v8  ;;  %v2330_v2 = vsub.f32 %v8392_v24, %v2308_v4 }
 0x83a   : > { %v2298_v7 = vpop.xlane.xlu0 %2297 }
 0x83b   : > { %6699 = vpow2.f32 %v2349_v18  ;;  %v2325_v38 = vsub.f32 %v8403_v33, %v2298_v7  ;;  %v8459_v33 = vpop.permute.xlu1 %2699 }
 0x83c   : > { %6701 = vpow2.f32 %v2347_v52 }
 0x83d   : > { %v2345_v0 = vmul.f32 1.442695, %v2325_v38 }
 0x83e   : > { %v2310_v54 = vpop.xlane.xlu0 %2309 }
 0x83f   : > { %6703 = vpow2.f32 %v2345_v0  ;;  %v2331_v9 = vsub.f32 %v8407_v59, %v2310_v54 }
 0x840   : > { %6705 = vpow2.f32 %v2351_v17 }
 0x841   : > { %v2357_v46 = vmul.f32 1.442695, %v2331_v9 }
 0x842   : > { %v2306_v49 = vpop.xlane.xlu0 %2305 }
 0x843   : > { %6707 = vpow2.f32 %v2357_v46  ;;  %v2329_v41 = vsub.f32 %v8411_v25, %v2306_v49  ;;  %v2355_v25 = vmul.f32 1.442695, %v2330_v2  ;;  %v2750_v2 = vsel %vm1049_vm0, %v8455_v15, 0 }
 0x845   : > { %v2353_v35 = vmul.f32 1.442695, %v2329_v41 }
 0x846   : > { %v2318_v14 = vpop.xlane.xlu0 %2317 }
 0x847   : > { %6709 = vpow2.f32 %v2353_v35  ;;  %v2335_v54 = vsub.f32 %v8415_v12, %v2318_v14 }
 0x848   : > { %v8463_v59 = vpop.eup %6699  ;;  %6711 = vpow2.f32 %v2359_v40 }
 0x849   : > { %v2365_v18 = vmul.f32 1.442695, %v2335_v54  ;;  %2381 = vadd.xlane.f32.xlu0 %v8463_v59  ;;  %v8466_v37 = vpop.eup %6701 }
 0x84a   : > { %v2320_v50 = vpop.xlane.xlu1 %2319  ;;  %v2314_v62 = vpop.xlane.xlu0 %2313 }
 0x84b   : > { %6713 = vpow2.f32 %v2365_v18  ;;  %v2333_v52 = vsub.f32 %v8419_v45, %v2314_v62  ;;  %v2336_v24 = vsub.f32 %v8422_v44, %v2320_v50 }
 0x84c   : > { %v8469_v7 = vpop.eup %6703  ;;  %6715 = vpow2.f32 %v2355_v25 }
 0x84d   : > { %v2361_v4 = vmul.f32 1.442695, %v2333_v52  ;;  %2379 = vadd.xlane.f32.xlu1 %v8466_v37  ;;  %2377 = vadd.xlane.f32.xlu0 %v8469_v7  ;;  %v8474_v0 = vpop.eup %6705  ;;  %v2367_v45 = vmul.f32 1.442695, %v2336_v24 }
 0x84e   : > { %v2316_v12 = vpop.xlane.xlu1 %2315  ;;  %v2706_v38 = vpop.permute.xlu0 %2705 }
 0x84f   : > { %v2334_v17 = vsub.f32 %v8427_v19, %v2316_v12  ;;  %6315 = vmatprep.subr.msk.bf16.mxu1 %vm1049_vm0, %v2706_v38  ;;  %6717 = vpow2.f32 %v2361_v4  ;;  %v2753_v14 = vsel %vm1049_vm0, %v2706_v38, 0 }
 0x850   : > { %v8478_v9 = vpop.eup %6707 }
 0x851   : > { %v2363_v46 = vmul.f32 1.442695, %v2334_v17  ;;  %2383 = vadd.xlane.f32.xlu0 %v8474_v0  ;;  %2389 = vadd.xlane.f32.xlu1 %v8478_v9 }
 0x853   : > { %6719 = vpow2.f32 %v2363_v46 }
 0x854   : > { %v8482_v44 = vpop.eup %6709  ;;  %6721 = vpow2.f32 %v2367_v45 }
 0x855   : > { %2385 = vadd.xlane.f32.xlu1 %v8482_v44  ;;  %v8485_v8 = vpop.eup %6711 }
 0x858   : > { %v8487_v19 = vpop.eup %6713 }
 0x859   : > { %2391 = vadd.xlane.f32.xlu1 %v8485_v8  ;;  %2397 = vadd.xlane.f32.xlu0 %v8487_v19  ;;  %v8491_v49 = vpop.eup %6715 }
 0x85c   : > { %v8493_v41 = vpop.eup %6717 }
 0x85d   : > { %2387 = vadd.xlane.f32.xlu1 %v8491_v49  ;;  %2393 = vadd.xlane.f32.xlu0 %v8493_v41 }
 0x860   : > { %v8497_v35 = vpop.eup %6719 }
 0x861   : > { %v8499_v40 = vpop.eup %6721  ;;  %2395 = vadd.xlane.f32.xlu1 %v8497_v35 }
 0x862   : > { %2399 = vadd.xlane.f32.xlu0 %v8499_v40 }
 0x872   : > { %2691 = vrot.lane.b32.xlu1 %v7789_v11, %s7281_s19 }
 0x876   : > { %2677 = vrot.lane.b32.xlu1 %v7596_v10, %s7281_s19 }
 0x878   : > { %2693 = vrot.lane.b32.xlu0 %v7779_v28, %s7281_s19 }
 0x87a   : > { %2681 = vrot.lane.b32.xlu1 %v7624_v36, %s7281_s19 }
 0x87c   : > { %2675 = vrot.lane.b32.xlu0 %v7584_v63, %s7281_s19 }
 0x87e   : > { %2685 = vrot.lane.b32.xlu1 %v7655_v32, %s7281_s19 }
 0x880   : > { %2679 = vrot.lane.b32.xlu0 %v7612_v23, %s7281_s19 }
 0x882   : > { %2689 = vrot.lane.b32.xlu1 %v7708_v53, %s7281_s19 }
 0x884   : > { %2683 = vrot.lane.b32.xlu0 %v7638_v57, %s7281_s19 }
 0x886   : > { %3016 = vrot.lane.b32.xlu1 %v7658_v34, %s7281_s19 }
 0x888   : > { %2687 = vrot.lane.b32.xlu0 %v7682_v3, %s7281_s19 }
 0x88c   : > { %3018 = vrot.lane.b32.xlu0 %v7651_v21, %s7281_s19 }
 0x890   : > { %3014 = vrot.lane.b32.xlu0 %v7664_v42, %s7281_s19 }
 0x894   : > { %3012 = vrot.lane.b32.xlu0 %v7676_v56, %s7281_s19 }
 0x895   : > { %v2374_v63 = vpop.xlane.xlu1 %2373 }
 0x899   : > { %v2370_v10 = vpop.xlane.xlu1 %2369 }
 0x89d   : > { %v2376_v23 = vpop.xlane.xlu1 %2375 }
 0x89e   : > { %6723 = vrcp.f32 %v2376_v23 }
 0x89f   : > { %6725 = vrcp.f32 %v2370_v10 }
 0x8a0   : > { %6727 = vrcp.f32 %v2374_v63 }
 0x8a1   : > { %v2372_v36 = vpop.xlane.xlu1 %2371 }
 0x8a2   : > { %6729 = vrcp.f32 %v2372_v36 }
 0x8a5   : > { %v2696_v54 = vpop.permute.xlu1 %2695 }
 0x8ab   : > { %v6724_v57 = vpop.eup %6723 }
 0x8ac   : > { %v6726_v32 = vpop.eup %6725  ;;  %v2420_v21 = vmul.f32 %v6724_v57, %v8443_v29  ;;  %v2702_v29 = vpop.permute.xlu0 %2701 }
 0x8ad   : > { %v6728_v34 = vpop.eup %6727  ;;  %v2417_v53 = vmul.f32 %v6726_v32, %v8440_v58  ;;  %v2747_v58 = vsel %vm1049_vm0, %v2702_v29, 0 }
 0x8ae   : > { %v2419_v56 = vmul.f32 %v6728_v34, %v8437_v16  ;;  %v2744_v16 = vsel %vm1049_vm0, %v8459_v33, 0 }
 0x8af   : > { %v6730_v3 = vpop.eup %6729 }
 0x8b0   : > { %v2418_v42 = vmul.f32 %v6730_v3, %v8446_v51  ;;  %v2434_v11 = vpack.c.bf16 %v2420_v21, %v2419_v56  ;;  %v2698_v51 = vpop.permute.xlu0 %2697 }
 0x8b2   : > { %v2433_v28 = vpack.c.bf16 %v2418_v42, %v2417_v53 }
 0x8b4   : > { %6163 = vmatprep.mubr.bf16.mxu1 %v2433_v28 }
 0x8b5   : > { %6164 = vmatmul.mubr.bf16.vlgmr.msra.gmra.mxu1 %v2434_v11 }
 0x8b6   : > { %6180 = vmatpush3.bf16.xpose.msra.mxu1 %v2753_v14 }
 0x8b7   : > { %6316 = vmatprep.subr.msk.bf16.mxu1 %vm1049_vm0, %v8455_v15  ;;  %v2741_v15 = vsel %vm1049_vm0, %v2698_v51, 0 }
 0x8be   : > { %6182 = vmatpush3.bf16.xpose.msra.mxu1 %v2750_v2 }
 0x8bf   : > { %6317 = vmatprep.subr.msk.bf16.mxu1 %vm1049_vm0, %v2702_v29 }
 0x8c6   : > { %6184 = vmatpush3.bf16.xpose.msra.mxu1 %v2747_v58 }
 0x8c7   : > { %6318 = vmatprep.subr.msk.bf16.mxu1 %vm1049_vm0, %v8459_v33  ;;  %v2738_v33 = vsel %vm1049_vm0, %v2696_v54, 0 }
 0x8ce   : > { %6186 = vmatpush3.bf16.xpose.msra.mxu1 %v2744_v16 }
 0x8cf   : > { %6319 = vmatprep.subr.msk.bf16.mxu1 %vm1049_vm0, %v2698_v51 }
 0x8d2   : > { %v2382_v18 = vpop.xlane.xlu0 %2381 }
 0x8d6   : > { %6188 = vmatpush3.bf16.xpose.msra.mxu1 %v2741_v15  ;;  %v2380_v50 = vpop.xlane.xlu1 %2379  ;;  %v2378_v62 = vpop.xlane.xlu0 %2377 }
 0x8d7   : > { %6731 = vrcp.f32 %v2380_v50  ;;  %6320 = vmatprep.subr.msk.bf16.mxu1 %vm1049_vm0, %v2696_v54 }
 0x8d8   : > { %6733 = vrcp.f32 %v2378_v62 }
 0x8d9   : > { %6735 = vrcp.f32 %v2382_v18 }
 0x8da   : > { %v2390_v25 = vpop.xlane.xlu1 %2389  ;;  %v2384_v52 = vpop.xlane.xlu0 %2383 }
 0x8db   : > { %6737 = vrcp.f32 %v2384_v52 }
 0x8de   : > { %6190 = vmatpush3.bf16.xpose.msra.mxu1 %v2738_v33  ;;  %v2386_v24 = vpop.xlane.xlu1 %2385 }
 0x8e2   : > { %v2392_v4 = vpop.xlane.xlu1 %2391  ;;  %v2398_v12 = vpop.xlane.xlu0 %2397 }
 0x8e3   : > { %6739 = vrcp.f32 %v2392_v4 }
 0x8e4   : > { %v6732_v38 = vpop.eup %6731  ;;  %6741 = vrcp.f32 %v2386_v24 }
 0x8e5   : > { %v6734_v17 = vpop.eup %6733  ;;  %v2422_v45 = vmul.f32 %v6732_v38, %v8466_v37  ;;  %6743 = vrcp.f32 %v2390_v25 }
 0x8e6   : > { %v2388_v46 = vpop.xlane.xlu1 %2387  ;;  %v2421_v63 = vmul.f32 %v6734_v17, %v8469_v7  ;;  %v6736_v10 = vpop.eup %6735 }
 0x8e7   : > { %6745 = vrcp.f32 %v2388_v46  ;;  %v2394_v23 = vpop.xlane.xlu0 %2393  ;;  %v2423_v34 = vmul.f32 %v6736_v10, %v8463_v59 }
 0x8e8   : > { %v2435_v36 = vpack.c.bf16 %v2422_v45, %v2421_v63  ;;  %v6738_v57 = vpop.eup %6737  ;;  %6747 = vrcp.f32 %v2394_v23 }
 0x8e9   : > { %v2424_v3 = vmul.f32 %v6738_v57, %v8474_v0 }
 0x8ea   : > { %6167 = vmatprep.mubr.bf16.mxu1 %v2435_v36  ;;  %v2396_v32 = vpop.xlane.xlu1 %2395 }
 0x8eb   : > { %6749 = vrcp.f32 %v2396_v32  ;;  %v2400_v21 = vpop.xlane.xlu0 %2399  ;;  %v2436_v37 = vpack.c.bf16 %v2424_v3, %v2423_v34 }
 0x8ec   : > { %6751 = vrcp.f32 %v2400_v21 }
 0x8ed   : > { %6753 = vrcp.f32 %v2398_v12  ;;  %6168 = vmatmul.mubr.bf16.gmra.mxu1 %v2436_v37 }
 0x8ee   : > { %v2692_v53 = vpop.permute.xlu1 %2691 }
 0x8ef   : > { %v2694_v7 = vpop.permute.xlu0 %2693  ;;  %v2732_v62 = vsel %vm1049_vm0, %v2692_v53, 0 }
 0x8f0   : > { %6321 = vmatprep.subr.msk.bf16.mxu1 %vm1049_vm0, %v2694_v7  ;;  %v2735_v42 = vsel %vm1049_vm0, %v2694_v7, 0  ;;  %v6740_v56 = vpop.eup %6739 }
 0x8f1   : > { %6192 = vmatpush3.bf16.xpose.msra.mxu1 %v2735_v42  ;;  %v6742_v28 = vpop.eup %6741  ;;  %v2428_v2 = vmul.f32 %v6740_v56, %v8485_v8 }
 0x8f2   : > { %6322 = vmatprep.subr.msk.bf16.mxu1 %vm1049_vm0, %v2692_v53  ;;  %v2678_v59 = vpop.permute.xlu1 %2677  ;;  %v6744_v11 = vpop.eup %6743  ;;  %v2425_v29 = vmul.f32 %v6742_v28, %v8482_v44 }
 0x8f3   : > { %v2676_v0 = vpop.permute.xlu0 %2675  ;;  %v2427_v54 = vmul.f32 %v6744_v11, %v8478_v9 }
 0x8f4   : > { %v6746_v14 = vpop.eup %6745 }
 0x8f5   : > { %v2426_v58 = vmul.f32 %v6746_v14, %v8491_v49  ;;  %v6748_v16 = vpop.eup %6747  ;;  %v2438_v25 = vpack.c.bf16 %v2428_v2, %v2427_v54 }
 0x8f6   : > { %v2682_v51 = vpop.permute.xlu1 %2681  ;;  %v2429_v33 = vmul.f32 %v6748_v16, %v8493_v41 }
 0x8f7   : > { %v2680_v18 = vpop.permute.xlu0 %2679  ;;  %v2437_v15 = vpack.c.bf16 %v2426_v58, %v2425_v29 }
 0x8f8   : > { %v6750_v50 = vpop.eup %6749 }
 0x8f9   : > { %v6752_v52 = vpop.eup %6751  ;;  %6194 = vmatpush3.bf16.xpose.msra.mxu1 %v2732_v62  ;;  %6171 = vmatprep.mubr.bf16.mxu1 %v2437_v15  ;;  %v2430_v8 = vmul.f32 %v6750_v50, %v8497_v35 }
 0x8fa   : > { %v2686_v44 = vpop.permute.xlu1 %2685  ;;  %6172 = vmatmul.mubr.bf16.gmra.mxu1 %v2438_v25  ;;  %v6754_v49 = vpop.eup %6753  ;;  %v2432_v9 = vmul.f32 %v6752_v52, %v8499_v40 }
 0x8fb   : > { %v2684_v24 = vpop.permute.xlu0 %2683  ;;  %v2439_v4 = vpack.c.bf16 %v2430_v8, %v2429_v33  ;;  %v2431_v12 = vmul.f32 %v6754_v49, %v8487_v19  ;;  %v10040_v19 = vmov 0   ;;  %v10041_v49 = vld [vmem:[#allocation34_spill] sm:$0xff] }
 0x8fd   : > { %6175 = vmatprep.mubr.bf16.mxu1 %v2439_v4  ;;  %v2440_v45 = vpack.c.bf16 %v2432_v9, %v2431_v12 }
 0x8fe   : > { %v2690_v38 = vpop.permute.xlu1 %2689 }
 0x8ff   : > { %v2688_v17 = vpop.permute.xlu0 %2687 }
 0x902   : > { %6176 = vmatmul.mubr.bf16.gmra.mxu1 %v2440_v45  ;;  %v3017_v41 = vpop.permute.xlu1 %3016 }
 0x903   : > { %v3019_v46 = vpop.permute.xlu0 %3018  ;;  %6195 = vmatprep.mubr.msk.bf16.mxu1 %vm1049_vm0, %v2676_v0 }
 0x904   : > { %6211 = vmatprep.subr.bf16.mxu0 %v3019_v46 }
 0x905   : > { %6212 = vmatpush3.bf16.msra.mxu0 %v3019_v46 }
 0x906   : > { %6213 = vmatprep.subr.bf16.mxu0 %v3017_v41 }
 0x907   : > { %v3015_v35 = vpop.permute.xlu0 %3014 }
 0x909   : > { %6214 = vmatpush3.bf16.msra.mxu0 %v3017_v41 }
 0x90a   : > { %6215 = vmatprep.subr.bf16.mxu0 %v3015_v35  ;;  %6196 = vmatmul.mubr.msk.bf16.vlgmr.msra.gmra.mxu1 %vm1049_vm0, %v2678_v59 }
 0x90b   : > { %6199 = vmatprep.mubr.msk.bf16.mxu1 %vm1049_vm0, %v2680_v18  ;;  %v3013_v40 = vpop.permute.xlu0 %3012 }
 0x90d   : > { %6216 = vmatpush3.bf16.msra.mxu0 %v3015_v35 }
 0x90e   : > { %6217 = vmatprep.subr.bf16.mxu0 %v3013_v40 }
 0x911   : > { %6218 = vmatpush3.bf16.msra.mxu0 %v3013_v40 }
 0x912   : > { %6200 = vmatmul.mubr.msk.bf16.gmra.mxu1 %vm1049_vm0, %v2682_v51 }
 0x913   : > { %6203 = vmatprep.mubr.msk.bf16.mxu1 %vm1049_vm0, %v2684_v24 }
 0x91a   : > { %6204 = vmatmul.mubr.msk.bf16.gmra.mxu1 %vm1049_vm0, %v2686_v44 }
 0x91b   : > { %6207 = vmatprep.mubr.msk.bf16.mxu1 %vm1049_vm0, %v2688_v17 }
 0x922   : > { %6208 = vmatmul.mubr.msk.bf16.gmra.mxu1 %vm1049_vm0, %v2690_v38  ;;  %vm2095_vm0 = vcmask 519424  }
 0x923   : > { %3963 = vmatprep.mubr.bf16.mxu1 %v10040_v19 }
 0x975   : > { %v8575_v63 = vpop.f32.mrf.mxu1 }
 0x977   : > { %v8577_v10 = vpop.f32.mrf.mxu1 }
 0x979   : > { %v8579_v23 = vpop.f32.mrf.mxu1 }
 0x97b   : > { %v8581_v36 = vpop.f32.mrf.mxu1 }
 0x9ad   : > { %v8583_v57 = vpop.f32.mrf.mxu1 }
 0x9af   : > { %v8585_v32 = vpop.f32.mrf.mxu1 }
 0x9b1   : > { %v8587_v34 = vpop.f32.mrf.mxu1 }
 0x9b3   : > { %v8589_v3 = vpop.f32.mrf.mxu1 }
 0x9ba   : > { %v8591_v21 = vpop.f32.mrf.mxu1 }
 0x9bc   : > { %v8593_v37 = vpop.f32.mrf.mxu1 }
 0x9be   : > { %v8595_v53 = vpop.f32.mrf.mxu1 }
 0x9c0   : > { %v8597_v7 = vpop.f32.mrf.mxu1 }
 0x9c2   : > { %v8599_v42 = vpop.f32.mrf.mxu1 }
 0x9c4   : > { %v8601_v56 = vpop.f32.mrf.mxu1 }
 0x9c6   : > { %v8603_v28 = vpop.f32.mrf.mxu1 }
 0x9c8   : > { %v8605_v59 = vpop.f32.mrf.mxu1 }
 0x9ca   : > { %v6197_v11 = vpop.f32.mrf.mxu1 }
 0x9cb   : > { %v2798_v0 = vadd.f32 %v6197_v11, %v7825_v20 }
 0x9cc   : > { %v2789_v14 = vpop.f32.mrf.mxu1 }
 0x9cd   : > { %2856 = vmax.xlane.f32.xlu0 %v2798_v0  ;;  %v2790_v29 = vadd.f32 %v7829_v27, %v2789_v14 }
 0x9ce   : > { %v6198_v2 = vpop.f32.mrf.mxu1 }
 0x9cf   : > { %v2801_v54 = vadd.f32 %v6198_v2, %v7837_v26 }
 0x9d0   : > { %v2792_v58 = vpop.f32.mrf.mxu1 }
 0x9d1   : > { %v2793_v16 = vadd.f32 %v7845_v47, %v2792_v58  ;;  %2852 = vmax.xlane.f32.xlu0 %v2790_v29 }
 0x9d2   : > { %v6201_v51 = vpop.f32.mrf.mxu1 }
 0x9d3   : > { %2854 = vmax.xlane.f32.xlu1 %v2793_v16  ;;  %v2814_v50 = vadd.f32 %v6201_v51, %v10003_v48 }
 0x9d4   : > { %v2805_v18 = vpop.f32.mrf.mxu1 }
 0x9d5   : > { %2858 = vmax.xlane.f32.xlu0 %v2801_v54  ;;  %v2806_v27 = vadd.f32 %v10004_v61, %v2805_v18 }
 0x9d6   : > { %v6202_v15 = vpop.f32.mrf.mxu1 }
 0x9d7   : > { %v2817_v20 = vadd.f32 %v6202_v15, %v7866_v1 }
 0x9d8   : > { %v2808_v62 = vpop.f32.mrf.mxu1 }
 0x9d9   : > { %2864 = vmax.xlane.f32.xlu0 %v2814_v50  ;;  %2866 = vmax.xlane.f32.xlu1 %v2817_v20  ;;  %v2809_v47 = vadd.f32 %v7883_v5, %v2808_v62 }
 0x9da   : > { %v6205_v25 = vpop.f32.mrf.mxu1 }
 0x9db   : > { %v8616_v33 = vadd.f32 %v6205_v25, %v10005_v60 }
 0x9dc   : > { %v2821_v52 = vpop.f32.mrf.mxu1 }
 0x9dd   : > { %2862 = vmax.xlane.f32.xlu1 %v2809_v47  ;;  %2860 = vmax.xlane.f32.xlu0 %v2806_v27  ;;  %v8624_v1 = vadd.f32 %v10031_v13, %v2821_v52 }
 0x9de   : > { %v6206_v26 = vpop.f32.mrf.mxu1 }
 0x9df   : > { %v8619_v8 = vadd.f32 %v6206_v26, %v7901_v43 }
 0x9e0   : > { %v2824_v48 = vpop.f32.mrf.mxu1 }
 0x9e1   : > { %2872 = vmax.xlane.f32.xlu0 %v8616_v33  ;;  %2874 = vmax.xlane.f32.xlu1 %v8619_v8  ;;  %v8627_v5 = vadd.f32 %v7918_v30, %v2824_v48 }
 0x9e2   : > { %v6209_v61 = vpop.f32.mrf.mxu1 }
 0x9e3   : > { %v8632_v60 = vadd.f32 %v6209_v61, %v10032_v39 }
 0x9e4   : > { %v2837_v43 = vpop.f32.mrf.mxu1 }
 0x9e5   : > { %2870 = vmax.xlane.f32.xlu1 %v8627_v5  ;;  %2868 = vmax.xlane.f32.xlu0 %v8624_v1  ;;  %v8636_v44 = vadd.f32 %v10033_v55, %v2837_v43 }
 0x9e6   : > { %v6210_v30 = vpop.f32.mrf.mxu1 }
 0x9e7   : > { %v8644_v13 = vadd.f32 %v6210_v30, %v10034_v22 }
 0x9e8   : > { %v2840_v39 = vpop.f32.mrf.mxu1 }
 0x9e9   : > { %2880 = vmax.xlane.f32.xlu0 %v8632_v60  ;;  %v8648_v24 = vadd.f32 %v10041_v49, %v2840_v39 }
 0x9ed   : > { %2876 = vmax.xlane.f32.xlu0 %v8636_v44 }
 0x9f6   : > { %3008 = vrot.lane.b32.xlu1 %v7706_v31, %s7281_s19 }
 0xa03   : > { %3010 = vrot.lane.b32.xlu0 %v7690_v6, %s7281_s19 }
 0xa1a   : > { %2882 = vmax.xlane.f32.xlu1 %v8644_v13 }
 0xa1e   : > { %2878 = vmax.xlane.f32.xlu1 %v8648_v24 }
 0xa56   : > { %v2857_v55 = vpop.xlane.xlu0 %2856 }
 0xa57   : > { %v2886_v4 = vsub.f32 %v2798_v0, %v2857_v55 }
 0xa59   : > { %v2904_v9 = vmul.f32 1.442695, %v2886_v4  ;;  %v10042_v4 = vld [vmem:[#allocation23_spill] sm:$0xff] }
 0xa5a   : > { %v2853_v12 = vpop.xlane.xlu0 %2852 }
 0xa5b   : > { %6755 = vpow2.f32 %v2904_v9  ;;  %v2884_v31 = vsub.f32 %v2790_v29, %v2853_v12  ;;  %v10043_v9 = vld [vmem:[#allocation22_spill] sm:$0xff] }
 0xa5c   : > { %v2855_v38 = vpop.xlane.xlu1 %2854 }
 0xa5d   : > { %v2900_v6 = vmul.f32 1.442695, %v2884_v31  ;;  %v2885_v22 = vsub.f32 %v2793_v16, %v2855_v38 }
 0xa5e   : > { %v2859_v17 = vpop.xlane.xlu0 %2858 }
 0xa5f   : > { %6757 = vpow2.f32 %v2900_v6  ;;  %v2887_v45 = vsub.f32 %v2801_v54, %v2859_v17  ;;  %v2902_v40 = vmul.f32 1.442695, %v2885_v22 }
 0xa61   : > { %v2906_v46 = vmul.f32 1.442695, %v2887_v45 }
 0xa62   : > { %v2867_v41 = vpop.xlane.xlu1 %2866  ;;  %v2865_v35 = vpop.xlane.xlu0 %2864 }
 0xa63   : > { %6759 = vpow2.f32 %v2906_v46  ;;  %v2891_v11 = vsub.f32 %v2817_v20, %v2867_v41  ;;  %v2890_v14 = vsub.f32 %v2814_v50, %v2865_v35 }
 0xa64   : > { %6761 = vpow2.f32 %v2902_v40 }
 0xa65   : > { %v2912_v2 = vmul.f32 1.442695, %v2890_v14  ;;  %v2914_v51 = vmul.f32 1.442695, %v2891_v11 }
 0xa66   : > { %v2863_v58 = vpop.xlane.xlu1 %2862  ;;  %v2861_v0 = vpop.xlane.xlu0 %2860 }
 0xa67   : > { %v2888_v18 = vsub.f32 %v2806_v27, %v2861_v0  ;;  %6763 = vpow2.f32 %v2912_v2  ;;  %v2889_v15 = vsub.f32 %v2809_v47, %v2863_v58 }
 0xa68   : > { %v8651_v29 = vpop.eup %6755  ;;  %6765 = vpow2.f32 %v2914_v51 }
 0xa69   : > { %v2908_v62 = vmul.f32 1.442695, %v2888_v18  ;;  %2936 = vadd.xlane.f32.xlu1 %v8651_v29  ;;  %v2910_v25 = vmul.f32 1.442695, %v2889_v15  ;;  %v10044_v15 = vld [vmem:[#allocation35_spill] sm:$0xff] }
 0xa6a   : > { %v2873_v16 = vpop.xlane.xlu0 %2872  ;;  %v2875_v27 = vpop.xlane.xlu1 %2874 }
 0xa6b   : > { %6767 = vpow2.f32 %v2908_v62  ;;  %v2895_v31 = vsub.f32 %v8619_v8, %v2875_v27  ;;  %v2894_v22 = vsub.f32 %v8616_v33, %v2873_v16  ;;  %v5619_v62 = vpack.c.bf16 %v10044_v15, %v10044_v15  ;;  %v10045_v16 = vld [vmem:[#allocation27_spill] sm:$0xff] }
 0xa6c   : > { %v8654_v54 = vpop.eup %6757  ;;  %6769 = vpow2.f32 %v2910_v25  ;;  %v5620_v25 = vpack.c.bf16 %v10045_v16, %v10045_v16 }
 0xa6d   : > { %2932 = vadd.xlane.f32.xlu1 %v8654_v54  ;;  %v2922_v17 = vmul.f32 1.442695, %v2895_v31  ;;  %v2920_v41 = vmul.f32 1.442695, %v2894_v22  ;;  %v10050_v31 = vld [vmem:[#allocation36_spill] sm:$0xff]  ;;  %v5640_v22 = vpack.c.bf16 %v8583_v57, %v8583_v57 }
 0xa6e   : > { %v2869_v50 = vpop.xlane.xlu0 %2868  ;;  %v2871_v48 = vpop.xlane.xlu1 %2870 }
 0xa6f   : > { %v2892_v12 = vsub.f32 %v8624_v1, %v2869_v50  ;;  %v2893_v38 = vsub.f32 %v8627_v5, %v2871_v48  ;;  %v10046_v50 = vld [vmem:[#allocation28_spill] sm:$0xff] }
 0xa70   : > { %v8657_v20 = vpop.eup %6759  ;;  %v5618_v27 = vpack.c.bf16 %v10046_v50, %v10046_v50 }
 0xa71   : > { %2938 = vadd.xlane.f32.xlu1 %v8657_v20  ;;  %v8660_v47 = vpop.eup %6761  ;;  %v2916_v6 = vmul.f32 1.442695, %v2892_v12  ;;  %v2918_v45 = vmul.f32 1.442695, %v2893_v38  ;;  %v10049_v12 = vld [vmem:[#allocation39_spill] sm:$0xff]  ;;  %v10051_v38 = vld [vmem:[#allocation38_spill] sm:$0xff] }
 0xa72   : > { %v2881_v52 = vpop.xlane.xlu0 %2880  ;;  %v3009_v49 = vpop.permute.xlu1 %3008 }
 0xa73   : > { %6771 = vpow2.f32 %v2916_v6  ;;  %v2898_v8 = vsub.f32 %v8632_v60, %v2881_v52  ;;  %v10047_v52 = vld [vmem:[#allocation29_spill] sm:$0xff]  ;;  %v5638_v6 = vpack.c.bf16 %v8585_v32, %v8585_v32 }
 0xa74   : > { %v8662_v26 = vpop.eup %6763  ;;  %6773 = vpow2.f32 %v2922_v17  ;;  %v5621_v48 = vpack.c.bf16 %v10047_v52, %v10047_v52  ;;  %v5639_v17 = vpack.c.bf16 %v8589_v3, %v8589_v3 }
 0xa75   : > { %2934 = vadd.xlane.f32.xlu1 %v8660_v47  ;;  %2944 = vadd.xlane.f32.xlu0 %v8662_v26  ;;  %v8666_v43 = vpop.eup %6765  ;;  %6775 = vpow2.f32 %v2918_v45  ;;  %v2928_v33 = vmul.f32 1.442695, %v2898_v8  ;;  %v5641_v45 = vpack.c.bf16 %v8587_v34, %v8587_v34 }
 0xa76   : > { %v2877_v61 = vpop.xlane.xlu0 %2876  ;;  %6777 = vpow2.f32 %v2920_v41  ;;  %v10053_v41 = vld [vmem:[#allocation43_spill] sm:$0xff] }
 0xa77   : > { %v2896_v35 = vsub.f32 %v8636_v44, %v2877_v61  ;;  %v5634_v61 = vpack.c.bf16 %v8577_v10, %v8577_v10  ;;  %v5627_v3 = vpack.c.bf16 %v10053_v41, %v10053_v41 }
 0xa78   : > { %v8668_v30 = vpop.eup %6767 }
 0xa79   : > { %2946 = vadd.xlane.f32.xlu0 %v8666_v43  ;;  %2940 = vadd.xlane.f32.xlu1 %v8668_v30  ;;  %v8672_v55 = vpop.eup %6769  ;;  %v2924_v5 = vmul.f32 1.442695, %v2896_v35 }
 0xa7a   : > { %v3011_v39 = vpop.permute.xlu0 %3010 }
 0xa7b   : > { %6219 = vmatprep.subr.bf16.mxu0 %v3011_v39 }
 0xa7c   : > { %6220 = vmatpush3.bf16.msra.mxu0 %v3011_v39  ;;  %v5635_v39 = vpack.c.bf16 %v8581_v36, %v8581_v36  ;;  %v5623_v36 = vpack.c.bf16 %v10049_v12, %v10049_v12 }
 0xa7d   : > { %6221 = vmatprep.subr.bf16.mxu0 %v3009_v49  ;;  %2942 = vadd.xlane.f32.xlu0 %v8672_v55 }
 0xa80   : > { %6222 = vmatpush3.bf16.msra.mxu0 %v3009_v49  ;;  %v8687_v58 = vpop.eup %6771  ;;  %v5636_v49 = vpack.c.bf16 %v8575_v63, %v8575_v63  ;;  %v5624_v63 = vpack.c.bf16 %v10050_v31, %v10050_v31 }
 0xa81   : > { %v8690_v44 = vpop.eup %6773 }
 0xa8a   : > { %3004 = vrot.lane.b32.xlu1 %v10042_v4, %s7281_s19  ;;  %v5637_v4 = vpack.c.bf16 %v8579_v23, %v8579_v23  ;;  %v5625_v23 = vpack.c.bf16 %v10051_v38, %v10051_v38 }
 0xa93   : > { %3006 = vrot.lane.b32.xlu0 %v10043_v9, %s7281_s19  ;;  %v10048_v9 = vld [vmem:[#allocation37_spill] sm:$0xff] }
 0xa94   : > { %v5622_v10 = vpack.c.bf16 %v10048_v9, %v10048_v9 }
 0xaa3   : > { %v2883_v46 = vpop.xlane.xlu1 %2882 }
 0xaa4   : > { %v2899_v11 = vsub.f32 %v8644_v13, %v2883_v46  ;;  %v8692_v13 = vpop.eup %6775  ;;  %v10052_v46 = vld [vmem:[#allocation41_spill] sm:$0xff] }
 0xaa5   : > { %v8696_v60 = vpop.eup %6777  ;;  %v5626_v32 = vpack.c.bf16 %v10052_v46, %v10052_v46 }
 0xaa6   : > { %v2930_v2 = vmul.f32 1.442695, %v2899_v11 }
 0xaa7   : > { %v2879_v40 = vpop.xlane.xlu1 %2878 }
 0xaa8   : > { %v2897_v1 = vsub.f32 %v8648_v24, %v2879_v40 }
 0xaaa   : > { %v2926_v14 = vmul.f32 1.442695, %v2897_v1 }
 0xaac   : > { %6779 = vpow2.f32 %v2926_v14 }
 0xaad   : > { %6781 = vpow2.f32 %v2924_v5 }
 0xaae   : > { %2948 = vadd.xlane.f32.xlu1 %v8687_v58  ;;  %6783 = vpow2.f32 %v2930_v2 }
 0xaaf   : > { %6785 = vpow2.f32 %v2928_v33 }
 0xab2   : > { %2950 = vadd.xlane.f32.xlu0 %v8692_v13  ;;  %2954 = vadd.xlane.f32.xlu1 %v8690_v44 }
 0xab6   : > { %2952 = vadd.xlane.f32.xlu0 %v8696_v60 }
 0xab9   : > { %v8699_v24 = vpop.eup %6779 }
 0xaba   : > { %v8701_v0 = vpop.eup %6781  ;;  %2958 = vadd.xlane.f32.xlu1 %v8699_v24 }
 0xabb   : > { %2956 = vadd.xlane.f32.xlu0 %v8701_v0  ;;  %v8705_v51 = vpop.eup %6783 }
 0xabc   : > { %v8707_v18 = vpop.eup %6785 }
 0xabe   : > { %2962 = vadd.xlane.f32.xlu1 %v8705_v51 }
 0xabf   : > { %2960 = vadd.xlane.f32.xlu0 %v8707_v18 }
 0xacf   : > { %2049 = vrot.lane.b32.xlu1 %v5619_v62, %s7281_s19 }
 0xad3   : > { %2051 = vrot.lane.b32.xlu1 %v5620_v25, %s7281_s19 }
 0xad5   : > { %2047 = vrot.lane.b32.xlu0 %v5618_v27, %s7281_s19 }
 0xad7   : > { %2053 = vrot.lane.b32.xlu1 %v5621_v48, %s7281_s19 }
 0xad9   : > { %2610 = vrot.lane.b32.xlu0 %v5634_v61, %s7280_s20 }
 0xadb   : > { %2612 = vrot.lane.b32.xlu1 %v5635_v39, %s7280_s20 }
 0xadd   : > { %2614 = vrot.lane.b32.xlu0 %v5636_v49, %s7280_s20 }
 0xadf   : > { %2616 = vrot.lane.b32.xlu1 %v5637_v4, %s7280_s20 }
 0xae1   : > { %2055 = vrot.lane.b32.xlu0 %v5622_v10, %s7281_s19 }
 0xae3   : > { %2057 = vrot.lane.b32.xlu1 %v5623_v36, %s7281_s19 }
 0xae5   : > { %2059 = vrot.lane.b32.xlu0 %v5624_v63, %s7281_s19 }
 0xae7   : > { %2061 = vrot.lane.b32.xlu1 %v5625_v23, %s7281_s19 }
 0xae9   : > { %2618 = vrot.lane.b32.xlu0 %v5638_v6, %s7280_s20 }
 0xaeb   : > { %2620 = vrot.lane.b32.xlu1 %v5639_v17, %s7280_s20 }
 0xaed   : > { %2622 = vrot.lane.b32.xlu0 %v5640_v22, %s7280_s20 }
 0xaef   : > { %2624 = vrot.lane.b32.xlu1 %v5641_v45, %s7280_s20 }
 0xaf1   : > { %2063 = vrot.lane.b32.xlu0 %v5626_v32, %s7281_s19 }
 0xaf2   : > { %v2937_v35 = vpop.xlane.xlu1 %2936 }
 0xaf3   : > { %2065 = vrot.lane.b32.xlu1 %v5627_v3, %s7281_s19 }
 0xaf6   : > { %v2933_v57 = vpop.xlane.xlu1 %2932 }
 0xaf7   : > { %6787 = vrcp.f32 %v2933_v57 }
 0xafa   : > { %v2939_v40 = vpop.xlane.xlu1 %2938 }
 0xafb   : > { %6789 = vrcp.f32 %v2939_v40 }
 0xafe   : > { %v2935_v34 = vpop.xlane.xlu1 %2934  ;;  %v2945_v11 = vpop.xlane.xlu0 %2944 }
 0xaff   : > { %6791 = vrcp.f32 %v2935_v34 }
 0xb00   : > { %6793 = vrcp.f32 %v2937_v35 }
 0xb02   : > { %v2941_v1 = vpop.xlane.xlu1 %2940  ;;  %v2947_v8 = vpop.xlane.xlu0 %2946 }
 0xb03   : > { %6795 = vrcp.f32 %v2941_v1 }
 0xb04   : > { %6797 = vrcp.f32 %v2947_v8  ;;  %v6788_v14 = vpop.eup %6787 }
 0xb05   : > { %6799 = vrcp.f32 %v2945_v11  ;;  %v2980_v25 = vmul.f32 %v6788_v14, %v8654_v54 }
 0xb06   : > { %v2943_v5 = vpop.xlane.xlu0 %2942  ;;  %v3005_v16 = vpop.permute.xlu1 %3004 }
 0xb07   : > { %6801 = vrcp.f32 %v2943_v5 }
 0xb08   : > { %v6790_v2 = vpop.eup %6789 }
 0xb09   : > { %v2983_v27 = vmul.f32 %v6790_v2, %v8657_v20 }
 0xb0a   : > { %v3007_v33 = vpop.permute.xlu0 %3006 }
 0xb0b   : > { %6223 = vmatprep.subr.bf16.mxu0 %v3007_v33 }
 0xb0c   : > { %v6792_v15 = vpop.eup %6791  ;;  %6224 = vmatpush3.bf16.msra.mxu0 %v3007_v33 }
 0xb0d   : > { %v6794_v62 = vpop.eup %6793  ;;  %v2981_v50 = vmul.f32 %v6792_v15, %v8660_v47  ;;  %6225 = vmatprep.subr.bf16.mxu0 %v3005_v16 }
 0xb0e   : > { %v2982_v48 = vmul.f32 %v6794_v62, %v8651_v29 }
 0xb0f   : > { %v2996_v52 = vpack.c.bf16 %v2981_v50, %v2980_v25 }
 0xb10   : > { %6226 = vmatpush3.bf16.msra.mxu0 %v3005_v16  ;;  %v6796_v61 = vpop.eup %6795  ;;  %v2997_v39 = vpack.c.bf16 %v2983_v27, %v2982_v48 }
 0xb11   : > { %6227 = vmatprep.mubr.bf16.mxu0 %v2996_v52  ;;  %v6798_v49 = vpop.eup %6797  ;;  %v2984_v10 = vmul.f32 %v6796_v61, %v8668_v30 }
 0xb12   : > { %v6800_v4 = vpop.eup %6799  ;;  %v2987_v47 = vmul.f32 %v6798_v49, %v8666_v43  ;;  %v6467_v49 = vld [vmem:[#allocation8 + $0x38] sm:$0xff]  }
 0xb13   : > { %6228 = vmatmul.mubr.bf16.vlgmr.msra.gmra.mxu0 %v2997_v39  ;;  %v2986_v20 = vmul.f32 %v6800_v4, %v8662_v26  ;;  %v6468_v4 = vld [vmem:[#allocation8 + $0x30] sm:$0xff]   ;;  %6243 = vmatprep.subr.bf16.mxu0 %v6467_v49 }
 0xb14   : > { %v6802_v9 = vpop.eup %6801  ;;  %6244 = vmatpush3.bf16.msra.mxu0 %v6467_v49 }
 0xb15   : > { %v2985_v54 = vmul.f32 %v6802_v9, %v8672_v55  ;;  %v2999_v36 = vpack.c.bf16 %v2987_v47, %v2986_v20  ;;  %6245 = vmatprep.subr.bf16.mxu0 %v6468_v4  ;;  %v6469_v9 = vld [vmem:[#allocation8 + $0x28] sm:$0xff]   ;;  %v6472_v47 = vld [vmem:[#allocation8 + $0x10] sm:$0xff]  }
 0xb17   : > { %v2998_v12 = vpack.c.bf16 %v2985_v54, %v2984_v10  ;;  %v6470_v10 = vld [vmem:[#allocation8 + $0x20] sm:$0xff]   ;;  %v6471_v54 = vld [vmem:[#allocation8 + $0x18] sm:$0xff]  }
 0xb18   : > { %6246 = vmatpush3.bf16.msra.mxu0 %v6468_v4 }
 0xb19   : > { %6231 = vmatprep.mubr.bf16.mxu0 %v2998_v12  ;;  %6247 = vmatprep.subr.bf16.mxu0 %v6469_v9  ;;  %v6473_v12 = vld [vmem:[#allocation8 + $0x8] sm:$0xff]  }
 0xb1b   : > { %6232 = vmatmul.mubr.bf16.gmra.mxu0 %v2999_v36 }
 0xb1c   : > { %6248 = vmatpush3.bf16.msra.mxu0 %v6469_v9 }
 0xb1d   : > { %6249 = vmatprep.subr.bf16.mxu0 %v6470_v10 }
 0xb20   : > { %6250 = vmatpush3.bf16.msra.mxu0 %v6470_v10 }
 0xb21   : > { %6251 = vmatprep.subr.bf16.mxu0 %v6471_v54 }
 0xb24   : > { %6252 = vmatpush3.bf16.msra.mxu0 %v6471_v54 }
 0xb25   : > { %6253 = vmatprep.subr.bf16.mxu0 %v6472_v47 }
 0xb28   : > { %6254 = vmatpush3.bf16.msra.mxu0 %v6472_v47 }
 0xb29   : > { %6255 = vmatprep.subr.bf16.mxu0 %v6473_v12 }
 0xb2c   : > { %6256 = vmatpush3.bf16.msra.mxu0 %v6473_v12 }
 0xb37   : > { %v2949_v29 = vpop.xlane.xlu1 %2948 }
 0xb38   : > { %6803 = vrcp.f32 %v2949_v29 }
 0xb3b   : > { %v2955_v31 = vpop.xlane.xlu1 %2954  ;;  %v2951_v63 = vpop.xlane.xlu0 %2950 }
 0xb3c   : > { %6805 = vrcp.f32 %v2951_v63 }
 0xb3d   : > { %6807 = vrcp.f32 %v2955_v31  ;;  %v6474_v31 = vld [vmem:[#allocation8] sm:$0xff]  }
 0xb3e   : > { %6257 = vmatprep.subr.bf16.mxu0 %v6474_v31 }
 0xb3f   : > { %v2953_v38 = vpop.xlane.xlu0 %2952  ;;  %6258 = vmatpush3.bf16.msra.mxu0 %v6474_v31 }
 0xb40   : > { %6809 = vrcp.f32 %v2953_v38 }
 0xb43   : > { %v2959_v23 = vpop.xlane.xlu1 %2958 }
 0xb44   : > { %6811 = vrcp.f32 %v2959_v23  ;;  %v2957_v30 = vpop.xlane.xlu0 %2956 }
 0xb45   : > { %6813 = vrcp.f32 %v2957_v30  ;;  %v6804_v6 = vpop.eup %6803 }
 0xb46   : > { %v2988_v46 = vmul.f32 %v6804_v6, %v8687_v58 }
 0xb47   : > { %v2963_v55 = vpop.xlane.xlu1 %2962 }
 0xb48   : > { %6815 = vrcp.f32 %v2963_v55  ;;  %v2961_v43 = vpop.xlane.xlu0 %2960  ;;  %v10054_v55 = vld [vmem:[#allocation40_spill] sm:$0xff] }
 0xb49   : > { %6817 = vrcp.f32 %v2961_v43  ;;  %v6806_v26 = vpop.eup %6805  ;;  %v5628_v43 = vpack.c.bf16 %v10054_v55, %v10054_v55 }
 0xb4a   : > { %v6808_v22 = vpop.eup %6807  ;;  %v2989_v32 = vmul.f32 %v6806_v26, %v8692_v13 }
 0xb4b   : > { %v2050_v17 = vpop.permute.xlu1 %2049  ;;  %v2991_v40 = vmul.f32 %v6808_v22, %v8690_v44 }
 0xb4c   : > { %2097 = vst.msk [vmem:[#allocation2 + $0x4] sm:$0xf] %vm2095_vm0, %v2050_v17  ;;  %v2048_v45 = vpop.permute.xlu0 %2047  ;;  %v3000_v3 = vpack.c.bf16 %v2989_v32, %v2988_v46  ;;  %v10055_v17 = vld [vmem:[#allocation42_spill] sm:$0xff]  ;;  %v5643_v32 = vpack.c.bf16 %v8597_v7, %v8597_v7  ;;  %v10056_v7 = vld [vmem:[#allocation45_spill] sm:$0xff] }
 0xb4d   : > { %2096 = vst.msk [vmem:[#allocation2] sm:$0xf] %vm2095_vm0, %v2048_v45  ;;  %v6810_v41 = vpop.eup %6809  ;;  %v5629_v22 = vpack.c.bf16 %v10055_v17, %v10055_v17  ;;  %v5642_v45 = vpack.c.bf16 %v8593_v37, %v8593_v37  ;;  %v5644_v37 = vpack.c.bf16 %v8591_v21, %v8591_v21 }
 0xb4e   : > { %v2990_v57 = vmul.f32 %v6810_v41, %v8696_v60  ;;  %6235 = vmatprep.mubr.bf16.mxu0 %v3000_v3 }
 0xb4f   : > { %v2052_v35 = vpop.permute.xlu1 %2051 }
 0xb50   : > { %2098 = vst.msk [vmem:[#allocation2 + $0x8] sm:$0xf] %vm2095_vm0, %v2052_v35  ;;  %v2611_v34 = vpop.permute.xlu0 %2610  ;;  %v3001_v58 = vpack.c.bf16 %v2991_v40, %v2990_v57 }
 0xb51   : > { %v6812_v11 = vpop.eup %6811  ;;  %2659 = vst.msk [vmem:[#allocation2] sm:$0xf] %vm2658_vm3, %v2611_v34 }
 0xb52   : > { %v6814_v1 = vpop.eup %6813  ;;  %v2993_v13 = vmul.f32 %v6812_v11, %v8699_v24  ;;  %6236 = vmatmul.mubr.bf16.gmra.mxu0 %v3001_v58  ;;  %v5630_v11 = vpack.c.bf16 %v10056_v7, %v10056_v7  ;;  %v5645_v58 = vpack.c.bf16 %v8595_v53, %v8595_v53  ;;  %v10058_v53 = vld [vmem:[#allocation44_spill] sm:$0xff] }
 0xb53   : > { %v2054_v8 = vpop.permute.xlu1 %2053  ;;  %v2992_v5 = vmul.f32 %v6814_v1, %v8701_v0  ;;  %v10057_v1 = vld [vmem:[#allocation47_spill] sm:$0xff] }
 0xb54   : > { %2099 = vst.msk [vmem:[#allocation2 + $0xc] sm:$0xf] %vm2095_vm0, %v2054_v8  ;;  %v2615_v60 = vpop.permute.xlu0 %2614 }
 0xb55   : > { %v6816_v14 = vpop.eup %6815  ;;  %2661 = vst.msk [vmem:[#allocation2 + $0x8] sm:$0xf] %vm2658_vm3, %v2615_v60  ;;  %v3002_v44 = vpack.c.bf16 %v2993_v13, %v2992_v5  ;;  %v5631_v13 = vpack.c.bf16 %v10057_v1, %v10057_v1 }
 0xb56   : > { %v6818_v2 = vpop.eup %6817  ;;  %v2995_v33 = vmul.f32 %v6816_v14, %v8705_v51 }
 0xb57   : > { %6239 = vmatprep.mubr.bf16.mxu0 %v3002_v44  ;;  %v2613_v15 = vpop.permute.xlu1 %2612  ;;  %v2994_v62 = vmul.f32 %v6818_v2, %v8707_v18 }
 0xb58   : > { %2660 = vst.msk [vmem:[#allocation2 + $0x4] sm:$0xf] %vm2658_vm3, %v2613_v15  ;;  %v2056_v24 = vpop.permute.xlu0 %2055 }
 0xb59   : > { %2100 = vst.msk [vmem:[#allocation2 + $0x10] sm:$0xf] %vm2095_vm0, %v2056_v24  ;;  %v3003_v0 = vpack.c.bf16 %v2995_v33, %v2994_v62  ;;  %v5632_v33 = vpack.c.bf16 %v10058_v53, %v10058_v53  ;;  %v10059_v24 = vld [vmem:[#allocation46_spill] sm:$0xff] }
 0xb5b   : > { %6240 = vmatmul.mubr.bf16.gmra.mxu0 %v3003_v0  ;;  %v2617_v16 = vpop.permute.xlu1 %2616  ;;  %v5633_v0 = vpack.c.bf16 %v10059_v24, %v10059_v24 }
 0xb5c   : > { %2662 = vst.msk [vmem:[#allocation2 + $0xc] sm:$0xf] %vm2658_vm3, %v2617_v16  ;;  %v2060_v25 = vpop.permute.xlu0 %2059  ;;  %v5646_v16 = vpack.c.bf16 %v8601_v56, %v8601_v56 }
 0xb5d   : > { %2102 = vst.msk [vmem:[#allocation2 + $0x18] sm:$0xf] %vm2095_vm0, %v2060_v25 }
 0xb5f   : > { %v2058_v50 = vpop.permute.xlu1 %2057 }
 0xb60   : > { %2101 = vst.msk [vmem:[#allocation2 + $0x14] sm:$0xf] %vm2095_vm0, %v2058_v50  ;;  %v2619_v51 = vpop.permute.xlu0 %2618  ;;  %v5648_v50 = vpack.c.bf16 %v8599_v42, %v8599_v42 }
 0xb61   : > { %2663 = vst.msk [vmem:[#allocation2 + $0x10] sm:$0xf] %vm2658_vm3, %v2619_v51  ;;  %v5647_v51 = vpack.c.bf16 %v8605_v59, %v8605_v59 }
 0xb63   : > { %v2062_v18 = vpop.permute.xlu1 %2061 }
 0xb64   : > { %2103 = vst.msk [vmem:[#allocation2 + $0x1c] sm:$0xf] %vm2095_vm0, %v2062_v18  ;;  %v2623_v27 = vpop.permute.xlu0 %2622 }
 0xb65   : > { %2665 = vst.msk [vmem:[#allocation2 + $0x18] sm:$0xf] %vm2658_vm3, %v2623_v27  ;;  %v5649_v27 = vpack.c.bf16 %v8603_v28, %v8603_v28 }
 0xb67   : > { %v2621_v52 = vpop.permute.xlu1 %2620 }
 0xb68   : > { %2664 = vst.msk [vmem:[#allocation2 + $0x14] sm:$0xf] %vm2658_vm3, %v2621_v52  ;;  %v2064_v48 = vpop.permute.xlu0 %2063 }
 0xb69   : > { %2104 = vst.msk [vmem:[#allocation2 + $0x20] sm:$0xf] %vm2095_vm0, %v2064_v48 }
 0xb6b   : > { %v2625_v61 = vpop.permute.xlu1 %2624 }
 0xb6c   : > { %2666 = vst.msk [vmem:[#allocation2 + $0x1c] sm:$0xf] %vm2658_vm3, %v2625_v61 }
 0xb6f   : > { %v2066_v39 = vpop.permute.xlu1 %2065 }
 0xb70   : > { %2105 = vst.msk [vmem:[#allocation2 + $0x24] sm:$0xf] %vm2095_vm0, %v2066_v39 }
 0xbd3   : > { %v6229_v20 = vpop.f32.mrf.mxu0 }
 0xbd4   : > { %v5652_v36 = vpack.c.bf16 %v6229_v20, %v6229_v20 }
 0xbd5   : > { %v3062_v29 = vpop.f32.mrf.mxu0 }
 0xbd6   : > { %3177 = vrot.lane.b32.xlu0 %v5652_v36, %s7278_s15  ;;  %v5650_v38 = vpack.c.bf16 %v3062_v29, %v3062_v29 }
 0xbd7   : > { %v6230_v63 = vpop.f32.mrf.mxu0 }
 0xbd8   : > { %v5653_v23 = vpack.c.bf16 %v6230_v63, %v6230_v63 }
 0xbd9   : > { %v3065_v30 = vpop.f32.mrf.mxu0 }
 0xbda   : > { %3173 = vrot.lane.b32.xlu0 %v5650_v38, %s7278_s15  ;;  %3179 = vrot.lane.b32.xlu1 %v5653_v23, %s7278_s15  ;;  %v5651_v6 = vpack.c.bf16 %v3065_v30, %v3065_v30 }
 0xbdb   : > { %v6233_v26 = vpop.f32.mrf.mxu0 }
 0xbdc   : > { %v5656_v41 = vpack.c.bf16 %v6233_v26, %v6233_v26 }
 0xbdd   : > { %v3078_v46 = vpop.f32.mrf.mxu0 }
 0xbde   : > { %2067 = vrot.lane.b32.xlu0 %v5628_v43, %s7281_s19  ;;  %3175 = vrot.lane.b32.xlu1 %v5651_v6, %s7278_s15  ;;  %v5654_v35 = vpack.c.bf16 %v3078_v46, %v3078_v46 }
 0xbdf   : > { %v6234_v3 = vpop.f32.mrf.mxu0 }
 0xbe0   : > { %v5657_v57 = vpack.c.bf16 %v6234_v3, %v6234_v3 }
 0xbe1   : > { %v3081_v40 = vpop.f32.mrf.mxu0 }
 0xbe2   : > { %2626 = vrot.lane.b32.xlu0 %v5642_v45, %s7280_s20  ;;  %2069 = vrot.lane.b32.xlu1 %v5629_v22, %s7281_s19  ;;  %v5655_v34 = vpack.c.bf16 %v3081_v40, %v3081_v40 }
 0xbe6   : > { %2628 = vrot.lane.b32.xlu1 %v5643_v32, %s7280_s20  ;;  %3185 = vrot.lane.b32.xlu0 %v5656_v41, %s7278_s15 }
 0xbea   : > { %3181 = vrot.lane.b32.xlu0 %v5654_v35, %s7278_s15  ;;  %3187 = vrot.lane.b32.xlu1 %v5657_v57, %s7278_s15 }
 0xbee   : > { %2630 = vrot.lane.b32.xlu0 %v5644_v37, %s7280_s20  ;;  %3183 = vrot.lane.b32.xlu1 %v5655_v34, %s7278_s15 }
 0xbf2   : > { %2071 = vrot.lane.b32.xlu0 %v5630_v11, %s7281_s19  ;;  %2632 = vrot.lane.b32.xlu1 %v5645_v58, %s7280_s20 }
 0xbf6   : > { %2073 = vrot.lane.b32.xlu1 %v5631_v13, %s7281_s19 }
 0xc12   : > { %v6237_v21 = vpop.f32.mrf.mxu0 }
 0xc13   : > { %v5660_v8 = vpack.c.bf16 %v6237_v21, %v6237_v21  ;;  %v8888_v21 = vld [vmem:[#allocation9] ss:$0 sm:$0xff] }
 0xc14   : > { %v3094_v5 = vpop.f32.mrf.mxu0 }
 0xc15   : > { %3193 = vrot.lane.b32.xlu0 %v5660_v8, %s7278_s15  ;;  %v5658_v14 = vpack.c.bf16 %v3094_v5, %v3094_v5 }
 0xc16   : > { %v6238_v60 = vpop.f32.mrf.mxu0 }
 0xc17   : > { %v5661_v44 = vpack.c.bf16 %v6238_v60, %v6238_v60 }
 0xc18   : > { %v3097_v2 = vpop.f32.mrf.mxu0 }
 0xc19   : > { %3189 = vrot.lane.b32.xlu0 %v5658_v14, %s7278_s15  ;;  %3195 = vrot.lane.b32.xlu1 %v5661_v44, %s7278_s15  ;;  %v5659_v15 = vpack.c.bf16 %v3097_v2, %v3097_v2  ;;  %v7011_v44 = vld [vmem:[%s7522_s29] sm:$0xff] }
 0xc1b   : > { %v6241_v62 = vpop.f32.mrf.mxu0 }
 0xc1c   : > { %v5664_v48 = vpack.c.bf16 %v6241_v62, %v6241_v62 }
 0xc1d   : > { %2075 = vrot.lane.b32.xlu0 %v5632_v33, %s7281_s19  ;;  %3191 = vrot.lane.b32.xlu1 %v5659_v15, %s7278_s15  ;;  %v3110_v25 = vpop.f32.mrf.mxu0  ;;  %v7012_v15 = vld [vmem:[%s7522_s29 + $0x10] sm:$0xff] }
 0xc1e   : > { %v5662_v56 = vpack.c.bf16 %v3110_v25, %v3110_v25  ;;  %v7014_v25 = vld [vmem:[%s7522_s29 + $0x18] sm:$0xff] }
 0xc1f   : > { %v6242_v18 = vpop.f32.mrf.mxu0 }
 0xc20   : > { %v5665_v42 = vpack.c.bf16 %v6242_v18, %v6242_v18 }
 0xc21   : > { %2634 = vrot.lane.b32.xlu0 %v5646_v16, %s7280_s20  ;;  %2077 = vrot.lane.b32.xlu1 %v5633_v0, %s7281_s19  ;;  %v3113_v52 = vpop.f32.mrf.mxu0  ;;  %v7013_v0 = vld [vmem:[%s7522_s29 + $0x8] sm:$0xff]  ;;  %s10110_s19 = sld [smem:[#allocation53_spill]] }
 0xc22   : > { %v5663_v61 = vpack.c.bf16 %v3113_v52, %v3113_v52 }
 0xc25   : > { %2638 = vrot.lane.b32.xlu0 %v5648_v50, %s7280_s20  ;;  %2636 = vrot.lane.b32.xlu1 %v5647_v51, %s7280_s20 }
 0xc29   : > { %2640 = vrot.lane.b32.xlu1 %v5649_v27, %s7280_s20  ;;  %3197 = vrot.lane.b32.xlu0 %v5662_v56, %s7278_s15 }
 0xc2d   : > { %3201 = vrot.lane.b32.xlu0 %v5664_v48, %s7278_s15  ;;  %3199 = vrot.lane.b32.xlu1 %v5663_v61, %s7278_s15  ;;  %v7015_v48 = vld [vmem:[%s7522_s29 + $0x20] sm:$0xff] }
 0xc31   : > { %3203 = vrot.lane.b32.xlu1 %v5665_v42, %s7278_s15 }
 0xc48   : > { %v3178_v59 = vpop.permute.xlu0 %3177 }
 0xc49   : > { %3224 = vst.msk [vmem:[#allocation2 + $0x8] sm:$0xf] %vm3221_vm4, %v3178_v59 }
 0xc4c   : > { %v3180_v28 = vpop.permute.xlu1 %3179  ;;  %v3174_v39 = vpop.permute.xlu0 %3173 }
 0xc4d   : > { %3225 = vst.msk [vmem:[#allocation2 + $0xc] sm:$0xf] %vm3221_vm4, %v3180_v28  ;;  %3222 = vst.msk [vmem:[#allocation2] sm:$0xf] %vm3221_vm4, %v3174_v39  ;;  %v7016_v28 = vld [vmem:[%s7522_s29 + $0x30] sm:$0xff] }
 0xc50   : > { %v3176_v49 = vpop.permute.xlu1 %3175  ;;  %v2068_v4 = vpop.permute.xlu0 %2067 }
 0xc51   : > { %3223 = vst.msk [vmem:[#allocation2 + $0x4] sm:$0xf] %vm3221_vm4, %v3176_v49 }
 0xc52   : > { %2106 = vst.msk [vmem:[#allocation2 + $0x28] sm:$0xf] %vm2095_vm0, %v2068_v4  ;;  %v7017_v4 = vld [vmem:[%s7522_s29 + $0x28] sm:$0xff] }
 0xc54   : > { %v2070_v9 = vpop.permute.xlu1 %2069  ;;  %v2627_v10 = vpop.permute.xlu0 %2626  ;;  %v6476_v20 = vld [vmem:[#allocation2 + $0x8] sm:$0xff]  }
 0xc55   : > { %2107 = vst.msk [vmem:[#allocation2 + $0x2c] sm:$0xf] %vm2095_vm0, %v2070_v9 }
 0xc56   : > { %2667 = vst.msk [vmem:[#allocation2 + $0x20] sm:$0xf] %vm2658_vm3, %v2627_v10  ;;  %v7018_v10 = vld [vmem:[%s7522_s29 + $0x38] sm:$0xff] }
 0xc58   : > { %v2629_v54 = vpop.permute.xlu1 %2628  ;;  %v3186_v47 = vpop.permute.xlu0 %3185  ;;  %v6475_v12 = vld [vmem:[#allocation2] sm:$0xff]  }
 0xc59   : > { %2668 = vst.msk [vmem:[#allocation2 + $0x24] sm:$0xf] %vm2658_vm3, %v2629_v54  ;;  %6259 = vmatprep.mubr.bf16.mxu0 %v6475_v12 }
 0xc5a   : > { %3228 = vst.msk [vmem:[#allocation2 + $0x18] sm:$0xf] %vm3221_vm4, %v3186_v47  ;;  %6260 = vmatmul.mubr.bf16.vlgmr.msra.gmra.mxu0 %v6476_v20 }
 0xc5c   : > { %v3188_v36 = vpop.permute.xlu1 %3187  ;;  %v3182_v29 = vpop.permute.xlu0 %3181 }
 0xc5d   : > { %3229 = vst.msk [vmem:[#allocation2 + $0x1c] sm:$0xf] %vm3221_vm4, %v3188_v36  ;;  %3226 = vst.msk [vmem:[#allocation2 + $0x10] sm:$0xf] %vm3221_vm4, %v3182_v29 }
 0xc60   : > { %v3184_v31 = vpop.permute.xlu1 %3183  ;;  %v2631_v63 = vpop.permute.xlu0 %2630 }
 0xc61   : > { %3227 = vst.msk [vmem:[#allocation2 + $0x14] sm:$0xf] %vm3221_vm4, %v3184_v31  ;;  %v7019_v31 = vld [vmem:[%s7522_s29 + $0x40] sm:$0xff] }
 0xc62   : > { %2669 = vst.msk [vmem:[#allocation2 + $0x28] sm:$0xf] %vm2658_vm3, %v2631_v63 }
 0xc64   : > { %v2633_v38 = vpop.permute.xlu1 %2632  ;;  %v2072_v23 = vpop.permute.xlu0 %2071  ;;  %v6478_v43 = vld [vmem:[#allocation2 + $0x18] sm:$0xff]  }
 0xc65   : > { %2670 = vst.msk [vmem:[#allocation2 + $0x2c] sm:$0xf] %vm2658_vm3, %v2633_v38 }
 0xc66   : > { %2108 = vst.msk [vmem:[#allocation2 + $0x30] sm:$0xf] %vm2095_vm0, %v2072_v23 }
 0xc68   : > { %v2074_v30 = vpop.permute.xlu1 %2073  ;;  %v6477_v55 = vld [vmem:[#allocation2 + $0x10] sm:$0xff]  }
 0xc69   : > { %2109 = vst.msk [vmem:[#allocation2 + $0x34] sm:$0xf] %vm2095_vm0, %v2074_v30  ;;  %6263 = vmatprep.mubr.bf16.mxu0 %v6477_v55  ;;  %v7020_v30 = vld [vmem:[%s7522_s29 + $0x50] sm:$0xff] }
 0xc6a   : > { %6264 = vmatmul.mubr.bf16.gmra.mxu0 %v6478_v43 }
 0xc87   : > { %v3194_v6 = vpop.permute.xlu0 %3193 }
 0xc88   : > { %3232 = vst.msk [vmem:[#allocation2 + $0x28] sm:$0xf] %vm3221_vm4, %v3194_v6  ;;  %v7021_v6 = vld [vmem:[%s7522_s29 + $0x48] sm:$0xff] }
 0xc8b   : > { %v3196_v26 = vpop.permute.xlu1 %3195  ;;  %v3190_v17 = vpop.permute.xlu0 %3189 }
 0xc8c   : > { %3233 = vst.msk [vmem:[#allocation2 + $0x2c] sm:$0xf] %vm3221_vm4, %v3196_v26  ;;  %3230 = vst.msk [vmem:[#allocation2 + $0x20] sm:$0xf] %vm3221_vm4, %v3190_v17  ;;  %v7022_v17 = vld [vmem:[%s7522_s29 + $0x58] sm:$0xff] }
 0xc8f   : > { %v3192_v22 = vpop.permute.xlu1 %3191  ;;  %v2076_v45 = vpop.permute.xlu0 %2075 }
 0xc90   : > { %3231 = vst.msk [vmem:[#allocation2 + $0x24] sm:$0xf] %vm3221_vm4, %v3192_v22 }
 0xc91   : > { %2110 = vst.msk [vmem:[#allocation2 + $0x38] sm:$0xf] %vm2095_vm0, %v2076_v45 }
 0xc93   : > { %v2078_v46 = vpop.permute.xlu1 %2077  ;;  %v2635_v32 = vpop.permute.xlu0 %2634  ;;  %v6480_v57 = vld [vmem:[#allocation2 + $0x28] sm:$0xff]  }
 0xc94   : > { %2111 = vst.msk [vmem:[#allocation2 + $0x3c] sm:$0xf] %vm2095_vm0, %v2078_v46 }
 0xc95   : > { %2671 = vst.msk [vmem:[#allocation2 + $0x30] sm:$0xf] %vm2658_vm3, %v2635_v32 }
 0xc97   : > { %v2637_v41 = vpop.permute.xlu1 %2636  ;;  %v2639_v3 = vpop.permute.xlu0 %2638  ;;  %v6479_v35 = vld [vmem:[#allocation2 + $0x20] sm:$0xff]  }
 0xc98   : > { %2672 = vst.msk [vmem:[#allocation2 + $0x34] sm:$0xf] %vm2658_vm3, %v2637_v41  ;;  %2673 = vst.msk [vmem:[#allocation2 + $0x38] sm:$0xf] %vm2658_vm3, %v2639_v3  ;;  %6267 = vmatprep.mubr.bf16.mxu0 %v6479_v35  ;;  %v7023_v35 = vld [vmem:[%s7522_s29 + $0x60] sm:$0xff] }
 0xc99   : > { %6268 = vmatmul.mubr.bf16.gmra.mxu0 %v6480_v57 }
 0xc9b   : > { %v2641_v40 = vpop.permute.xlu1 %2640  ;;  %v3198_v37 = vpop.permute.xlu0 %3197 }
 0xc9c   : > { %2674 = vst.msk [vmem:[#allocation2 + $0x3c] sm:$0xf] %vm2658_vm3, %v2641_v40 }
 0xc9d   : > { %3234 = vst.msk [vmem:[#allocation2 + $0x30] sm:$0xf] %vm3221_vm4, %v3198_v37 }
 0xc9f   : > { %v3200_v34 = vpop.permute.xlu1 %3199  ;;  %v3202_v7 = vpop.permute.xlu0 %3201 }
 0xca0   : > { %3235 = vst.msk [vmem:[#allocation2 + $0x34] sm:$0xf] %vm3221_vm4, %v3200_v34  ;;  %3236 = vst.msk [vmem:[#allocation2 + $0x38] sm:$0xf] %vm3221_vm4, %v3202_v7  ;;  %v7024_v34 = vld [vmem:[%s7522_s29 + $0x70] sm:$0xff] }
 0xca3   : > { %v3204_v11 = vpop.permute.xlu1 %3203 }
 0xca4   : > { %3237 = vst.msk [vmem:[#allocation2 + $0x3c] sm:$0xf] %vm3221_vm4, %v3204_v11 }
 0xca7   : > { %v6481_v58 = vld [vmem:[#allocation2 + $0x30] sm:$0xff]  }
 0xca8   : > { %6271 = vmatprep.mubr.bf16.mxu0 %v6481_v58  ;;  %v7025_v58 = vld [vmem:[%s7522_s29 + $0x68] sm:$0xff] }
 0xcab   : > { %v6482_v1 = vld [vmem:[#allocation2 + $0x38] sm:$0xff]  }
 0xcac   : > { %6272 = vmatmul.mubr.bf16.gmra.mxu0 %v6482_v1 }
 0xcad   : > { %4076 = vmatprep.mubr.bf16.mxu0 %v10040_v19 }
 0xd1a   : > { %v6261_v13 = vpop.f32.mrf.mxu0 }
 0xd1b   : > { %v3416_v14 = vadd.f32 %v6261_v13, %v8888_v21  ;;  %v7026_v13 = vld [vmem:[%s7522_s29 + $0x78] sm:$0xff]  ;;  %s7185_s29 = scalar_lea.vmem %s9841_s22, 2048 }
 0xd1c   : > { %v3407_v8 = vpop.f32.mrf.mxu0  ;;  %p7186_p4 = scmp.ne.s32.totalorder %s9841_s22, %s7185_s29  ;;  %p7193_p0 = scmp.lt.s32.totalorder %s7191_s3, %s7185_s29 }
 0xd1d   : > { %v3408_v5 = vadd.f32 %v8888_v21, %v3407_v8  ;;  %v8898_v62 = vadd.f32 %v7012_v15, %v3416_v14  ;;  %v6486_v14 = vld [vmem:[#allocation11 + $0xe8] ss:$16 sps:$4 sm:$0xff]  }
 0xd1e   : > { %v6262_v60 = vpop.f32.mrf.mxu0  ;;  %p7187_p9 = pnand %p7186_p4, %p10112_p5  ;;  %p7194_p1 = por %p7193_p0, %p7192_p7 }
 0xd1f   : > { %v8893_v2 = vadd.f32 %v7011_v44, %v3408_v5  ;;  %v3419_v24 = vadd.f32 %v6262_v60, %v8888_v21  ;;  %v6483_v5 = vld [vmem:[#allocation11 + $0xe0] ss:$16 sps:$4 sm:$0xff]   ;;  %v6485_v60 = vld [vmem:[#allocation11 + $0xe4] ss:$16 sps:$4 sm:$0xff]   ;;  %v6488_v44 = vld [vmem:[#allocation11 + $0xec] ss:$16 sps:$4 sm:$0xff]  }
 0xd20   : > { %v3410_v53 = vpop.f32.mrf.mxu0  ;;  %3931 = vmatprep.subr.bf16.mxu1 %v6485_v60  ;;  %4044 = vmatprep.subr.bf16.mxu0 %v6488_v44  ;;  %v6521_v60 = vld [vmem:[#allocation11 + $0x24] ss:$16 sps:$4 sm:$0xff]   ;;  %v6519_v44 = vld [vmem:[#allocation11 + $0x20] ss:$16 sps:$4 sm:$0xff]   ;;  %p7188_p11 = pneg %p7187_p9 }
 0xd21   : > { %v3411_v33 = vadd.f32 %v8888_v21, %v3410_v53  ;;  %3488 = vadd.xlane.f32.xlu0 %v8893_v2  ;;  %v8907_v50 = vadd.f32 %v7014_v25, %v3419_v24  ;;  %3932 = vmatpush1.bf16.msra.mxu1 %v6483_v5  ;;  %v6516_v5 = vld [vmem:[#allocation11 + $0x48] ss:$16 sps:$4 sm:$0xff]  }
 0xd22   : > { %4045 = vmatpush1.bf16.msra.mxu0 %v6486_v14  ;;  %v6524_v14 = vld [vmem:[#allocation11 + $0x2c] ss:$16 sps:$4 sm:$0xff]   ;;  %p7195_p3 = pnand %p7194_p1, %p7188_p11 }
 0xd23   : > { %v8902_v16 = vadd.f32 %v7013_v0, %v3411_v33 }
 0xd25   : > { %3490 = vadd.xlane.f32.xlu1 %v8902_v16  ;;  %3492 = vadd.xlane.f32.xlu0 %v8898_v62 }
 0xd29   : > { %3494 = vadd.xlane.f32.xlu0 %v8907_v50 }
 0xd2a   : > { %v6265_v51 = vpop.f32.mrf.mxu0 }
 0xd2b   : > { %v3432_v52 = vadd.f32 %v6265_v51, %v8888_v21 }
 0xd2c   : > { %v3423_v18 = vpop.f32.mrf.mxu0 }
 0xd2d   : > { %v3424_v27 = vadd.f32 %v8888_v21, %v3423_v18  ;;  %v8918_v39 = vadd.f32 %v7016_v28, %v3432_v52  ;;  %v6491_v28 = vld [vmem:[#allocation11 + $0xc4] ss:$16 sps:$4 sm:$0xff]  }
 0xd2e   : > { %v6266_v56 = vpop.f32.mrf.mxu0  ;;  %3933 = vmatprep.subr.bf16.mxu1 %v6491_v28 }
 0xd2f   : > { %v8913_v61 = vadd.f32 %v7015_v48, %v3424_v27  ;;  %v3435_v49 = vadd.f32 %v6266_v56, %v8888_v21 }
 0xd30   : > { %v3426_v42 = vpop.f32.mrf.mxu0 }
 0xd31   : > { %v3427_v59 = vadd.f32 %v8888_v21, %v3426_v42  ;;  %3496 = vadd.xlane.f32.xlu0 %v8913_v61  ;;  %v8927_v54 = vadd.f32 %v7018_v10, %v3435_v49  ;;  %v6494_v49 = vld [vmem:[#allocation11 + $0xcc] ss:$16 sps:$4 sm:$0xff]   ;;  %v6489_v10 = vld [vmem:[#allocation11 + $0xc0] ss:$16 sps:$4 sm:$0xff]  }
 0xd32   : > { %4046 = vmatprep.subr.bf16.mxu0 %v6494_v49  ;;  %3934 = vmatpush1.bf16.msra.mxu1 %v6489_v10 }
 0xd33   : > { %v8922_v9 = vadd.f32 %v7017_v4, %v3427_v59 }
 0xd35   : > { %3498 = vadd.xlane.f32.xlu1 %v8922_v9  ;;  %3500 = vadd.xlane.f32.xlu0 %v8918_v39 }
 0xd39   : > { %3502 = vadd.xlane.f32.xlu1 %v8927_v54 }
 0xd59   : > { %v6269_v47 = vpop.f32.mrf.mxu0 }
 0xd5a   : > { %v3448_v29 = vadd.f32 %v6269_v47, %v8888_v21  ;;  %v6492_v47 = vld [vmem:[#allocation11 + $0xc8] ss:$16 sps:$4 sm:$0xff]  }
 0xd5b   : > { %v3439_v12 = vpop.f32.mrf.mxu0  ;;  %4047 = vmatpush1.bf16.msra.mxu0 %v6492_v47 }
 0xd5c   : > { %v3440_v20 = vadd.f32 %v8888_v21, %v3439_v12  ;;  %v8938_v55 = vadd.f32 %v7020_v30, %v3448_v29  ;;  %v6495_v30 = vld [vmem:[#allocation11 + $0xa0] ss:$16 sps:$4 sm:$0xff]  }
 0xd5d   : > { %v6270_v36 = vpop.f32.mrf.mxu0 }
 0xd5e   : > { %v8933_v63 = vadd.f32 %v7019_v31, %v3440_v20  ;;  %v3451_v43 = vadd.f32 %v6270_v36, %v8888_v21  ;;  %v6497_v31 = vld [vmem:[#allocation11 + $0xa4] ss:$16 sps:$4 sm:$0xff]  }
 0xd5f   : > { %v3442_v38 = vpop.f32.mrf.mxu0  ;;  %3935 = vmatprep.subr.bf16.mxu1 %v6497_v31 }
 0xd60   : > { %v3443_v23 = vadd.f32 %v8888_v21, %v3442_v38  ;;  %3504 = vadd.xlane.f32.xlu0 %v8933_v63  ;;  %v8947_v22 = vadd.f32 %v7022_v17, %v3451_v43  ;;  %v6500_v38 = vld [vmem:[#allocation11 + $0xac] ss:$16 sps:$4 sm:$0xff]   ;;  %v6498_v43 = vld [vmem:[#allocation11 + $0xa8] ss:$16 sps:$4 sm:$0xff]   ;;  %3936 = vmatpush1.bf16.msra.mxu1 %v6495_v30 }
 0xd61   : > { %4048 = vmatprep.subr.bf16.mxu0 %v6500_v38 }
 0xd62   : > { %v8942_v26 = vadd.f32 %v7021_v6, %v3443_v23  ;;  %4049 = vmatpush1.bf16.msra.mxu0 %v6498_v43 }
 0xd64   : > { %3506 = vadd.xlane.f32.xlu1 %v8942_v26  ;;  %3508 = vadd.xlane.f32.xlu0 %v8938_v55 }
 0xd68   : > { %3510 = vadd.xlane.f32.xlu1 %v8947_v22 }
 0xd6c   : > { %v6273_v45 = vpop.f32.mrf.mxu0 }
 0xd6d   : > { %v3464_v3 = vadd.f32 %v6273_v45, %v8888_v21 }
 0xd6e   : > { %v3455_v46 = vpop.f32.mrf.mxu0 }
 0xd6f   : > { %v3456_v32 = vadd.f32 %v8888_v21, %v3455_v46  ;;  %v8958_v7 = vadd.f32 %v7024_v34, %v3464_v3  ;;  %v6504_v3 = vld [vmem:[#allocation11 + $0x88] ss:$16 sps:$4 sm:$0xff]   ;;  %v6507_v34 = vld [vmem:[#allocation11 + $0x60] ss:$16 sps:$4 sm:$0xff]  }
 0xd70   : > { %v6274_v41 = vpop.f32.mrf.mxu0 }
 0xd71   : > { %v8953_v57 = vadd.f32 %v7023_v35, %v3456_v32  ;;  %v3467_v11 = vadd.f32 %v6274_v41, %v8888_v21  ;;  %v6506_v32 = vld [vmem:[#allocation11 + $0x8c] ss:$16 sps:$4 sm:$0xff]   ;;  %v6501_v41 = vld [vmem:[#allocation11 + $0x80] ss:$16 sps:$4 sm:$0xff]  }
 0xd72   : > { %v3458_v40 = vpop.f32.mrf.mxu0  ;;  %4050 = vmatprep.subr.bf16.mxu0 %v6506_v32 }
 0xd73   : > { %v3459_v37 = vadd.f32 %v8888_v21, %v3458_v40  ;;  %3512 = vadd.xlane.f32.xlu0 %v8953_v57  ;;  %v8967_v8 = vadd.f32 %v7026_v13, %v3467_v11  ;;  %4051 = vmatpush1.bf16.msra.mxu0 %v6504_v3  ;;  %v6509_v40 = vld [vmem:[#allocation11 + $0x64] ss:$16 sps:$4 sm:$0xff]   ;;  %v6510_v11 = vld [vmem:[#allocation11 + $0x68] ss:$16 sps:$4 sm:$0xff]   ;;  %v6513_v13 = vld [vmem:[#allocation11 + $0x40] ss:$16 sps:$4 sm:$0xff]  }
 0xd75   : > { %v8962_v1 = vadd.f32 %v7025_v58, %v3459_v37  ;;  %v6512_v37 = vld [vmem:[#allocation11 + $0x6c] ss:$16 sps:$4 sm:$0xff]  }
 0xd76   : > { %4052 = vmatprep.subr.bf16.mxu0 %v6512_v37  ;;  %v6518_v58 = vld [vmem:[#allocation11 + $0x4c] ss:$16 sps:$4 sm:$0xff]  }
 0xd77   : > { %3514 = vadd.xlane.f32.xlu1 %v8962_v1  ;;  %3516 = vadd.xlane.f32.xlu0 %v8958_v7 }
 0xd78   : > { %4053 = vmatpush1.bf16.msra.mxu0 %v6510_v11 }
 0xd79   : > { %4054 = vmatprep.subr.bf16.mxu0 %v6518_v58 }
 0xd7b   : > { %3518 = vadd.xlane.f32.xlu1 %v8967_v8 }
 0xd7c   : > { %4055 = vmatpush1.bf16.msra.mxu0 %v6516_v5 }
 0xd7d   : > { %4056 = vmatprep.subr.bf16.mxu0 %v6524_v14 }
 0xdaa   : > { %v3489_v21 = vpop.xlane.xlu0 %3488 }
 0xdab   : > { %v3521_v53 = vmul.f32 0.0078125, %v3489_v21  ;;  %v6522_v21 = vld [vmem:[#allocation11 + $0x28] ss:$16 sps:$4 sm:$0xff]  }
 0xdac   : > { %4057 = vmatpush1.bf16.msra.mxu0 %v6522_v21 }
 0xdad   : > { %v8971_v33 = vsub.f32 %v8893_v2, %v3521_v53  ;;  %v6527_v53 = vld [vmem:[#allocation11 + $0x4] ss:$16 sps:$4 sm:$0xff]  }
 0xdae   : > { %v3491_v15 = vpop.xlane.xlu1 %3490  ;;  %v3493_v24 = vpop.xlane.xlu0 %3492 }
 0xdaf   : > { %v3522_v0 = vmul.f32 0.0078125, %v3491_v15  ;;  %v3523_v25 = vmul.f32 0.0078125, %v3493_v24  ;;  %v3553_v51 = vmul.f32 %v8971_v33, %v8971_v33  ;;  %v6530_v15 = vld [vmem:[#allocation11 + $0xc] ss:$16 sps:$4 sm:$0xff]   ;;  %v6525_v24 = vld [vmem:[#allocation11] ss:$16 sps:$4 sm:$0xff]  }
 0xdb0   : > { %4058 = vmatprep.subr.bf16.mxu0 %v6530_v15 }
 0xdb1   : > { %v8976_v18 = vsub.f32 %v8902_v16, %v3522_v0  ;;  %v8979_v27 = vsub.f32 %v8898_v62, %v3523_v25  ;;  %3569 = vadd.xlane.f32.xlu0 %v3553_v51  ;;  %v6528_v0 = vld [vmem:[#allocation11 + $0x8] ss:$16 sps:$4 sm:$0xff]  }
 0xdb2   : > { %v3495_v56 = vpop.xlane.xlu0 %3494  ;;  %4059 = vmatpush1.bf16.msra.mxu0 %v6528_v0 }
 0xdb3   : > { %v3524_v52 = vmul.f32 0.0078125, %v3495_v56  ;;  %v3554_v2 = vmul.f32 %v8976_v18, %v8976_v18  ;;  %v3555_v48 = vmul.f32 %v8979_v27, %v8979_v27 }
 0xdb5   : > { %v8986_v42 = vsub.f32 %v8907_v50, %v3524_v52  ;;  %3571 = vadd.xlane.f32.xlu1 %v3554_v2  ;;  %3573 = vadd.xlane.f32.xlu0 %v3555_v48 }
 0xdb7   : > { %v3556_v16 = vmul.f32 %v8986_v42, %v8986_v42 }
 0xdb9   : > { %3575 = vadd.xlane.f32.xlu1 %v3556_v16 }
 0xdba   : > { %v3497_v62 = vpop.xlane.xlu0 %3496 }
 0xdbb   : > { %v3525_v59 = vmul.f32 0.0078125, %v3497_v62 }
 0xdbd   : > { %v8991_v4 = vsub.f32 %v8913_v61, %v3525_v59 }
 0xdbe   : > { %v3499_v12 = vpop.xlane.xlu1 %3498  ;;  %v3501_v20 = vpop.xlane.xlu0 %3500 }
 0xdbf   : > { %v3526_v50 = vmul.f32 0.0078125, %v3499_v12  ;;  %v3527_v36 = vmul.f32 0.0078125, %v3501_v20  ;;  %v3557_v29 = vmul.f32 %v8991_v4, %v8991_v4 }
 0xdc1   : > { %v8996_v23 = vsub.f32 %v8922_v9, %v3526_v50  ;;  %v8999_v61 = vsub.f32 %v8918_v39, %v3527_v36  ;;  %3577 = vadd.xlane.f32.xlu0 %v3557_v29  ;;  %v6503_v9 = vld [vmem:[#allocation11 + $0x84] ss:$16 sps:$4 sm:$0xff]  }
 0xdc2   : > { %v3503_v6 = vpop.xlane.xlu1 %3502  ;;  %3937 = vmatprep.subr.bf16.mxu1 %v6503_v9 }
 0xdc3   : > { %v3528_v17 = vmul.f32 0.0078125, %v3503_v6  ;;  %v3558_v45 = vmul.f32 %v8996_v23, %v8996_v23  ;;  %v3559_v46 = vmul.f32 %v8999_v61, %v8999_v61  ;;  %3938 = vmatpush1.bf16.msra.mxu1 %v6501_v41 }
 0xdc4   : > { %3939 = vmatprep.subr.bf16.mxu1 %v6509_v40 }
 0xdc5   : > { %v9006_v39 = vsub.f32 %v8927_v54, %v3528_v17  ;;  %3579 = vadd.xlane.f32.xlu1 %v3558_v45  ;;  %3581 = vadd.xlane.f32.xlu0 %v3559_v46  ;;  %v6515_v54 = vld [vmem:[#allocation11 + $0x44] ss:$16 sps:$4 sm:$0xff]  }
 0xdc7   : > { %v3560_v35 = vmul.f32 %v9006_v39, %v9006_v39  ;;  %3940 = vmatpush1.bf16.msra.mxu1 %v6507_v34 }
 0xdc8   : > { %3941 = vmatprep.subr.bf16.mxu1 %v6515_v54 }
 0xdc9   : > { %3583 = vadd.xlane.f32.xlu1 %v3560_v35 }
 0xdcb   : > { %3942 = vmatpush1.bf16.msra.mxu1 %v6513_v13 }
 0xdcc   : > { %3943 = vmatprep.subr.bf16.mxu1 %v6521_v60 }
 0xdcf   : > { %3944 = vmatpush1.bf16.msra.mxu1 %v6519_v44  ;;  %v9054_v44 = vld [vmem:[%s9891_s5] ss:$0 sm:$0xff] }
 0xdd0   : > { %3945 = vmatprep.subr.bf16.mxu1 %v6527_v53 }
 0xdd3   : > { %3946 = vmatpush1.bf16.msra.mxu1 %v6525_v24 }
 0xde9   : > { %v3505_v25 = vpop.xlane.xlu0 %3504 }
 0xdea   : > { %v3529_v51 = vmul.f32 0.0078125, %v3505_v25 }
 0xdec   : > { %v9011_v56 = vsub.f32 %v8933_v63, %v3529_v51 }
 0xded   : > { %v3507_v52 = vpop.xlane.xlu1 %3506  ;;  %v3509_v2 = vpop.xlane.xlu0 %3508 }
 0xdee   : > { %v3530_v48 = vmul.f32 0.0078125, %v3507_v52  ;;  %v3531_v16 = vmul.f32 0.0078125, %v3509_v2  ;;  %v3561_v62 = vmul.f32 %v9011_v56, %v9011_v56 }
 0xdf0   : > { %v9016_v59 = vsub.f32 %v8942_v26, %v3530_v48  ;;  %v9019_v28 = vsub.f32 %v8938_v55, %v3531_v16  ;;  %3585 = vadd.xlane.f32.xlu0 %v3561_v62 }
 0xdf1   : > { %v3511_v49 = vpop.xlane.xlu1 %3510 }
 0xdf2   : > { %v3532_v10 = vmul.f32 0.0078125, %v3511_v49  ;;  %v3562_v63 = vmul.f32 %v9016_v59, %v9016_v59  ;;  %v3563_v47 = vmul.f32 %v9019_v28, %v9019_v28 }
 0xdf4   : > { %v9026_v12 = vsub.f32 %v8947_v22, %v3532_v10  ;;  %3587 = vadd.xlane.f32.xlu1 %v3562_v63  ;;  %3589 = vadd.xlane.f32.xlu0 %v3563_v47 }
 0xdf6   : > { %v3564_v26 = vmul.f32 %v9026_v12, %v9026_v12 }
 0xdf8   : > { %3591 = vadd.xlane.f32.xlu1 %v3564_v26 }
 0xdfc   : > { %v3513_v55 = vpop.xlane.xlu0 %3512 }
 0xdfd   : > { %v3533_v20 = vmul.f32 0.0078125, %v3513_v55 }
 0xdff   : > { %v9031_v50 = vsub.f32 %v8953_v57, %v3533_v20 }
 0xe00   : > { %v3515_v36 = vpop.xlane.xlu1 %3514  ;;  %v3517_v29 = vpop.xlane.xlu0 %3516 }
 0xe01   : > { %v3534_v31 = vmul.f32 0.0078125, %v3515_v36  ;;  %v3535_v38 = vmul.f32 0.0078125, %v3517_v29  ;;  %v3565_v30 = vmul.f32 %v9031_v50, %v9031_v50 }
 0xe03   : > { %v9036_v22 = vsub.f32 %v8962_v1, %v3534_v31  ;;  %v9039_v43 = vsub.f32 %v8958_v7, %v3535_v38  ;;  %3593 = vadd.xlane.f32.xlu0 %v3565_v30 }
 0xe04   : > { %v3519_v6 = vpop.xlane.xlu1 %3518 }
 0xe05   : > { %v3536_v17 = vmul.f32 0.0078125, %v3519_v6  ;;  %v3566_v57 = vmul.f32 %v9036_v22, %v9036_v22  ;;  %v3567_v45 = vmul.f32 %v9039_v43, %v9039_v43 }
 0xe07   : > { %v9046_v46 = vsub.f32 %v8967_v8, %v3536_v17  ;;  %3595 = vadd.xlane.f32.xlu1 %v3566_v57  ;;  %3597 = vadd.xlane.f32.xlu0 %v3567_v45 }
 0xe09   : > { %v3568_v1 = vmul.f32 %v9046_v46, %v9046_v46 }
 0xe0b   : > { %3599 = vadd.xlane.f32.xlu1 %v3568_v1 }
 0xe3a   : > { %v3570_v7 = vpop.xlane.xlu0 %3569 }
 0xe3b   : > { %v3601_v9 = vmul.f32 0.0078125, %v3570_v7 }
 0xe3d   : > { %v3617_v32 = vadd.f32 1e-05, %v3601_v9 }
 0xe3e   : > { %v3572_v41 = vpop.xlane.xlu1 %3571  ;;  %v3574_v3 = vpop.xlane.xlu0 %3573 }
 0xe3f   : > { %6819 = vrsqrt.f32 %v3617_v32  ;;  %v3602_v35 = vmul.f32 0.0078125, %v3572_v41  ;;  %v3603_v40 = vmul.f32 0.0078125, %v3574_v3 }
 0xe41   : > { %v3618_v37 = vadd.f32 1e-05, %v3602_v35  ;;  %v3619_v34 = vadd.f32 1e-05, %v3603_v40 }
 0xe42   : > { %v3576_v11 = vpop.xlane.xlu1 %3575 }
 0xe43   : > { %6821 = vrsqrt.f32 %v3618_v37  ;;  %v3604_v8 = vmul.f32 0.0078125, %v3576_v11 }
 0xe44   : > { %6823 = vrsqrt.f32 %v3619_v34 }
 0xe45   : > { %v3620_v54 = vadd.f32 1e-05, %v3604_v8 }
 0xe47   : > { %6825 = vrsqrt.f32 %v3620_v54 }
 0xe4a   : > { %v3578_v58 = vpop.xlane.xlu0 %3577 }
 0xe4b   : > { %v3605_v13 = vmul.f32 0.0078125, %v3578_v58 }
 0xe4c   : > { %v6820_v5 = vpop.eup %6819 }
 0xe4d   : > { %v3649_v60 = vmul.f32 %v6820_v5, %v8971_v33  ;;  %v3621_v14 = vadd.f32 1e-05, %v3605_v13  ;;  %v9061_v33 = vld [vmem:[%s9892_s6] ss:$0 sm:$0xff] }
 0xe4e   : > { %v3580_v21 = vpop.xlane.xlu1 %3579  ;;  %v3582_v53 = vpop.xlane.xlu0 %3581 }
 0xe4f   : > { %6827 = vrsqrt.f32 %v3621_v14  ;;  %v3606_v15 = vmul.f32 0.0078125, %v3580_v21  ;;  %v3607_v24 = vmul.f32 0.0078125, %v3582_v53  ;;  %v3671_v25 = vmul.f32 %v9054_v44, %v3649_v60 }
 0xe50   : > { %v6822_v0 = vpop.eup %6821 }
 0xe51   : > { %v6824_v51 = vpop.eup %6823  ;;  %v3650_v52 = vmul.f32 %v6822_v0, %v8976_v18  ;;  %v3622_v2 = vadd.f32 1e-05, %v3606_v15  ;;  %v3623_v48 = vadd.f32 1e-05, %v3607_v24  ;;  %v9065_v63 = vadd.f32 %v9061_v33, %v3671_v25 }
 0xe52   : > { %v3584_v16 = vpop.xlane.xlu1 %3583  ;;  %v3651_v47 = vmul.f32 %v6824_v51, %v8979_v27 }
 0xe53   : > { %6829 = vrsqrt.f32 %v3622_v2  ;;  %v3608_v62 = vmul.f32 0.0078125, %v3584_v16  ;;  %v3672_v49 = vmul.f32 %v9054_v44, %v3650_v52  ;;  %10060 = vst [vmem:[#allocation30_spill] sm:$0xff] %v9065_v63 }
 0xe54   : > { %v6826_v10 = vpop.eup %6825  ;;  %6831 = vrsqrt.f32 %v3623_v48  ;;  %v3673_v29 = vmul.f32 %v9054_v44, %v3651_v47 }
 0xe55   : > { %v3624_v18 = vadd.f32 1e-05, %v3608_v62  ;;  %v9069_v26 = vadd.f32 %v9061_v33, %v3672_v49  ;;  %v3652_v55 = vmul.f32 %v6826_v10, %v8986_v42 }
 0xe56   : > { %v9082_v42 = vadd.f32 %v9061_v33, %v3673_v29 }
 0xe57   : > { %10061 = vst [vmem:[#allocation31_spill] sm:$0xff] %v9069_v26  ;;  %6833 = vrsqrt.f32 %v3624_v18  ;;  %v3709_v20 = vpack.c.bf16 %v9069_v26, %v9065_v63  ;;  %v3674_v36 = vmul.f32 %v9054_v44, %v3652_v55 }
 0xe58   : > { %10063 = vst [vmem:[#allocation33_spill] sm:$0xff] %v9082_v42 }
 0xe59   : > { %3964 = vmatmul.mubr.bf16.vlgmr.msra.gmra.mxu1 %v3709_v20  ;;  %4077 = vmatmul.mubr.bf16.vlgmr.msra.gmra.mxu0 %v3709_v20  ;;  %v9079_v27 = vadd.f32 %v9061_v33, %v3674_v36 }
 0xe5a   : > { %3973 = vmatprep.mubr.bf16.mxu1 %v10040_v19  ;;  %4086 = vmatprep.mubr.bf16.mxu0 %v10040_v19 }
 0xe5b   : > { %10062 = vst [vmem:[#allocation32_spill] sm:$0xff] %v9079_v27  ;;  %v3710_v30 = vpack.c.bf16 %v9079_v27, %v9082_v42 }
 0xe5c   : > { %v6828_v31 = vpop.eup %6827 }
 0xe5d   : > { %v3653_v38 = vmul.f32 %v6828_v31, %v8991_v4 }
 0xe5f   : > { %v3675_v57 = vmul.f32 %v9054_v44, %v3653_v38 }
 0xe60   : > { %v6830_v6 = vpop.eup %6829 }
 0xe61   : > { %3974 = vmatmul.mubr.bf16.gmra.mxu1 %v3710_v30  ;;  %4087 = vmatmul.mubr.bf16.gmra.mxu0 %v3710_v30  ;;  %v3654_v17 = vmul.f32 %v6830_v6, %v8996_v23  ;;  %v6832_v45 = vpop.eup %6831  ;;  %v9093_v4 = vadd.f32 %v9061_v33, %v3675_v57 }
 0xe62   : > { %3983 = vmatprep.mubr.bf16.mxu1 %v10040_v19  ;;  %4096 = vmatprep.mubr.bf16.mxu0 %v10040_v19  ;;  %v3655_v32 = vmul.f32 %v6832_v45, %v8999_v61 }
 0xe63   : > { %v3676_v1 = vmul.f32 %v9054_v44, %v3654_v17  ;;  %10064 = vst [vmem:[#allocation21_spill] sm:$0xff] %v9093_v4 }
 0xe64   : > { %v6834_v7 = vpop.eup %6833  ;;  %v3677_v35 = vmul.f32 %v9054_v44, %v3655_v32 }
 0xe65   : > { %v9096_v9 = vadd.f32 %v9061_v33, %v3676_v1  ;;  %v3656_v23 = vmul.f32 %v6834_v7, %v9006_v39  ;;  %v6531_v1 = vld [vmem:[#allocation12 + $0x78] sm:$0xff]  }
 0xe66   : > { %v9110_v61 = vadd.f32 %v9061_v33, %v3677_v35  ;;  %v9132_v7 = vld [vmem:[#allocation12 + $0xf8] sm:$0xff]   ;;  %5827 = vmatprep.subr.bf16.mxu1 %v6531_v1  ;;  %v10082_v1 = vld [vmem:[#allocation20_spill] sm:$0xff] }
 0xe67   : > { %10065 = vst [vmem:[#allocation24_spill] sm:$0xff] %v9096_v9  ;;  %v3711_v41 = vpack.c.bf16 %v9096_v9, %v9093_v4  ;;  %v3678_v3 = vmul.f32 %v9054_v44, %v3656_v23  ;;  %5891 = vmatprep.subr.bf16.mxu0 %v9132_v7 }
 0xe68   : > { %10067 = vst [vmem:[#allocation26_spill] sm:$0xff] %v9110_v61 }
 0xe69   : > { %3984 = vmatmul.mubr.bf16.gmra.mxu1 %v3711_v41  ;;  %4097 = vmatmul.mubr.bf16.gmra.mxu0 %v3711_v41  ;;  %v9107_v40 = vadd.f32 %v9061_v33, %v3678_v3  ;;  %v6535_v41 = vld [vmem:[#allocation12 + $0x70] sm:$0xff]  }
 0xe6a   : > { %3993 = vmatprep.mubr.bf16.mxu1 %v10040_v19  ;;  %4106 = vmatprep.mubr.bf16.mxu0 %v10040_v19  ;;  %v9146_v3 = vld [vmem:[#allocation12 + $0xf0] sm:$0xff]  }
 0xe6b   : > { %10066 = vst [vmem:[#allocation25_spill] sm:$0xff] %v9107_v40  ;;  %v3712_v39 = vpack.c.bf16 %v9107_v40, %v9110_v61 }
 0xe71   : > { %3994 = vmatmul.mubr.bf16.gmra.mxu1 %v3712_v39  ;;  %4107 = vmatmul.mubr.bf16.gmra.mxu0 %v3712_v39 }
 0xe72   : > { %4003 = vmatprep.mubr.bf16.mxu1 %v10040_v19  ;;  %4116 = vmatprep.mubr.bf16.mxu0 %v10040_v19 }
 0xe79   : > { %v3586_v37 = vpop.xlane.xlu0 %3585 }
 0xe7a   : > { %v3609_v34 = vmul.f32 0.0078125, %v3586_v37  ;;  %v6537_v37 = vld [vmem:[#allocation12 + $0x30] sm:$0xff]  }
 0xe7c   : > { %v3625_v11 = vadd.f32 1e-05, %v3609_v34  ;;  %v9150_v34 = vld [vmem:[#allocation12 + $0xb0] sm:$0xff]  }
 0xe7d   : > { %v3588_v8 = vpop.xlane.xlu1 %3587  ;;  %v3590_v54 = vpop.xlane.xlu0 %3589 }
 0xe7e   : > { %6835 = vrsqrt.f32 %v3625_v11  ;;  %v3610_v58 = vmul.f32 0.0078125, %v3588_v8  ;;  %v3611_v13 = vmul.f32 0.0078125, %v3590_v54  ;;  %v6539_v8 = vld [vmem:[#allocation12 + $0x68] sm:$0xff]  }
 0xe7f   : > { %v9156_v54 = vld [vmem:[#allocation12 + $0xe8] sm:$0xff]  }
 0xe80   : > { %v3626_v5 = vadd.f32 1e-05, %v3610_v58  ;;  %v3627_v60 = vadd.f32 1e-05, %v3611_v13 }
 0xe81   : > { %v3592_v14 = vpop.xlane.xlu1 %3591 }
 0xe82   : > { %6837 = vrsqrt.f32 %v3626_v5  ;;  %v3612_v21 = vmul.f32 0.0078125, %v3592_v14  ;;  %v6541_v5 = vld [vmem:[#allocation12 + $0x28] sm:$0xff]  }
 0xe83   : > { %6839 = vrsqrt.f32 %v3627_v60 }
 0xe84   : > { %v3628_v53 = vadd.f32 1e-05, %v3612_v21 }
 0xe86   : > { %6841 = vrsqrt.f32 %v3628_v53  ;;  %v6543_v53 = vld [vmem:[#allocation12 + $0x60] sm:$0xff]  }
 0xe8b   : > { %v6836_v15 = vpop.eup %6835 }
 0xe8c   : > { %v3594_v24 = vpop.xlane.xlu0 %3593  ;;  %v3657_v0 = vmul.f32 %v6836_v15, %v9011_v56  ;;  %v9165_v15 = vld [vmem:[#allocation12 + $0xe0] sm:$0xff]  }
 0xe8d   : > { %v3613_v25 = vmul.f32 0.0078125, %v3594_v24 }
 0xe8e   : > { %v3679_v62 = vmul.f32 %v9054_v44, %v3657_v0 }
 0xe8f   : > { %v6838_v51 = vpop.eup %6837  ;;  %v3629_v52 = vadd.f32 1e-05, %v3613_v25  ;;  %v6545_v25 = vld [vmem:[#allocation12 + $0x20] sm:$0xff]  }
 0xe90   : > { %v3596_v2 = vpop.xlane.xlu1 %3595  ;;  %v3598_v48 = vpop.xlane.xlu0 %3597  ;;  %v3658_v16 = vmul.f32 %v6838_v51, %v9016_v59  ;;  %v9121_v56 = vadd.f32 %v9061_v33, %v3679_v62  ;;  %v9171_v51 = vld [vmem:[#allocation12 + $0xa0] sm:$0xff]   ;;  %v6547_v62 = vld [vmem:[#allocation12 + $0x58] sm:$0xff]  }
 0xe91   : > { %v6840_v49 = vpop.eup %6839  ;;  %6843 = vrsqrt.f32 %v3629_v52  ;;  %v3614_v10 = vmul.f32 0.0078125, %v3596_v2  ;;  %v3615_v47 = vmul.f32 0.0078125, %v3598_v48 }
 0xe92   : > { %v3680_v18 = vmul.f32 %v9054_v44, %v3658_v16  ;;  %10068 = vst [vmem:[#allocation34_spill] sm:$0xff] %v9121_v56  ;;  %v3659_v59 = vmul.f32 %v6840_v49, %v9019_v28  ;;  %v6533_v28 = vld [vmem:[#allocation12 + $0x38] sm:$0xff]  }
 0xe93   : > { %v6842_v55 = vpop.eup %6841  ;;  %v3630_v20 = vadd.f32 1e-05, %v3614_v10  ;;  %v3631_v36 = vadd.f32 1e-05, %v3615_v47  ;;  %5828 = vmatpush3.bf16.msra.mxu1 %v6533_v28  ;;  %v9183_v49 = vld [vmem:[#allocation12 + $0xd8] sm:$0xff]   ;;  %v3765_v28 = vsub.s32 3, %v10082_v1 }
 0xe94   : > { %v3600_v29 = vpop.xlane.xlu1 %3599  ;;  %v9124_v31 = vadd.f32 %v9061_v33, %v3680_v18  ;;  %v3660_v38 = vmul.f32 %v6842_v55, %v9026_v12  ;;  %v3681_v45 = vmul.f32 %v9054_v44, %v3659_v59  ;;  %v9136_v12 = vld [vmem:[#allocation12 + $0xb8] sm:$0xff]   ;;  %5829 = vmatprep.subr.bf16.mxu1 %v6535_v41  ;;  %v6551_v55 = vld [vmem:[#allocation12 + $0x50] sm:$0xff]   ;;  %v6557_v59 = vld [vmem:[#allocation12 + $0x8] sm:$0xff]   ;;  %v10083_v41 = vsub.s32 0, %v10082_v1 }
 0xe95   : > { %6845 = vrsqrt.f32 %v3630_v20  ;;  %v3616_v30 = vmul.f32 0.0078125, %v3600_v29  ;;  %5892 = vmatpush3.bf16.msra.mxu0 %v9136_v12  ;;  %v6549_v10 = vld [vmem:[#allocation12 + $0x18] sm:$0xff]   ;;  %v9200_v20 = vld [vmem:[#allocation12 + $0xd0] sm:$0xff]   ;;  %v6555_v29 = vld [vmem:[#allocation12 + $0x48] sm:$0xff]  }
 0xe96   : > { %10069 = vst [vmem:[#allocation23_spill] sm:$0xff] %v9124_v31  ;;  %v3713_v6 = vpack.c.bf16 %v9124_v31, %v9121_v56  ;;  %v3682_v17 = vmul.f32 %v9054_v44, %v3660_v38  ;;  %6847 = vrsqrt.f32 %v3631_v36  ;;  %v9144_v23 = vadd.f32 %v9061_v33, %v3681_v45  ;;  %5893 = vmatprep.subr.bf16.mxu0 %v9146_v3  ;;  %v9202_v36 = vld [vmem:[#allocation12 + $0x90] sm:$0xff]   ;;  %v9208_v38 = vld [vmem:[#allocation12 + $0x88] sm:$0xff]   ;;  %v3749_v45 = vld [vmem:[%s9894_s8] sm:$0xf] }
 0xe97   : > { %v3632_v57 = vadd.f32 1e-05, %v3616_v30  ;;  %5830 = vmatpush3.bf16.msra.mxu1 %v6537_v37  ;;  %10076 = vst [vmem:[#allocation39_spill] sm:$0xff] %v9200_v20  ;;  %10077 = vst [vmem:[#allocation36_spill] sm:$0xff] %v9202_v36  ;;  %v6559_v30 = vld [vmem:[#allocation12 + $0x40] sm:$0xff]   ;;  %v10084_v37 = vsub.s32 2, %v10082_v1 }
 0xe98   : > { %4004 = vmatmul.mubr.bf16.gmra.mxu1 %v3713_v6  ;;  %4117 = vmatmul.mubr.bf16.gmra.mxu0 %v3713_v6  ;;  %v9139_v32 = vadd.f32 %v9061_v33, %v3682_v17  ;;  %10071 = vst [vmem:[#allocation35_spill] sm:$0xff] %v9144_v23  ;;  %10079 = vst [vmem:[#allocation41_spill] sm:$0xff] %v9208_v38  ;;  %v9212_v6 = vld [vmem:[#allocation12 + $0xc0] sm:$0xff]  }
 0xe99   : > { %6849 = vrsqrt.f32 %v3632_v57  ;;  %4013 = vmatprep.mubr.bf16.mxu1 %v10040_v19  ;;  %4126 = vmatprep.mubr.bf16.mxu0 %v10040_v19  ;;  %10080 = vst [vmem:[#allocation43_spill] sm:$0xff] %v9212_v6  ;;  %v6561_v17 = vld [vmem:[#allocation12] sm:$0xff]  }
 0xe9a   : > { %10070 = vst [vmem:[#allocation22_spill] sm:$0xff] %v9139_v32  ;;  %v3714_v39 = vpack.c.bf16 %v9139_v32, %v9144_v23  ;;  %5894 = vmatpush3.bf16.msra.mxu0 %v9150_v34  ;;  %5831 = vmatprep.subr.bf16.mxu1 %v6539_v8  ;;  %v9214_v57 = vld [vmem:[#allocation12 + $0x80] sm:$0xff]  }
 0xe9b   : > { %5895 = vmatprep.subr.bf16.mxu0 %v9156_v54  ;;  %5832 = vmatpush3.bf16.msra.mxu1 %v6541_v5  ;;  %10081 = vst [vmem:[#allocation40_spill] sm:$0xff] %v9214_v57  ;;  %v9235_v5 = vrot.slane %v3749_v45, %v3765_v28 }
 0xe9c   : > { %5833 = vmatprep.subr.bf16.mxu1 %v6543_v53 }
 0xe9e   : > { %v6844_v35 = vpop.eup %6843 }
 0xe9f   : > { %v3661_v11 = vmul.f32 %v6844_v35, %v9031_v50  ;;  %v9160_v50 = vld [vmem:[#allocation12 + $0xa8] sm:$0xff]   ;;  %5834 = vmatpush3.bf16.msra.mxu1 %v6545_v25  ;;  %v9225_v35 = vrot.slane %v3749_v45, %v10083_v41 }
 0xea0   : > { %4014 = vmatmul.mubr.bf16.gmra.mxu1 %v3714_v39  ;;  %4127 = vmatmul.mubr.bf16.gmra.mxu0 %v3714_v39 }
 0xea1   : > { %4023 = vmatprep.mubr.bf16.mxu1 %v10040_v19  ;;  %4136 = vmatprep.mubr.bf16.mxu0 %v10040_v19  ;;  %v3683_v13 = vmul.f32 %v9054_v44, %v3661_v11  ;;  %v9229_v11 = vrot.slane %v3749_v45, %v10084_v37 }
 0xea2   : > { %v6846_v58 = vpop.eup %6845  ;;  %5896 = vmatpush3.bf16.msra.mxu0 %v9160_v50  ;;  %5835 = vmatprep.subr.bf16.mxu1 %v6547_v62 }
 0xea3   : > { %v3662_v60 = vmul.f32 %v6846_v58, %v9036_v22  ;;  %v6848_v14 = vpop.eup %6847  ;;  %v9168_v0 = vadd.f32 %v9061_v33, %v3683_v13  ;;  %5897 = vmatprep.subr.bf16.mxu0 %v9165_v15  ;;  %5836 = vmatpush3.bf16.msra.mxu1 %v6549_v10  ;;  %v10085_v58 = vsub.s32 1, %v10082_v1 }
 0xea4   : > { %v3663_v52 = vmul.f32 %v6848_v14, %v9039_v43  ;;  %5837 = vmatprep.subr.bf16.mxu1 %v6551_v55 }
 0xea5   : > { %v3684_v21 = vmul.f32 %v9054_v44, %v3662_v60  ;;  %10072 = vst [vmem:[#allocation27_spill] sm:$0xff] %v9168_v0  ;;  %v9233_v13 = vrot.slane %v3749_v45, %v10085_v58 }
 0xea6   : > { %v6850_v24 = vpop.eup %6849  ;;  %5898 = vmatpush3.bf16.msra.mxu0 %v9171_v51  ;;  %v3685_v43 = vmul.f32 %v9054_v44, %v3663_v52 }
 0xea7   : > { %v9174_v22 = vadd.f32 %v9061_v33, %v3684_v21  ;;  %v3664_v2 = vmul.f32 %v6850_v24, %v9046_v46  ;;  %v9186_v46 = vld [vmem:[#allocation12 + $0x98] sm:$0xff]   ;;  %5899 = vmatprep.subr.bf16.mxu0 %v9183_v49 }
 0xea8   : > { %v9196_v18 = vadd.f32 %v9061_v33, %v3685_v43 }
 0xea9   : > { %10073 = vst [vmem:[#allocation28_spill] sm:$0xff] %v9174_v22  ;;  %v3715_v48 = vpack.c.bf16 %v9174_v22, %v9168_v0  ;;  %v3686_v16 = vmul.f32 %v9054_v44, %v3664_v2 }
 0xeaa   : > { %5900 = vmatpush3.bf16.msra.mxu0 %v9186_v46  ;;  %10075 = vst [vmem:[#allocation37_spill] sm:$0xff] %v9196_v18 }
 0xeab   : > { %4024 = vmatmul.mubr.bf16.gmra.mxu1 %v3715_v48  ;;  %4137 = vmatmul.mubr.bf16.gmra.mxu0 %v3715_v48  ;;  %v9191_v47 = vadd.f32 %v9061_v33, %v3686_v16  ;;  %v9206_v33 = vld [vmem:[#allocation12 + $0xc8] sm:$0xff]  }
 0xeac   : > { %4033 = vmatprep.mubr.bf16.mxu1 %v10040_v19  ;;  %4146 = vmatprep.mubr.bf16.mxu0 %v10040_v19  ;;  %v6553_v19 = vld [vmem:[#allocation12 + $0x10] sm:$0xff]   ;;  %10078 = vst [vmem:[#allocation38_spill] sm:$0xff] %v9206_v33 }
 0xead   : > { %10074 = vst [vmem:[#allocation29_spill] sm:$0xff] %v9191_v47  ;;  %v3716_v44 = vpack.c.bf16 %v9191_v47, %v9196_v18  ;;  %5901 = vmatprep.subr.bf16.mxu0 %v9200_v20  ;;  %5838 = vmatpush3.bf16.msra.mxu1 %v6553_v19 }
 0xeae   : > { %5902 = vmatpush3.bf16.msra.mxu0 %v9202_v36  ;;  %5839 = vmatprep.subr.bf16.mxu1 %v6555_v29 }
 0xeaf   : > { %5903 = vmatprep.subr.bf16.mxu0 %v9206_v33 }
 0xeb1   : > { %5840 = vmatpush3.bf16.msra.mxu1 %v6557_v59 }
 0xeb2   : > { %5904 = vmatpush3.bf16.msra.mxu0 %v9208_v38  ;;  %5841 = vmatprep.subr.bf16.mxu1 %v6559_v30 }
 0xeb3   : > { %4034 = vmatmul.mubr.bf16.gmra.mxu1 %v3716_v44  ;;  %4147 = vmatmul.mubr.bf16.gmra.mxu0 %v3716_v44 }
 0xeb4   : > { %5905 = vmatprep.subr.bf16.mxu0 %v9212_v6 }
 0xeb5   : > { %5842 = vmatpush3.bf16.msra.mxu1 %v6561_v17 }
 0xeb6   : > { %5906 = vmatpush3.bf16.msra.mxu0 %v9214_v57  ;;  %6275 = vmatprep.subr.bf16.mxu1 %v9132_v7 }
 0xf19   : > { %v3965_v39 = vpop.f32.mrf.mxu1  ;;  %v4078_v8 = vpop.f32.mrf.mxu0 }
 0xf1a   : > { %v3966_v14 = vadd.f32 %v3965_v39, %v9225_v35  ;;  %v4079_v21 = vadd.f32 %v4078_v8, %v9229_v11 }
 0xf1b   : > { %v3967_v7 = vpop.f32.mrf.mxu1  ;;  %v4080_v60 = vpop.f32.mrf.mxu0 }
 0xf1c   : > { %v3968_v25 = vadd.f32 %v3967_v7, %v9233_v13  ;;  %v4081_v52 = vadd.f32 %v4080_v60, %v9235_v5  ;;  %v4221_v16 = vmul.f32 0.70710677, %v3966_v14  ;;  %v4223_v43 = vmul.f32 0.70710677, %v4079_v21 }
 0xf1d   : > { %v3969_v53 = vpop.f32.mrf.mxu1  ;;  %v4082_v24 = vpop.f32.mrf.mxu0  ;;  %v9258_v0 = vmul.f32 0.5, %v3966_v14 }
 0xf1e   : > { %v3970_v62 = vadd.f32 %v3969_v53, %v9225_v35  ;;  %v4083_v10 = vadd.f32 %v4082_v24, %v9229_v11  ;;  %v4222_v19 = vmul.f32 0.70710677, %v3968_v25  ;;  %v4224_v29 = vmul.f32 0.70710677, %v4081_v52 }
 0xf1f   : > { %v3971_v2 = vpop.f32.mrf.mxu1  ;;  %v4084_v48 = vpop.f32.mrf.mxu0  ;;  %6851 = verf.f32 %v4221_v16  ;;  %v9268_v23 = vmul.f32 0.5, %v4081_v52 }
 0xf20   : > { %v4225_v17 = vmul.f32 0.70710677, %v3970_v62  ;;  %v3972_v45 = vadd.f32 %v3971_v2, %v9233_v13  ;;  %6853 = verf.f32 %v4223_v43  ;;  %v4227_v1 = vmul.f32 0.70710677, %v4083_v10 }
 0xf21   : > { %v3975_v44 = vpop.f32.mrf.mxu1  ;;  %v4088_v55 = vpop.f32.mrf.mxu0  ;;  %v4085_v28 = vadd.f32 %v4084_v48, %v9235_v5  ;;  %6855 = verf.f32 %v4222_v19  ;;  %v9275_v31 = vmul.f32 0.5, %v4083_v10 }
 0xf22   : > { %v3976_v37 = vadd.f32 %v3975_v44, %v9225_v35  ;;  %6857 = verf.f32 %v4224_v29  ;;  %v4226_v60 = vmul.f32 0.70710677, %v3972_v45  ;;  %v9253_v44 = vadd.f32 %v4088_v55, %v9229_v11 }
 0xf23   : > { %v3977_v59 = vpop.f32.mrf.mxu1  ;;  %v4090_v30 = vpop.f32.mrf.mxu0  ;;  %6859 = verf.f32 %v4225_v17  ;;  %v4228_v53 = vmul.f32 0.70710677, %v4085_v28  ;;  %v9260_v55 = vmul.f32 0.5, %v4079_v21  ;;  %v9280_v40 = vmul.f32 0.5, %v3972_v45 }
 0xf24   : > { %v3978_v8 = vadd.f32 %v3977_v59, %v9233_v13  ;;  %6861 = verf.f32 %v4227_v1  ;;  %v4229_v16 = vmul.f32 0.70710677, %v3976_v37  ;;  %v4091_v43 = vadd.f32 %v4090_v30, %v9235_v5 }
 0xf25   : > { %v3979_v41 = vpop.f32.mrf.mxu1  ;;  %v4092_v39 = vpop.f32.mrf.mxu0  ;;  %6863 = verf.f32 %v4226_v60  ;;  %v4231_v32 = vmul.f32 0.70710677, %v9253_v44  ;;  %v9263_v60 = vmul.f32 0.5, %v3968_v25  ;;  %v9282_v52 = vmul.f32 0.5, %v4085_v28 }
 0xf26   : > { %v4230_v29 = vmul.f32 0.70710677, %v3978_v8  ;;  %v3980_v17 = vadd.f32 %v3979_v41, %v9225_v35  ;;  %6865 = verf.f32 %v4228_v53  ;;  %v4232_v30 = vmul.f32 0.70710677, %v4091_v43 }
 0xf27   : > { %v3981_v58 = vpop.f32.mrf.mxu1  ;;  %v4094_v7 = vpop.f32.mrf.mxu0  ;;  %6867 = verf.f32 %v4229_v16  ;;  %v9289_v10 = vmul.f32 0.5, %v3978_v8  ;;  %v9292_v61 = vmul.f32 0.5, %v4091_v43 }
 0xf28   : > { %v3982_v48 = vadd.f32 %v3981_v58, %v9233_v13  ;;  %v9250_v19 = vadd.f32 %v4094_v7, %v9235_v5  ;;  %v4093_v58 = vadd.f32 %v4092_v39, %v9229_v11  ;;  %6869 = verf.f32 %v4230_v29 }
 0xf29   : > { %v3985_v24 = vpop.f32.mrf.mxu1  ;;  %v4098_v2 = vpop.f32.mrf.mxu0  ;;  %v4233_v41 = vmul.f32 0.70710677, %v3980_v17  ;;  %v9270_v39 = vmul.f32 0.5, %v3970_v62  ;;  %v9287_v62 = vmul.f32 0.5, %v3976_v37  ;;  %v9294_v9 = vmul.f32 0.5, %v3980_v17 }
 0xf2a   : > { %v4234_v1 = vmul.f32 0.70710677, %v3982_v48  ;;  %v4236_v18 = vmul.f32 0.70710677, %v9250_v19  ;;  %v4235_v25 = vmul.f32 0.70710677, %v4093_v58  ;;  %v9278_v29 = vadd.f32 %v3985_v24, %v9225_v35 }
 0xf2b   : > { %v3987_v59 = vpop.f32.mrf.mxu1  ;;  %v4100_v47 = vpop.f32.mrf.mxu0  ;;  %v9296_v45 = vmul.f32 0.5, %v4093_v58  ;;  %v9303_v27 = vmul.f32 0.5, %v3982_v48  ;;  %v4172_v48 = vmul.f32 0.5, %v9250_v19 }
 0xf2c   : > { %6871 = verf.f32 %v4234_v1  ;;  %v9266_v53 = vadd.f32 %v3987_v59, %v9233_v13  ;;  %v6852_v16 = vpop.eup %6851  ;;  %v9273_v14 = vadd.f32 %v4100_v47, %v9235_v5  ;;  %v4237_v37 = vmul.f32 0.70710677, %v9278_v29 }
 0xf2d   : > { %v3989_v22 = vpop.f32.mrf.mxu1  ;;  %v4102_v7 = vpop.f32.mrf.mxu0  ;;  %6873 = verf.f32 %v4236_v18  ;;  %v9285_v18 = vadd.f32 %v4098_v2, %v9229_v11  ;;  %v4349_v2 = vadd.f32 1.0, %v6852_v16 }
 0xf2e   : > { %v6854_v21 = vpop.eup %6853  ;;  %6875 = verf.f32 %v4232_v30  ;;  %v4238_v24 = vmul.f32 0.70710677, %v9266_v53  ;;  %v9301_v8 = vadd.f32 %v3989_v22, %v9225_v35  ;;  %v9307_v17 = vadd.f32 %v4102_v7, %v9229_v11 }
 0xf2f   : > { %v3991_v1 = vpop.f32.mrf.mxu1  ;;  %v4104_v59 = vpop.f32.mrf.mxu0  ;;  %6877 = verf.f32 %v4231_v32  ;;  %v4240_v32 = vmul.f32 0.70710677, %v9273_v14  ;;  %v4239_v43 = vmul.f32 0.70710677, %v9285_v18  ;;  %v4351_v42 = vadd.f32 1.0, %v6854_v21 }
 0xf30   : > { %v6856_v56 = vpop.eup %6855  ;;  %6879 = verf.f32 %v4233_v41  ;;  %v9310_v58 = vadd.f32 %v3991_v1, %v9233_v13  ;;  %v4241_v7 = vmul.f32 0.70710677, %v9301_v8 }
 0xf31   : > { %v6858_v47 = vpop.eup %6857  ;;  %6881 = verf.f32 %v4235_v25  ;;  %v3995_v41 = vpop.f32.mrf.mxu1  ;;  %v4350_v16 = vadd.f32 1.0, %v6856_v56  ;;  %v9313_v25 = vadd.f32 %v4104_v59, %v9235_v5  ;;  %v9321_v59 = vmul.f32 %v4349_v2, %v9258_v0 }
 0xf32   : > { %v6860_v30 = vpop.eup %6859  ;;  %v4108_v4 = vpop.f32.mrf.mxu0  ;;  %6883 = verf.f32 %v4238_v24  ;;  %v4352_v26 = vadd.f32 1.0, %v6858_v47  ;;  %v4242_v1 = vmul.f32 0.70710677, %v9310_v58  ;;  %v4243_v47 = vmul.f32 0.70710677, %v9307_v17 }
 0xf33   : > { %v6862_v28 = vpop.eup %6861  ;;  %v4353_v63 = vadd.f32 1.0, %v6860_v30  ;;  %6885 = verf.f32 %v4240_v32  ;;  %v3997_v38 = vpop.f32.mrf.mxu1  ;;  %v4244_v19 = vmul.f32 0.70710677, %v9313_v25  ;;  %v9326_v30 = vmul.f32 %v4351_v42, %v9260_v55 }
 0xf34   : > { %v6864_v22 = vpop.eup %6863  ;;  %v4355_v6 = vadd.f32 1.0, %v6862_v28  ;;  %6887 = verf.f32 %v4237_v37  ;;  %v4110_v21 = vpop.f32.mrf.mxu0  ;;  %v9329_v32 = vmul.f32 %v4350_v16, %v9263_v60  ;;  %v9332_v28 = vadd.f32 %v3995_v41, %v9225_v35 }
 0xf35   : > { %v6866_v57 = vpop.eup %6865  ;;  %6889 = verf.f32 %v4239_v43  ;;  %v9335_v0 = vmul.f32 %v4352_v26, %v9268_v23  ;;  %v9338_v2 = vmul.f32 %v4353_v63, %v9270_v39  ;;  %v9341_v43 = vadd.f32 %v4108_v4, %v9229_v11  ;;  %v3999_v41 = vpop.f32.mrf.mxu1 }
 0xf36   : > { %v9318_v56 = vpop.eup %6867  ;;  %6891 = verf.f32 %v4242_v1  ;;  %v9344_v55 = vmul.f32 %v4355_v6, %v9275_v31  ;;  %v4354_v60 = vadd.f32 1.0, %v6864_v22  ;;  %v9347_v16 = vmul.f32 0.5, %v9266_v53  ;;  %v4112_v1 = vpop.f32.mrf.mxu0 }
 0xf37   : > { %v6870_v24 = vpop.eup %6869  ;;  %6893 = verf.f32 %v4244_v19  ;;  %10086 = vst [vmem:[#allocation42_spill] sm:$0xff] %v9341_v43  ;;  %v4356_v23 = vadd.f32 1.0, %v6866_v57  ;;  %v4245_v63 = vmul.f32 0.70710677, %v9332_v28  ;;  %v4247_v19 = vmul.f32 0.70710677, %v9341_v43  ;;  %v4001_v36 = vpop.f32.mrf.mxu1 }
 0xf38   : > { %6895 = verf.f32 %v4241_v7  ;;  %v4358_v33 = vadd.f32 1.0, %v6870_v24  ;;  %v9352_v31 = vadd.f32 %v3997_v38, %v9233_v13  ;;  %v9355_v6 = vadd.f32 %v4110_v21, %v9235_v5 }
 0xf39   : > { %v6872_v37 = vpop.eup %6871  ;;  %6897 = verf.f32 %v4243_v47  ;;  %v4477_v22 = vpack.c.bf16 %v9338_v2, %v9321_v59  ;;  %v9360_v57 = vadd.f32 %v3999_v41, %v9225_v35  ;;  %v9363_v47 = vadd.f32 %v4112_v1, %v9229_v11 }
 0xf3a   : > { %v6874_v42 = vpop.eup %6873  ;;  %v4362_v4 = vadd.f32 1.0, %v6872_v37  ;;  %v4479_v24 = vpack.c.bf16 %v9344_v55, %v9326_v30  ;;  %v4418_v38 = vmul.f32 %v4354_v60, %v9280_v40  ;;  %v4246_v21 = vmul.f32 0.70710677, %v9352_v31 }
 0xf3b   : > { %v6876_v26 = vpop.eup %6875  ;;  %v4364_v7 = vadd.f32 1.0, %v6874_v42  ;;  %v4420_v43 = vmul.f32 %v4356_v23, %v9282_v52  ;;  %v4422_v59 = vmul.f32 %v4358_v33, %v9289_v10  ;;  %6899 = verf.f32 %v4245_v63  ;;  %v4114_v42 = vpop.f32.mrf.mxu0 }
 0xf3c   : > { %v6878_v39 = vpop.eup %6877  ;;  %v4360_v37 = vadd.f32 1.0, %v6876_v26  ;;  %v4248_v2 = vmul.f32 0.70710677, %v9355_v6  ;;  %v4426_v1 = vmul.f32 %v4362_v4, %v9303_v27  ;;  %6901 = verf.f32 %v4247_v19 }
 0xf3d   : > { %v6880_v53 = vpop.eup %6879  ;;  %v4249_v30 = vmul.f32 0.70710677, %v9360_v57  ;;  %v4428_v55 = vmul.f32 %v4364_v7, %v4172_v48  ;;  %6903 = verf.f32 %v4246_v21  ;;  %v4251_v60 = vmul.f32 0.70710677, %v9363_v47 }
 0xf3e   : > { %v6882_v20 = vpop.eup %6881  ;;  %v4361_v41 = vadd.f32 1.0, %v6880_v53  ;;  %v9376_v26 = vadd.f32 %v4001_v36, %v9233_v13  ;;  %v4424_v33 = vmul.f32 %v4360_v37, %v9292_v61  ;;  %6905 = verf.f32 %v4248_v2 }
 0xf3f   : > { %v6884_v40 = vpop.eup %6883  ;;  %v9380_v10 = vadd.f32 %v4114_v42, %v9235_v5  ;;  %v4478_v27 = vpack.c.bf16 %v4418_v38, %v9329_v32  ;;  %v4363_v63 = vadd.f32 1.0, %v6882_v20  ;;  %6907 = verf.f32 %v4249_v30 }
 0xf40   : > { %v6886_v52 = vpop.eup %6885  ;;  %v4250_v48 = vmul.f32 0.70710677, %v9376_v26  ;;  %v4480_v4 = vpack.c.bf16 %v4420_v43, %v9335_v0  ;;  %v4366_v53 = vadd.f32 1.0, %v6884_v40  ;;  %6909 = verf.f32 %v4251_v60 }
 0xf41   : > { %v6888_v23 = vpop.eup %6887  ;;  %v4252_v36 = vmul.f32 0.70710677, %v9380_v10  ;;  %4804 = vmatprep.mubr.bf16.mxu1 %v4478_v27  ;;  %v4482_v61 = vpack.c.bf16 %v4426_v1, %v4422_v59  ;;  %v4357_v37 = vadd.f32 1.0, %v9318_v56  ;;  %v4368_v21 = vadd.f32 1.0, %v6886_v52 }
 0xf42   : > { %v6890_v19 = vpop.eup %6889  ;;  %6911 = verf.f32 %v4250_v48  ;;  %4901 = vmatprep.mubr.bf16.mxu0 %v4480_v4  ;;  %4805 = vmatmul.mubr.bf16.vlgmr.msra.gmra.mxu1 %v4477_v22  ;;  %v4484_v20 = vpack.c.bf16 %v4428_v55, %v4424_v33  ;;  %v4359_v38 = vadd.f32 1.0, %v6878_v39  ;;  %v4178_v2 = vmul.f32 0.5, %v9310_v58 }
 0xf43   : > { %v6892_v7 = vpop.eup %6891  ;;  %6913 = verf.f32 %v4252_v36  ;;  %4902 = vmatmul.mubr.bf16.vlgmr.msra.gmra.mxu0 %v4479_v24  ;;  %4812 = vmatprep.mubr.bf16.mxu1 %v4482_v61  ;;  %v4425_v42 = vmul.f32 %v4361_v41, %v9294_v9  ;;  %v4176_v59 = vmul.f32 0.5, %v9273_v14  ;;  %v4180_v56 = vmul.f32 0.5, %v9313_v25 }
 0xf44   : > { %v6894_v32 = vpop.eup %6893  ;;  %v4370_v0 = vadd.f32 1.0, %v6892_v7  ;;  %4909 = vmatprep.mubr.bf16.mxu0 %v4484_v20  ;;  %6283 = vmatpush3.bf16.msra.mxu1 %v9136_v12  ;;  %v4167_v39 = vmul.f32 0.5, %v9253_v44  ;;  %v4427_v58 = vmul.f32 %v4363_v63, %v9296_v45  ;;  %v4430_v30 = vmul.f32 %v4366_v53, %v9347_v16 }
 0xf45   : > { %v6896_v43 = vpop.eup %6895  ;;  %v4372_v1 = vadd.f32 1.0, %v6894_v32  ;;  %6276 = vmatprep.subr.bf16.mxu1 %v9146_v3  ;;  %v4421_v9 = vmul.f32 %v4357_v37, %v9287_v62  ;;  %v4432_v41 = vmul.f32 %v4368_v21, %v4176_v59  ;;  %v4365_v16 = vadd.f32 1.0, %v6888_v23 }
 0xf46   : > { %v6898_v22 = vpop.eup %6897  ;;  %v4434_v24 = vmul.f32 %v4370_v0, %v4178_v2  ;;  %v4423_v40 = vmul.f32 %v4359_v38, %v4167_v39  ;;  %v4369_v60 = vadd.f32 1.0, %v6896_v43  ;;  %v4177_v3 = vmul.f32 0.5, %v9301_v8 }
 0xf47   : > { %v4436_v14 = vmul.f32 %v4372_v1, %v4180_v56  ;;  %v4481_v55 = vpack.c.bf16 %v4425_v42, %v4421_v9  ;;  %v4371_v33 = vadd.f32 1.0, %v6898_v22  ;;  %v4367_v27 = vadd.f32 1.0, %v6890_v19 }
 0xf48   : > { %v4486_v25 = vpack.c.bf16 %v4434_v24, %v4430_v30  ;;  %6284 = vmatpush3.bf16.msra.mxu1 %v9150_v34  ;;  %v6900_v12 = vpop.eup %6899  ;;  %v4483_v44 = vpack.c.bf16 %v4427_v58, %v4423_v40  ;;  %v4179_v63 = vmul.f32 0.5, %v9307_v17  ;;  %v4173_v4 = vmul.f32 0.5, %v9278_v29 }
 0xf49   : > { %v4488_v52 = vpack.c.bf16 %v4436_v14, %v4432_v41  ;;  %6277 = vmatprep.subr.bf16.mxu1 %v9156_v54  ;;  %v6902_v45 = vpop.eup %6901  ;;  %v4433_v34 = vmul.f32 %v4369_v60, %v4177_v3  ;;  %v4175_v54 = vmul.f32 0.5, %v9285_v18  ;;  %v4182_v7 = vmul.f32 0.5, %v9352_v31 }
 0xf4a   : > { %4813 = vmatmul.mubr.bf16.gmra.mxu1 %v4481_v55  ;;  %v6904_v62 = vpop.eup %6903  ;;  %v4435_v23 = vmul.f32 %v4371_v33, %v4179_v63  ;;  %v4429_v36 = vmul.f32 %v4365_v16, %v4173_v4  ;;  %v4184_v37 = vmul.f32 0.5, %v9355_v6  ;;  %v4188_v2 = vmul.f32 0.5, %v9380_v10 }
 0xf4b   : > { %4910 = vmatmul.mubr.bf16.gmra.mxu0 %v4483_v44  ;;  %4820 = vmatprep.mubr.bf16.mxu1 %v4486_v25  ;;  %v6906_v48 = vpop.eup %6905  ;;  %v4374_v19 = vadd.f32 1.0, %v6904_v62  ;;  %v4431_v17 = vmul.f32 %v4367_v27, %v4175_v54  ;;  %v4373_v31 = vadd.f32 1.0, %v6900_v12  ;;  %v4185_v59 = vmul.f32 0.5, %v9360_v57 }
 0xf4c   : > { %4917 = vmatprep.mubr.bf16.mxu0 %v4488_v52  ;;  %6285 = vmatpush3.bf16.msra.mxu1 %v9160_v50  ;;  %v6908_v53 = vpop.eup %6907  ;;  %v4376_v29 = vadd.f32 1.0, %v6906_v48  ;;  %v4485_v20 = vpack.c.bf16 %v4433_v34, %v4429_v36  ;;  %v4186_v50 = vmul.f32 0.5, %v9376_v26  ;;  %v4375_v1 = vadd.f32 1.0, %v6902_v45  ;;  %v10089_v45 = vld [vmem:[#allocation36_spill] sm:$0xff]  ;;  %v10090_v48 = vld [vmem:[#allocation38_spill] sm:$0xff] }
 0xf4d   : > { %6278 = vmatprep.subr.bf16.mxu1 %v9165_v15  ;;  %v6910_v8 = vpop.eup %6909  ;;  %v4377_v32 = vadd.f32 1.0, %v6908_v53  ;;  %v4487_v18 = vpack.c.bf16 %v4435_v23, %v4431_v17  ;;  %v4438_v6 = vmul.f32 %v4374_v19, %v4182_v7  ;;  %v4187_v22 = vmul.f32 0.5, %v9363_v47  ;;  %v10088_v47 = vld [vmem:[#allocation39_spill] sm:$0xff]  ;;  %v10091_v19 = vld [vmem:[#allocation41_spill] sm:$0xff] }
 0xf4e   : > { %v4379_v15 = vadd.f32 1.0, %v6910_v8  ;;  %v4440_v26 = vmul.f32 %v4376_v29, %v4184_v37  ;;  %v4181_v10 = vmul.f32 0.5, %v9332_v28  ;;  %v10092_v29 = vld [vmem:[#allocation43_spill] sm:$0xff] }
 0xf4f   : > { %v6912_v61 = vpop.eup %6911  ;;  %v4441_v30 = vmul.f32 %v4377_v32, %v4185_v59 }
 0xf50   : > { %v6914_v21 = vpop.eup %6913  ;;  %v4378_v38 = vadd.f32 1.0, %v6912_v61  ;;  %6286 = vmatpush3.bf16.msra.mxu1 %v9171_v51  ;;  %v4443_v41 = vmul.f32 %v4379_v15, %v4187_v22  ;;  %v4437_v55 = vmul.f32 %v4373_v31, %v4181_v10 }
 0xf51   : > { %v4380_v0 = vadd.f32 1.0, %v6914_v21  ;;  %6279 = vmatprep.subr.bf16.mxu1 %v9183_v49  ;;  %v10087_v49 = vld [vmem:[#allocation42_spill] sm:$0xff] }
 0xf52   : > { %v4442_v56 = vmul.f32 %v4378_v38, %v4186_v50  ;;  %4821 = vmatmul.mubr.bf16.gmra.mxu1 %v4485_v20  ;;  %v4183_v9 = vmul.f32 0.5, %v10087_v49  ;;  %v4489_v44 = vpack.c.bf16 %v4441_v30, %v4437_v55 }
 0xf53   : > { %v4444_v51 = vmul.f32 %v4380_v0, %v4188_v2  ;;  %4918 = vmatmul.mubr.bf16.gmra.mxu0 %v4487_v18  ;;  %v10093_v18 = vld [vmem:[#allocation40_spill] sm:$0xff] }
 0xf54   : > { %v4490_v24 = vpack.c.bf16 %v4442_v56, %v4438_v6  ;;  %6287 = vmatpush3.bf16.msra.mxu1 %v9186_v46  ;;  %v4439_v28 = vmul.f32 %v4375_v1, %v4183_v9 }
 0xf55   : > { %v4492_v57 = vpack.c.bf16 %v4444_v51, %v4440_v26  ;;  %6280 = vmatprep.subr.bf16.mxu1 %v10088_v47 }
 0xf56   : > { %4828 = vmatprep.mubr.bf16.mxu1 %v4490_v24  ;;  %v4491_v16 = vpack.c.bf16 %v4443_v41, %v4439_v28 }
 0xf57   : > { %4925 = vmatprep.mubr.bf16.mxu0 %v4492_v57 }
 0xf58   : > { %v4005_v43 = vpop.f32.mrf.mxu1  ;;  %v4118_v42 = vpop.f32.mrf.mxu0  ;;  %6288 = vmatpush3.bf16.msra.mxu1 %v10089_v45 }
 0xf59   : > { %v9417_v14 = vadd.f32 %v4005_v43, %v9225_v35  ;;  %v9421_v60 = vadd.f32 %v4118_v42, %v9229_v11  ;;  %6281 = vmatprep.subr.bf16.mxu1 %v10090_v48 }
 0xf5a   : > { %v4007_v39 = vpop.f32.mrf.mxu1  ;;  %v4120_v58 = vpop.f32.mrf.mxu0  ;;  %4829 = vmatmul.mubr.bf16.gmra.mxu1 %v4489_v44 }
 0xf5b   : > { %v9424_v46 = vadd.f32 %v4007_v39, %v9233_v13  ;;  %v9427_v33 = vadd.f32 %v4120_v58, %v9235_v5  ;;  %v4253_v3 = vmul.f32 0.70710677, %v9417_v14  ;;  %v4255_v4 = vmul.f32 0.70710677, %v9421_v60  ;;  %4926 = vmatmul.mubr.bf16.gmra.mxu0 %v4491_v16 }
 0xf5c   : > { %v4009_v40 = vpop.f32.mrf.mxu1  ;;  %v4122_v25 = vpop.f32.mrf.mxu0  ;;  %6289 = vmatpush3.bf16.msra.mxu1 %v10091_v19 }
 0xf5d   : > { %v9432_v62 = vadd.f32 %v4009_v40, %v9225_v35  ;;  %v4254_v34 = vmul.f32 0.70710677, %v9424_v46  ;;  %v9438_v53 = vadd.f32 %v4122_v25, %v9229_v11  ;;  %v4256_v8 = vmul.f32 0.70710677, %v9427_v33  ;;  %6282 = vmatprep.subr.bf16.mxu1 %v10092_v29 }
 0xf5e   : > { %v4011_v52 = vpop.f32.mrf.mxu1  ;;  %v4124_v12 = vpop.f32.mrf.mxu0  ;;  %6915 = verf.f32 %v4253_v3  ;;  %v4190_v44 = vmul.f32 0.5, %v9424_v46  ;;  %v4192_v45 = vmul.f32 0.5, %v9427_v33 }
 0xf5f   : > { %v9442_v36 = vadd.f32 %v4011_v52, %v9233_v13  ;;  %v4257_v61 = vmul.f32 0.70710677, %v9432_v62  ;;  %v4125_v17 = vadd.f32 %v4124_v12, %v9235_v5  ;;  %6917 = verf.f32 %v4255_v4 }
 0xf60   : > { %v4015_v27 = vpop.f32.mrf.mxu1  ;;  %v4128_v63 = vpop.f32.mrf.mxu0  ;;  %6919 = verf.f32 %v4254_v34  ;;  %v4259_v20 = vmul.f32 0.70710677, %v9438_v53  ;;  %6290 = vmatpush3.bf16.msra.mxu1 %v10093_v18  ;;  %v4189_v52 = vmul.f32 0.5, %v9417_v14  ;;  %v4191_v12 = vmul.f32 0.5, %v9421_v60 }
 0xf61   : > { %v4016_v21 = vadd.f32 %v4015_v27, %v9225_v35  ;;  %6921 = verf.f32 %v4256_v8  ;;  %v4258_v38 = vmul.f32 0.70710677, %v9442_v36  ;;  %v4260_v15 = vmul.f32 0.70710677, %v4125_v17 }
 0xf62   : > { %v4017_v54 = vpop.f32.mrf.mxu1  ;;  %v4130_v23 = vpop.f32.mrf.mxu0  ;;  %6923 = verf.f32 %v4257_v61  ;;  %v4129_v30 = vadd.f32 %v4128_v63, %v9229_v11  ;;  %v4193_v27 = vmul.f32 0.5, %v9432_v62  ;;  %v4195_v63 = vmul.f32 0.5, %v9438_v53 }
 0xf63   : > { %v4018_v2 = vadd.f32 %v4017_v54, %v9233_v13  ;;  %v4261_v0 = vmul.f32 0.70710677, %v4016_v21  ;;  %v4131_v43 = vadd.f32 %v4130_v23, %v9235_v5  ;;  %6925 = verf.f32 %v4259_v20 }
 0xf64   : > { %v4019_v7 = vpop.f32.mrf.mxu1  ;;  %v4132_v37 = vpop.f32.mrf.mxu0  ;;  %6927 = verf.f32 %v4258_v38  ;;  %v4263_v55 = vmul.f32 0.70710677, %v4129_v30  ;;  %v4194_v34 = vmul.f32 0.5, %v9442_v36  ;;  %v4196_v14 = vmul.f32 0.5, %v4125_v17 }
 0xf65   : > { %v4020_v6 = vadd.f32 %v4019_v7, %v9225_v35  ;;  %6929 = verf.f32 %v4260_v15  ;;  %v4262_v26 = vmul.f32 0.70710677, %v4018_v2  ;;  %v4133_v22 = vadd.f32 %v4132_v37, %v9229_v11 }
 0xf66   : > { %v4021_v32 = vpop.f32.mrf.mxu1  ;;  %v4134_v50 = vpop.f32.mrf.mxu0  ;;  %6931 = verf.f32 %v4261_v0  ;;  %v4264_v39 = vmul.f32 0.70710677, %v4131_v43  ;;  %v9480_v54 = vmul.f32 0.5, %v4016_v21  ;;  %v9483_v33 = vmul.f32 0.5, %v4129_v30 }
 0xf67   : > { %v9455_v42 = vadd.f32 %v4021_v32, %v9233_v13  ;;  %v9458_v31 = vadd.f32 %v4134_v50, %v9235_v5  ;;  %v4265_v24 = vmul.f32 0.70710677, %v4020_v6  ;;  %v4267_v41 = vmul.f32 0.70710677, %v4133_v22 }
 0xf68   : > { %v9485_v23 = vmul.f32 0.5, %v4018_v2  ;;  %v9490_v61 = vmul.f32 0.5, %v4131_v43  ;;  %v9492_v36 = vmul.f32 0.5, %v4020_v6  ;;  %v9496_v37 = vmul.f32 0.5, %v4133_v22 }
 0xf69   : > { %v4266_v59 = vmul.f32 0.70710677, %v9455_v42  ;;  %v4268_v51 = vmul.f32 0.70710677, %v9458_v31  ;;  %v4202_v22 = vmul.f32 0.5, %v9455_v42 }
 0xf6b   : > { %v4025_v56 = vpop.f32.mrf.mxu1  ;;  %v4138_v1 = vpop.f32.mrf.mxu0  ;;  %6933 = verf.f32 %v4266_v59 }
 0xf6c   : > { %6935 = verf.f32 %v4268_v51  ;;  %v6916_v57 = vpop.eup %6915  ;;  %v9488_v62 = vadd.f32 %v4025_v56, %v9225_v35  ;;  %v9499_v29 = vadd.f32 %v4138_v1, %v9229_v11  ;;  %v4204_v51 = vmul.f32 0.5, %v9458_v31 }
 0xf6d   : > { %v4027_v58 = vpop.f32.mrf.mxu1  ;;  %v4140_v10 = vpop.f32.mrf.mxu0  ;;  %6937 = verf.f32 %v4262_v26  ;;  %v4381_v8 = vadd.f32 1.0, %v6916_v57 }
 0xf6e   : > { %6939 = verf.f32 %v4264_v39  ;;  %v9468_v40 = vadd.f32 %v4027_v58, %v9233_v13  ;;  %v6918_v47 = vpop.eup %6917  ;;  %v4269_v43 = vmul.f32 0.70710677, %v9488_v62  ;;  %v9507_v6 = vadd.f32 %v4140_v10, %v9235_v5 }
 0xf6f   : > { %v4029_v49 = vpop.f32.mrf.mxu1  ;;  %v9465_v9 = vpop.f32.mrf.mxu0  ;;  %6941 = verf.f32 %v4265_v24  ;;  %v4383_v19 = vadd.f32 1.0, %v6918_v47  ;;  %v9510_v1 = vmul.f32 %v4381_v8, %v4189_v52 }
 0xf70   : > { %v6920_v28 = vpop.eup %6919  ;;  %6943 = verf.f32 %v4267_v41  ;;  %v9477_v48 = vadd.f32 %v4029_v49, %v9225_v35  ;;  %v4270_v60 = vmul.f32 0.70710677, %v9468_v40 }
 0xf71   : > { %v4031_v25 = vpop.f32.mrf.mxu1  ;;  %v4144_v16 = vpop.f32.mrf.mxu0  ;;  %6945 = verf.f32 %v4263_v55  ;;  %v4382_v50 = vadd.f32 1.0, %v6920_v28  ;;  %v9512_v26 = vmul.f32 %v4383_v19, %v4191_v12  ;;  %v4272_v28 = vmul.f32 0.70710677, %v9507_v6 }
 0xf72   : > { %v6922_v3 = vpop.eup %6921  ;;  %v4273_v21 = vmul.f32 0.70710677, %v9477_v48  ;;  %v9503_v20 = vadd.f32 %v4031_v25, %v9233_v13  ;;  %6947 = verf.f32 %v4270_v60  ;;  %v9519_v10 = vadd.f32 %v4144_v16, %v9235_v5 }
 0xf73   : > { %v6924_v4 = vpop.eup %6923  ;;  %v4035_v46 = vpop.f32.mrf.mxu1  ;;  %v4384_v38 = vadd.f32 1.0, %v6922_v3  ;;  %v4446_v41 = vmul.f32 %v4382_v50, %v4190_v44  ;;  %v9522_v25 = vmul.f32 0.70710677, %v9499_v29 }
 0xf74   : > { %v6926_v53 = vpop.eup %6925  ;;  %v9494_v17 = vpop.f32.mrf.mxu0  ;;  %v4385_v18 = vadd.f32 1.0, %v6924_v4  ;;  %v4274_v59 = vmul.f32 0.70710677, %v9503_v20  ;;  %6949 = verf.f32 %v4273_v21  ;;  %v9526_v16 = vadd.f32 %v4035_v46, %v9225_v35 }
 0xf75   : > { %v6928_v7 = vpop.eup %6927  ;;  %v4037_v15 = vpop.f32.mrf.mxu1  ;;  %v4387_v0 = vadd.f32 1.0, %v6926_v53  ;;  %v4448_v55 = vmul.f32 %v4384_v38, %v4192_v45  ;;  %v4276_v53 = vmul.f32 0.70710677, %v9519_v10 }
 0xf76   : > { %v6930_v32 = vpop.eup %6929  ;;  %v9516_v39 = vpop.f32.mrf.mxu0  ;;  %v4386_v30 = vadd.f32 1.0, %v6928_v7  ;;  %v4449_v57 = vmul.f32 %v4385_v18, %v4193_v27  ;;  %6951 = verf.f32 %v4274_v59  ;;  %v9529_v44 = vadd.f32 %v4037_v15, %v9233_v13 }
 0xf77   : > { %v6932_v2 = vpop.eup %6931  ;;  %v4388_v24 = vadd.f32 1.0, %v6930_v32  ;;  %v4039_v47 = vpop.f32.mrf.mxu1  ;;  %v4451_v31 = vmul.f32 %v4387_v0, %v4195_v63  ;;  %6953 = verf.f32 %v4269_v43  ;;  %v9540_v32 = vadd.f32 %v9465_v9, %v9229_v11 }
 0xf78   : > { %v6934_v56 = vpop.eup %6933  ;;  %v9531_v27 = vpop.f32.mrf.mxu0  ;;  %v4450_v4 = vmul.f32 %v4386_v30, %v4194_v34  ;;  %v9535_v45 = vadd.f32 %v4039_v47, %v9225_v35  ;;  %v4493_v8 = vpack.c.bf16 %v4449_v57, %v9510_v1  ;;  %v4389_v19 = vadd.f32 1.0, %v6932_v2 }
 0xf79   : > { %v6936_v58 = vpop.eup %6935  ;;  %v4394_v12 = vadd.f32 1.0, %v6934_v56  ;;  %v4452_v60 = vmul.f32 %v4388_v24, %v4196_v14  ;;  %6955 = verf.f32 %v4272_v28  ;;  %v4278_v34 = vmul.f32 0.70710677, %v9529_v44  ;;  %v4041_v15 = vpop.f32.mrf.mxu1 }
 0xf7a   : > { %v6938_v49 = vpop.eup %6937  ;;  %v4396_v3 = vadd.f32 1.0, %v6936_v58  ;;  %v4277_v35 = vmul.f32 0.70710677, %v9526_v16  ;;  %v4281_v18 = vmul.f32 0.70710677, %v9535_v45  ;;  %v4154_v0 = vpop.f32.mrf.mxu0  ;;  %6957 = verf.f32 %v4276_v53 }
 0xf7b   : > { %v6940_v42 = vpop.eup %6939  ;;  %v4390_v7 = vadd.f32 1.0, %v6938_v49  ;;  %v4458_v50 = vmul.f32 %v4394_v12, %v4202_v22  ;;  %v4494_v43 = vpack.c.bf16 %v4450_v4, %v4446_v41  ;;  %v4496_v59 = vpack.c.bf16 %v4452_v60, %v4448_v55 }
 0xf7c   : > { %v6942_v52 = vpop.eup %6941  ;;  %v4392_v21 = vadd.f32 1.0, %v6940_v42  ;;  %v4460_v38 = vmul.f32 %v4396_v3, %v4204_v51  ;;  %v4495_v56 = vpack.c.bf16 %v4451_v31, %v9512_v26  ;;  %6959 = verf.f32 %v4281_v18 }
 0xf7d   : > { %v6944_v63 = vpop.eup %6943  ;;  %v4393_v46 = vadd.f32 1.0, %v6942_v52  ;;  %v4454_v9 = vmul.f32 %v4390_v7, %v9485_v23  ;;  %6961 = verf.f32 %v4278_v34  ;;  %4836 = vmatprep.mubr.bf16.mxu1 %v4494_v43  ;;  %4933 = vmatprep.mubr.bf16.mxu0 %v4496_v59  ;;  %v9549_v51 = vadd.f32 %v4041_v15, %v9233_v13 }
 0xf7e   : > { %v6946_v14 = vpop.eup %6945  ;;  %v4395_v2 = vadd.f32 1.0, %v6944_v63  ;;  %v4456_v1 = vmul.f32 %v4392_v21, %v9490_v61  ;;  %v9552_v30 = vadd.f32 %v4154_v0, %v9235_v5  ;;  %6963 = verf.f32 %v4277_v35  ;;  %4837 = vmatmul.mubr.bf16.gmra.mxu1 %v4493_v8  ;;  %4934 = vmatmul.mubr.bf16.gmra.mxu0 %v4495_v56 }
 0xf7f   : > { %v6948_v58 = vpop.eup %6947  ;;  %v4391_v22 = vadd.f32 1.0, %v6946_v14  ;;  %v4457_v24 = vmul.f32 %v4393_v46, %v9492_v36  ;;  %v4498_v23 = vpack.c.bf16 %v4458_v50, %v4454_v9  ;;  %v4275_v49 = vmul.f32 0.70710677, %v9540_v32 }
 0xf80   : > { %v4500_v26 = vpack.c.bf16 %v4460_v38, %v4456_v1  ;;  %v4459_v61 = vmul.f32 %v4395_v2, %v9496_v37  ;;  %v9559_v41 = vadd.f32 %v9516_v39, %v9235_v5  ;;  %v4282_v13 = vmul.f32 0.70710677, %v9549_v51 }
 0xf81   : > { %v6950_v57 = vpop.eup %6949  ;;  %v4398_v47 = vadd.f32 1.0, %v6948_v58  ;;  %4844 = vmatprep.mubr.bf16.mxu1 %v4498_v23  ;;  %v4453_v42 = vmul.f32 %v4389_v19, %v9480_v54  ;;  %v4455_v55 = vmul.f32 %v4391_v22, %v9483_v33  ;;  %v4284_v37 = vmul.f32 0.70710677, %v9552_v30 }
 0xf82   : > { %4941 = vmatprep.mubr.bf16.mxu0 %v4500_v26  ;;  %6965 = verf.f32 %v4282_v13  ;;  %v4206_v5 = vmul.f32 0.5, %v9468_v40  ;;  %v4210_v39 = vmul.f32 0.5, %v9503_v20  ;;  %v4280_v3 = vmul.f32 0.70710677, %v9559_v41 }
 0xf83   : > { %v6952_v36 = vpop.eup %6951  ;;  %6967 = verf.f32 %v9522_v25  ;;  %v4497_v52 = vpack.c.bf16 %v4457_v24, %v4453_v42  ;;  %v4499_v12 = vpack.c.bf16 %v4459_v61, %v4455_v55  ;;  %v4401_v54 = vadd.f32 1.0, %v6950_v57 }
 0xf84   : > { %v6954_v31 = vpop.eup %6953  ;;  %v4402_v28 = vadd.f32 1.0, %v6952_v36  ;;  %6969 = verf.f32 %v4275_v49  ;;  %v4462_v4 = vmul.f32 %v4398_v47, %v4206_v5  ;;  %v9571_v33 = vadd.f32 %v9531_v27, %v9229_v11 }
 0xf85   : > { %6971 = verf.f32 %v4284_v37  ;;  %v4397_v25 = vadd.f32 1.0, %v6954_v31  ;;  %v4209_v40 = vmul.f32 0.5, %v9477_v48  ;;  %v9576_v20 = vadd.f32 %v9494_v17, %v9229_v11 }
 0xf86   : > { %v4466_v60 = vmul.f32 %v4402_v28, %v4210_v39  ;;  %v6956_v53 = vpop.eup %6955  ;;  %4845 = vmatmul.mubr.bf16.gmra.mxu1 %v4497_v52  ;;  %4942 = vmatmul.mubr.bf16.gmra.mxu0 %v4499_v12  ;;  %6973 = verf.f32 %v4280_v3  ;;  %v4205_v19 = vmul.f32 0.5, %v9488_v62  ;;  %v4283_v27 = vmul.f32 0.70710677, %v9571_v33 }
 0xf87   : > { %v6958_v8 = vpop.eup %6957  ;;  %v4465_v7 = vmul.f32 %v4401_v54, %v4209_v40  ;;  %v4279_v48 = vmul.f32 0.70710677, %v9576_v20  ;;  %v4212_v18 = vmul.f32 0.5, %v9519_v10  ;;  %v4217_v62 = vmul.f32 0.5, %v9535_v45 }
 0xf88   : > { %v4502_v63 = vpack.c.bf16 %v4466_v60, %v4462_v4  ;;  %v4461_v34 = vmul.f32 %v4397_v25, %v4205_v19  ;;  %6975 = verf.f32 %v4283_v27  ;;  %v4404_v17 = vadd.f32 1.0, %v6958_v8 }
 0xf89   : > { %v6960_v21 = vpop.eup %6959  ;;  %6977 = verf.f32 %v4279_v48  ;;  %v4400_v2 = vadd.f32 1.0, %v6956_v53  ;;  %v4214_v43 = vmul.f32 0.5, %v9529_v44  ;;  %v4218_v59 = vmul.f32 0.5, %v9549_v51 }
 0xf8a   : > { %4852 = vmatprep.mubr.bf16.mxu1 %v4502_v63  ;;  %v6962_v46 = vpop.eup %6961  ;;  %v4501_v50 = vpack.c.bf16 %v4465_v7, %v4461_v34  ;;  %v4409_v11 = vadd.f32 1.0, %v6960_v21  ;;  %v4213_v1 = vmul.f32 0.5, %v9526_v16  ;;  %v4208_v22 = vmul.f32 0.5, %v9507_v6  ;;  %v9596_v63 = vld [vmem:[%s9896_s10] ss:$0 sm:$0xff] }
 0xf8b   : > { %v6964_v14 = vpop.eup %6963  ;;  %v4406_v38 = vadd.f32 1.0, %v6962_v46  ;;  %v4468_v24 = vmul.f32 %v4404_v17, %v4212_v18  ;;  %v4211_v42 = vmul.f32 0.5, %v9540_v32  ;;  %v4220_v6 = vmul.f32 0.5, %v9552_v30 }
 0xf8c   : > { %v4405_v15 = vadd.f32 1.0, %v6964_v14  ;;  %v4473_v58 = vmul.f32 %v4409_v11, %v4217_v62  ;;  %v4464_v45 = vmul.f32 %v4400_v2, %v4208_v22  ;;  %v4207_v55 = vmul.f32 0.5, %v9499_v29 }
 0xf8d   : > { %v4470_v10 = vmul.f32 %v4406_v38, %v4214_v43  ;;  %v4216_v5 = vmul.f32 0.5, %v9559_v41  ;;  %v4219_v32 = vmul.f32 0.5, %v9571_v33  ;;  %v4215_v30 = vmul.f32 0.5, %v9576_v20 }
 0xf8e   : > { %4853 = vmatmul.mubr.bf16.gmra.mxu1 %v4501_v50  ;;  %v4469_v61 = vmul.f32 %v4405_v15, %v4213_v1  ;;  %v4504_v51 = vpack.c.bf16 %v4468_v24, %v4464_v45  ;;  %v10095_v1 = vld [vmem:[#allocation31_spill] sm:$0xff] }
 0xf8f   : > { %v6966_v35 = vpop.eup %6965 }
 0xf90   : > { %v6968_v0 = vpop.eup %6967  ;;  %v4410_v56 = vadd.f32 1.0, %v6966_v35  ;;  %v4505_v47 = vpack.c.bf16 %v4473_v58, %v4469_v61  ;;  %v10094_v35 = vld [vmem:[#allocation30_spill] sm:$0xff] }
 0xf91   : > { %v6970_v9 = vpop.eup %6969  ;;  %v4399_v36 = vadd.f32 1.0, %v6968_v0 }
 0xf92   : > { %v4474_v23 = vmul.f32 %v4410_v56, %v4218_v59  ;;  %v6972_v26 = vpop.eup %6971  ;;  %v4403_v57 = vadd.f32 1.0, %v6970_v9 }
 0xf93   : > { %v6974_v13 = vpop.eup %6973  ;;  %v4412_v44 = vadd.f32 1.0, %v6972_v26  ;;  %v4463_v28 = vmul.f32 %v4399_v36, %v4207_v55 }
 0xf94   : > { %v4506_v49 = vpack.c.bf16 %v4474_v23, %v4470_v10  ;;  %v4408_v16 = vadd.f32 1.0, %v6974_v13  ;;  %v4467_v37 = vmul.f32 %v4403_v57, %v4211_v42  ;;  %v10096_v13 = vld [vmem:[#allocation33_spill] sm:$0xff] }
 0xf95   : > { %v6976_v31 = vpop.eup %6975  ;;  %v4476_v39 = vmul.f32 %v4412_v44, %v4220_v6 }
 0xf96   : > { %4860 = vmatprep.mubr.bf16.mxu1 %v4506_v49  ;;  %v6978_v52 = vpop.eup %6977  ;;  %v4472_v12 = vmul.f32 %v4408_v16, %v4216_v5  ;;  %v4503_v3 = vpack.c.bf16 %v4467_v37, %v4463_v28  ;;  %v4411_v4 = vadd.f32 1.0, %v6976_v31  ;;  %v10097_v37 = vld [vmem:[#allocation32_spill] sm:$0xff] }
 0xf97   : > { %4861 = vmatmul.mubr.bf16.gmra.mxu1 %v4505_v47  ;;  %v4407_v60 = vadd.f32 1.0, %v6978_v52 }
 0xf98   : > { %4949 = vmatprep.mubr.bf16.mxu1 %v4504_v51  ;;  %v4508_v54 = vpack.c.bf16 %v4476_v39, %v4472_v12  ;;  %v4475_v53 = vmul.f32 %v4411_v4, %v4219_v32 }
 0xf99   : > { %v4471_v29 = vmul.f32 %v4407_v60, %v4215_v30  ;;  %v10098_v60 = vld [vmem:[#allocation21_spill] sm:$0xff] }
 0xf9b   : > { %v4507_v25 = vpack.c.bf16 %v4475_v53, %v4471_v29 }
 0xf9f   : > { %4950 = vmatmul.mubr.bf16.vlgmr.msra.gmra.mxu1 %v4503_v3 }
 0xfa0   : > { %4957 = vmatprep.mubr.bf16.mxu1 %v4508_v54 }
 0xfa7   : > { %4958 = vmatmul.mubr.bf16.gmra.mxu1 %v4507_v25 }
0x1002   : > { %v5843_v40 = vpop.f32.mrf.mxu1 }
0x1003   : > { %v5907_v41 = vpop.f32.mrf.mxu0 }
0x1004   : > { %v5844_v8 = vpop.f32.mrf.mxu1 }
0x1005   : > { %v5845_v19 = vadd.f32 %v5844_v8, %v5843_v40  ;;  %v5908_v7 = vpop.f32.mrf.mxu0 }
0x1006   : > { %v5846_v27 = vpop.f32.mrf.mxu1  ;;  %v5909_v21 = vadd.f32 %v5908_v7, %v5907_v41  ;;  %v10099_v7 = vld [vmem:[#allocation24_spill] sm:$0xff] }
0x1007   : > { %v4807_v33 = vadd.f32 %v5845_v19, %v9596_v63  ;;  %v5910_v46 = vpop.f32.mrf.mxu0 }
0x1008   : > { %v5847_v20 = vpop.f32.mrf.mxu1 }
0x1009   : > { %v4904_v34 = vadd.f32 %v5909_v21, %v4807_v33  ;;  %v5848_v48 = vadd.f32 %v5847_v20, %v5846_v27  ;;  %v5911_v14 = vpop.f32.mrf.mxu0 }
0x100a   : > { %v5849_v50 = vpop.f32.mrf.mxu1  ;;  %v5912_v17 = vadd.f32 %v5911_v14, %v5910_v46  ;;  %v10100_v14 = vld [vmem:[#allocation26_spill] sm:$0xff] }
0x100b   : > { %v4810_v11 = vadd.f32 %v5848_v48, %v9596_v63  ;;  %v5913_v38 = vpop.f32.mrf.mxu0  ;;  %v9601_v18 = vadd.f32 %v4904_v34, %v10094_v35 }
0x100c   : > { %v5850_v15 = vpop.f32.mrf.mxu1 }
0x100d   : > { %v4907_v62 = vadd.f32 %v5912_v17, %v4810_v11  ;;  %v5851_v0 = vadd.f32 %v5850_v15, %v5849_v50  ;;  %v5914_v2 = vpop.f32.mrf.mxu0  ;;  %4984 = vadd.xlane.f32.xlu0 %v9601_v18  ;;  %v10101_v17 = vld [vmem:[#allocation25_spill] sm:$0xff] }
0x100e   : > { %v5852_v43 = vpop.f32.mrf.mxu1  ;;  %v5915_v56 = vadd.f32 %v5914_v2, %v5913_v38 }
0x100f   : > { %v4815_v59 = vadd.f32 %v5851_v0, %v9596_v63  ;;  %v5916_v9 = vpop.f32.mrf.mxu0  ;;  %v9606_v58 = vadd.f32 %v4907_v62, %v10095_v1 }
0x1010   : > { %v5853_v22 = vpop.f32.mrf.mxu1 }
0x1011   : > { %v4912_v24 = vadd.f32 %v5915_v56, %v4815_v59  ;;  %v5854_v10 = vadd.f32 %v5853_v22, %v5852_v43  ;;  %v5917_v23 = vpop.f32.mrf.mxu0  ;;  %4986 = vadd.xlane.f32.xlu1 %v9606_v58 }
0x1012   : > { %v5855_v26 = vpop.f32.mrf.mxu1  ;;  %v5918_v45 = vadd.f32 %v5917_v23, %v5916_v9 }
0x1013   : > { %v4818_v61 = vadd.f32 %v5854_v10, %v9596_v63  ;;  %v5919_v49 = vpop.f32.mrf.mxu0  ;;  %v9611_v57 = vadd.f32 %v4912_v24, %v10096_v13 }
0x1014   : > { %v5856_v47 = vpop.f32.mrf.mxu1 }
0x1015   : > { %v4915_v44 = vadd.f32 %v5918_v45, %v4818_v61  ;;  %v5857_v51 = vadd.f32 %v5856_v47, %v5855_v26  ;;  %v5920_v36 = vpop.f32.mrf.mxu0  ;;  %4988 = vadd.xlane.f32.xlu0 %v9611_v57 }
0x1016   : > { %v5858_v42 = vpop.f32.mrf.mxu1  ;;  %v5921_v6 = vadd.f32 %v5920_v36, %v5919_v49  ;;  %v10102_v49 = vld [vmem:[#allocation34_spill] sm:$0xff] }
0x1017   : > { %v4823_v16 = vadd.f32 %v5857_v51, %v9596_v63  ;;  %v5922_v55 = vpop.f32.mrf.mxu0  ;;  %v9616_v31 = vadd.f32 %v4915_v44, %v10097_v37  ;;  %v10103_v37 = vld [vmem:[#allocation23_spill] sm:$0xff] }
0x1018   : > { %v5859_v5 = vpop.f32.mrf.mxu1 }
0x1019   : > { %v4920_v39 = vadd.f32 %v5921_v6, %v4823_v16  ;;  %v5860_v28 = vadd.f32 %v5859_v5, %v5858_v42  ;;  %v5923_v52 = vpop.f32.mrf.mxu0  ;;  %4990 = vadd.xlane.f32.xlu1 %v9616_v31 }
0x101a   : > { %v5861_v12 = vpop.f32.mrf.mxu1  ;;  %v5924_v4 = vadd.f32 %v5923_v52, %v5922_v55 }
0x101b   : > { %v4826_v3 = vadd.f32 %v5860_v28, %v9596_v63  ;;  %v5925_v54 = vpop.f32.mrf.mxu0  ;;  %v9621_v32 = vadd.f32 %v4920_v39, %v10098_v60  ;;  %v10104_v60 = vld [vmem:[#allocation35_spill] sm:$0xff] }
0x101c   : > { %v5862_v30 = vpop.f32.mrf.mxu1 }
0x101d   : > { %v4923_v53 = vadd.f32 %v5924_v4, %v4826_v3  ;;  %v5863_v29 = vadd.f32 %v5862_v30, %v5861_v12  ;;  %v5926_v25 = vpop.f32.mrf.mxu0  ;;  %4992 = vadd.xlane.f32.xlu0 %v9621_v32 }
0x101e   : > { %v5864_v40 = vpop.f32.mrf.mxu1  ;;  %v5927_v8 = vadd.f32 %v5926_v25, %v5925_v54 }
0x101f   : > { %v4831_v41 = vadd.f32 %v5863_v29, %v9596_v63  ;;  %v5928_v19 = vpop.f32.mrf.mxu0  ;;  %v9626_v27 = vadd.f32 %v4923_v53, %v10099_v7 }
0x1020   : > { %v5865_v33 = vpop.f32.mrf.mxu1 }
0x1021   : > { %v4928_v21 = vadd.f32 %v5927_v8, %v4831_v41  ;;  %v5866_v46 = vadd.f32 %v5865_v33, %v5864_v40  ;;  %v5929_v20 = vpop.f32.mrf.mxu0  ;;  %4994 = vadd.xlane.f32.xlu1 %v9626_v27  ;;  %v10105_v40 = vld [vmem:[#allocation22_spill] sm:$0xff] }
0x1022   : > { %v5930_v48 = vadd.f32 %v5929_v20, %v5928_v19 }
0x1023   : > { %v4834_v34 = vadd.f32 %v5866_v46, %v9596_v63  ;;  %v9631_v50 = vadd.f32 %v4928_v21, %v10100_v14 }
0x1025   : > { %v4931_v11 = vadd.f32 %v5930_v48, %v4834_v34  ;;  %4996 = vadd.xlane.f32.xlu0 %v9631_v50 }
0x1027   : > { %v9635_v38 = vadd.f32 %v4931_v11, %v10101_v17 }
0x1029   : > { %4998 = vadd.xlane.f32.xlu1 %v9635_v38 }
0x103e   : > { %v5867_v35 = vpop.f32.mrf.mxu1  ;;  %v5931_v15 = vpop.f32.mrf.mxu0 }
0x1040   : > { %v5868_v62 = vpop.f32.mrf.mxu1  ;;  %v5932_v0 = vpop.f32.mrf.mxu0 }
0x1041   : > { %v5869_v2 = vadd.f32 %v5868_v62, %v5867_v35  ;;  %v5933_v9 = vadd.f32 %v5932_v0, %v5931_v15 }
0x1042   : > { %v5870_v43 = vpop.f32.mrf.mxu1  ;;  %v5934_v59 = vpop.f32.mrf.mxu0 }
0x1043   : > { %v4839_v56 = vadd.f32 %v5869_v2, %v9596_v63 }
0x1044   : > { %v5871_v1 = vpop.f32.mrf.mxu1  ;;  %v5935_v22 = vpop.f32.mrf.mxu0 }
0x1045   : > { %v4936_v24 = vadd.f32 %v5933_v9, %v4839_v56  ;;  %v5872_v10 = vadd.f32 %v5871_v1, %v5870_v43  ;;  %v5936_v45 = vadd.f32 %v5935_v22, %v5934_v59  ;;  %v10106_v43 = vld [vmem:[#allocation27_spill] sm:$0xff] }
0x1046   : > { %v5873_v23 = vpop.f32.mrf.mxu1  ;;  %v5937_v26 = vpop.f32.mrf.mxu0 }
0x1047   : > { %v4842_v61 = vadd.f32 %v5872_v10, %v9596_v63  ;;  %v9641_v13 = vadd.f32 %v4936_v24, %v10102_v49 }
0x1048   : > { %v5874_v47 = vpop.f32.mrf.mxu1  ;;  %v5938_v44 = vpop.f32.mrf.mxu0 }
0x1049   : > { %v4939_v51 = vadd.f32 %v5936_v45, %v4842_v61  ;;  %v5875_v36 = vadd.f32 %v5874_v47, %v5873_v23  ;;  %5000 = vadd.xlane.f32.xlu0 %v9641_v13  ;;  %v5939_v55 = vadd.f32 %v5938_v44, %v5937_v26  ;;  %v10107_v23 = vld [vmem:[#allocation28_spill] sm:$0xff] }
0x104a   : > { %v5876_v42 = vpop.f32.mrf.mxu1  ;;  %v5940_v16 = vpop.f32.mrf.mxu0 }
0x104b   : > { %v4847_v6 = vadd.f32 %v5875_v36, %v9596_v63  ;;  %v9646_v5 = vadd.f32 %v4939_v51, %v10103_v37  ;;  %v10108_v51 = vld [vmem:[#allocation37_spill] sm:$0xff] }
0x104c   : > { %v5877_v39 = vpop.f32.mrf.mxu1  ;;  %v5941_v28 = vpop.f32.mrf.mxu0 }
0x104d   : > { %v4944_v52 = vadd.f32 %v5939_v55, %v4847_v6  ;;  %v5878_v12 = vadd.f32 %v5877_v39, %v5876_v42  ;;  %5002 = vadd.xlane.f32.xlu1 %v9646_v5  ;;  %v5942_v54 = vadd.f32 %v5941_v28, %v5940_v16  ;;  %v10109_v16 = vld [vmem:[#allocation29_spill] sm:$0xff] }
0x104e   : > { %v5879_v3 = vpop.f32.mrf.mxu1 }
0x104f   : > { %v4850_v4 = vadd.f32 %v5878_v12, %v9596_v63  ;;  %v9651_v30 = vadd.f32 %v4944_v52, %v10104_v60 }
0x1050   : > { %v5880_v53 = vpop.f32.mrf.mxu1 }
0x1051   : > { %v4947_v29 = vadd.f32 %v5942_v54, %v4850_v4  ;;  %5004 = vadd.xlane.f32.xlu0 %v9651_v30  ;;  %v5881_v46 = vadd.f32 %v5880_v53, %v5879_v3 }
0x1052   : > { %v5882_v25 = vpop.f32.mrf.mxu1 }
0x1053   : > { %v9655_v41 = vadd.f32 %v4947_v29, %v10105_v40  ;;  %v4855_v48 = vadd.f32 %v5881_v46, %v9596_v63 }
0x1054   : > { %v5883_v8 = vpop.f32.mrf.mxu1 }
0x1055   : > { %5006 = vadd.xlane.f32.xlu1 %v9655_v41  ;;  %v5884_v14 = vadd.f32 %v5883_v8, %v5882_v25 }
0x1057   : > { %v5885_v19 = vpop.f32.mrf.mxu1  ;;  %v4858_v62 = vadd.f32 %v5884_v14, %v9596_v63 }
0x1059   : > { %v5886_v7 = vpop.f32.mrf.mxu1 }
0x105a   : > { %v5887_v0 = vadd.f32 %v5886_v7, %v5885_v19 }
0x105b   : > { %v5888_v33 = vpop.f32.mrf.mxu1 }
0x105c   : > { %v4863_v22 = vadd.f32 %v5887_v0, %v9596_v63 }
0x105d   : > { %v5889_v21 = vpop.f32.mrf.mxu1 }
0x105e   : > { %v5890_v24 = vadd.f32 %v5889_v21, %v5888_v33 }
0x105f   : > { %v5943_v20 = vpop.f32.mrf.mxu1 }
0x1060   : > { %v4866_v47 = vadd.f32 %v5890_v24, %v9596_v63 }
0x1061   : > { %v5944_v34 = vpop.f32.mrf.mxu1 }
0x1062   : > { %v5945_v11 = vadd.f32 %v5944_v34, %v5943_v20 }
0x1063   : > { %v5946_v17 = vpop.f32.mrf.mxu1 }
0x1064   : > { %v4952_v35 = vadd.f32 %v5945_v11, %v4855_v48 }
0x1065   : > { %v5947_v15 = vpop.f32.mrf.mxu1 }
0x1066   : > { %v5948_v2 = vadd.f32 %v5947_v15, %v5946_v17  ;;  %v9661_v59 = vadd.f32 %v4952_v35, %v10106_v43 }
0x1067   : > { %v5949_v56 = vpop.f32.mrf.mxu1 }
0x1068   : > { %v4955_v9 = vadd.f32 %v5948_v2, %v4858_v62  ;;  %5008 = vadd.xlane.f32.xlu0 %v9661_v59 }
0x1069   : > { %v5950_v1 = vpop.f32.mrf.mxu1 }
0x106a   : > { %v5951_v10 = vadd.f32 %v5950_v1, %v5949_v56  ;;  %v9666_v26 = vadd.f32 %v4955_v9, %v10107_v23 }
0x106b   : > { %v5952_v61 = vpop.f32.mrf.mxu1 }
0x106c   : > { %v4960_v45 = vadd.f32 %v5951_v10, %v4863_v22  ;;  %5010 = vadd.xlane.f32.xlu1 %v9666_v26 }
0x106d   : > { %v5953_v49 = vpop.f32.mrf.mxu1 }
0x106e   : > { %v5954_v44 = vadd.f32 %v5953_v49, %v5952_v61  ;;  %v9671_v36 = vadd.f32 %v4960_v45, %v10108_v51 }
0x1070   : > { %v4963_v42 = vadd.f32 %v5954_v44, %v4866_v47  ;;  %5012 = vadd.xlane.f32.xlu0 %v9671_v36 }
0x1072   : > { %v9675_v6 = vadd.f32 %v4963_v42, %v10109_v16 }
0x1074   : > { %5014 = vadd.xlane.f32.xlu1 %v9675_v6 }
0x1096   : > { %v4985_v55 = vpop.xlane.xlu0 %4984 }
0x1097   : > { %v5016_v37 = vmul.f32 0.0078125, %v4985_v55 }
0x1099   : > { %v9679_v39 = vsub.f32 %v9601_v18, %v5016_v37 }
0x109a   : > { %v4987_v28 = vpop.xlane.xlu1 %4986 }
0x109b   : > { %v5017_v52 = vmul.f32 0.0078125, %v4987_v28  ;;  %v5048_v63 = vmul.f32 %v9679_v39, %v9679_v39 }
0x109d   : > { %v9684_v12 = vsub.f32 %v9606_v58, %v5017_v52  ;;  %5064 = vadd.xlane.f32.xlu0 %v5048_v63 }
0x109e   : > { %v4989_v3 = vpop.xlane.xlu0 %4988 }
0x109f   : > { %v5018_v4 = vmul.f32 0.0078125, %v4989_v3  ;;  %v5049_v54 = vmul.f32 %v9684_v12, %v9684_v12 }
0x10a1   : > { %v9689_v60 = vsub.f32 %v9611_v57, %v5018_v4  ;;  %5066 = vadd.xlane.f32.xlu1 %v5049_v54 }
0x10a2   : > { %v4991_v18 = vpop.xlane.xlu1 %4990 }
0x10a3   : > { %v5019_v53 = vmul.f32 0.0078125, %v4991_v18  ;;  %v5050_v29 = vmul.f32 %v9689_v60, %v9689_v60 }
0x10a5   : > { %v9694_v25 = vsub.f32 %v9616_v31, %v5019_v53  ;;  %5068 = vadd.xlane.f32.xlu0 %v5050_v29 }
0x10a6   : > { %v4993_v58 = vpop.xlane.xlu0 %4992 }
0x10a7   : > { %v5020_v40 = vmul.f32 0.0078125, %v4993_v58  ;;  %v5051_v8 = vmul.f32 %v9694_v25, %v9694_v25 }
0x10a9   : > { %v9699_v19 = vsub.f32 %v9621_v32, %v5020_v40  ;;  %5070 = vadd.xlane.f32.xlu1 %v5051_v8 }
0x10aa   : > { %v4995_v57 = vpop.xlane.xlu1 %4994 }
0x10ab   : > { %v5021_v7 = vmul.f32 0.0078125, %v4995_v57  ;;  %v5052_v33 = vmul.f32 %v9699_v19, %v9699_v19 }
0x10ad   : > { %v9704_v21 = vsub.f32 %v9626_v27, %v5021_v7  ;;  %5072 = vadd.xlane.f32.xlu0 %v5052_v33  ;;  %v9761_v7 = vld [vmem:[%s9897_s11] ss:$0 sm:$0xff] }
0x10ae   : > { %v4997_v31 = vpop.xlane.xlu0 %4996 }
0x10af   : > { %v5022_v46 = vmul.f32 0.0078125, %v4997_v31  ;;  %v5053_v20 = vmul.f32 %v9704_v21, %v9704_v21 }
0x10b1   : > { %v9709_v34 = vsub.f32 %v9631_v50, %v5022_v46  ;;  %5074 = vadd.xlane.f32.xlu1 %v5053_v20  ;;  %v9767_v46 = vld [vmem:[%s10110_s19] ss:$0 sm:$0xff] }
0x10b2   : > { %v4999_v32 = vpop.xlane.xlu1 %4998 }
0x10b3   : > { %v5023_v48 = vmul.f32 0.0078125, %v4999_v32  ;;  %v5054_v14 = vmul.f32 %v9709_v34, %v9709_v34 }
0x10b5   : > { %v9714_v11 = vsub.f32 %v9635_v38, %v5023_v48  ;;  %5076 = vadd.xlane.f32.xlu0 %v5054_v14 }
0x10b7   : > { %v5055_v27 = vmul.f32 %v9714_v11, %v9714_v11 }
0x10b9   : > { %5078 = vadd.xlane.f32.xlu1 %v5055_v27 }
0x10d2   : > { %v5001_v17 = vpop.xlane.xlu0 %5000 }
0x10d3   : > { %v5024_v35 = vmul.f32 0.0078125, %v5001_v17 }
0x10d5   : > { %v9719_v15 = vsub.f32 %v9641_v13, %v5024_v35 }
0x10d6   : > { %v5003_v50 = vpop.xlane.xlu1 %5002 }
0x10d7   : > { %v5025_v62 = vmul.f32 0.0078125, %v5003_v50  ;;  %v5056_v0 = vmul.f32 %v9719_v15, %v9719_v15 }
0x10d9   : > { %v9724_v2 = vsub.f32 %v9646_v5, %v5025_v62  ;;  %5080 = vadd.xlane.f32.xlu0 %v5056_v0 }
0x10da   : > { %v5005_v38 = vpop.xlane.xlu0 %5004 }
0x10db   : > { %v5026_v43 = vmul.f32 0.0078125, %v5005_v38  ;;  %v5057_v56 = vmul.f32 %v9724_v2, %v9724_v2 }
0x10dd   : > { %v9729_v9 = vsub.f32 %v9651_v30, %v5026_v43  ;;  %5082 = vadd.xlane.f32.xlu1 %v5057_v56 }
0x10de   : > { %v5007_v13 = vpop.xlane.xlu1 %5006 }
0x10df   : > { %v5027_v1 = vmul.f32 0.0078125, %v5007_v13  ;;  %v5058_v22 = vmul.f32 %v9729_v9, %v9729_v9 }
0x10e1   : > { %v9734_v24 = vsub.f32 %v9655_v41, %v5027_v1  ;;  %5084 = vadd.xlane.f32.xlu0 %v5058_v22 }
0x10e3   : > { %v5059_v5 = vmul.f32 %v9734_v24, %v9734_v24 }
0x10e5   : > { %5086 = vadd.xlane.f32.xlu1 %v5059_v5 }
0x10f1   : > { %v5009_v10 = vpop.xlane.xlu0 %5008 }
0x10f2   : > { %v5028_v23 = vmul.f32 0.0078125, %v5009_v10 }
0x10f4   : > { %v9739_v61 = vsub.f32 %v9661_v59, %v5028_v23 }
0x10f5   : > { %v5011_v30 = vpop.xlane.xlu1 %5010 }
0x10f6   : > { %v5029_v45 = vmul.f32 0.0078125, %v5011_v30  ;;  %v5060_v49 = vmul.f32 %v9739_v61, %v9739_v61 }
0x10f8   : > { %v9744_v47 = vsub.f32 %v9666_v26, %v5029_v45  ;;  %5088 = vadd.xlane.f32.xlu0 %v5060_v49 }
0x10f9   : > { %v5013_v41 = vpop.xlane.xlu0 %5012 }
0x10fa   : > { %v5030_v44 = vmul.f32 0.0078125, %v5013_v41  ;;  %v5061_v51 = vmul.f32 %v9744_v47, %v9744_v47 }
0x10fc   : > { %v9749_v42 = vsub.f32 %v9671_v36, %v5030_v44  ;;  %5090 = vadd.xlane.f32.xlu1 %v5061_v51 }
0x10fd   : > { %v5015_v59 = vpop.xlane.xlu1 %5014 }
0x10fe   : > { %v5031_v16 = vmul.f32 0.0078125, %v5015_v59  ;;  %v5062_v55 = vmul.f32 %v9749_v42, %v9749_v42 }
0x1100   : > { %v9754_v37 = vsub.f32 %v9675_v6, %v5031_v16  ;;  %5092 = vadd.xlane.f32.xlu0 %v5062_v55 }
0x1102   : > { %v5063_v26 = vmul.f32 %v9754_v37, %v9754_v37 }
0x1104   : > { %5094 = vadd.xlane.f32.xlu1 %v5063_v26 }
0x1126   : > { %v5065_v28 = vpop.xlane.xlu0 %5064 }
0x1127   : > { %v5096_v52 = vmul.f32 0.0078125, %v5065_v28 }
0x1129   : > { %v5112_v63 = vadd.f32 1e-05, %v5096_v52 }
0x112a   : > { %v5067_v3 = vpop.xlane.xlu1 %5066 }
0x112b   : > { %6979 = vrsqrt.f32 %v5112_v63  ;;  %v5097_v36 = vmul.f32 0.0078125, %v5067_v3 }
0x112d   : > { %v5113_v4 = vadd.f32 1e-05, %v5097_v36 }
0x112e   : > { %v5069_v54 = vpop.xlane.xlu0 %5068 }
0x112f   : > { %6981 = vrsqrt.f32 %v5113_v4  ;;  %v5098_v18 = vmul.f32 0.0078125, %v5069_v54 }
0x1131   : > { %v5114_v53 = vadd.f32 1e-05, %v5098_v18 }
0x1132   : > { %v5071_v29 = vpop.xlane.xlu1 %5070 }
0x1133   : > { %6983 = vrsqrt.f32 %v5114_v53  ;;  %v5099_v6 = vmul.f32 0.0078125, %v5071_v29 }
0x1135   : > { %v5115_v58 = vadd.f32 1e-05, %v5099_v6 }
0x1136   : > { %v5073_v40 = vpop.xlane.xlu0 %5072 }
0x1137   : > { %6985 = vrsqrt.f32 %v5115_v58  ;;  %v5100_v8 = vmul.f32 0.0078125, %v5073_v40 }
0x1138   : > { %v6980_v57 = vpop.eup %6979 }
0x1139   : > { %v5144_v33 = vmul.f32 %v6980_v57, %v9679_v39  ;;  %v5116_v31 = vadd.f32 1e-05, %v5100_v8 }
0x113a   : > { %v5075_v20 = vpop.xlane.xlu1 %5074 }
0x113b   : > { %v5166_v32 = vmul.f32 %v9761_v7, %v5144_v33  ;;  %6987 = vrsqrt.f32 %v5116_v31  ;;  %v5101_v48 = vmul.f32 0.0078125, %v5075_v20 }
0x113c   : > { %v6982_v14 = vpop.eup %6981 }
0x113d   : > { %v5188_v27 = vadd.f32 %v9767_v46, %v5166_v32  ;;  %v5145_v17 = vmul.f32 %v6982_v14, %v9684_v12  ;;  %v5117_v35 = vadd.f32 1e-05, %v5101_v48 }
0x113e   : > { %v5077_v50 = vpop.xlane.xlu0 %5076 }
0x113f   : > { %5204 = vst [vmem:[%s9774_s18] sm:$0xff] %v5188_v27  ;;  %v5167_v39 = vmul.f32 %v9761_v7, %v5145_v17  ;;  %6989 = vrsqrt.f32 %v5117_v35  ;;  %v5102_v62 = vmul.f32 0.0078125, %v5077_v50 }
0x1140   : > { %v6984_v0 = vpop.eup %6983 }
0x1141   : > { %v5189_v38 = vadd.f32 %v9767_v46, %v5167_v39  ;;  %v5146_v43 = vmul.f32 %v6984_v0, %v9689_v60  ;;  %v5118_v56 = vadd.f32 1e-05, %v5102_v62 }
0x1142   : > { %v5079_v12 = vpop.xlane.xlu1 %5078 }
0x1143   : > { %5205 = vst [vmem:[%s9774_s18 + $0x8] sm:$0xff] %v5189_v38  ;;  %v5168_v13 = vmul.f32 %v9761_v7, %v5146_v43  ;;  %6991 = vrsqrt.f32 %v5118_v56  ;;  %v5103_v1 = vmul.f32 0.0078125, %v5079_v12 }
0x1144   : > { %v6986_v22 = vpop.eup %6985 }
0x1145   : > { %v5190_v5 = vadd.f32 %v9767_v46, %v5168_v13  ;;  %v5147_v10 = vmul.f32 %v6986_v22, %v9694_v25  ;;  %v5119_v23 = vadd.f32 1e-05, %v5103_v1 }
0x1147   : > { %5206 = vst [vmem:[%s9774_s18 + $0x10] sm:$0xff] %v5190_v5  ;;  %v5169_v30 = vmul.f32 %v9761_v7, %v5147_v10  ;;  %6993 = vrsqrt.f32 %v5119_v23 }
0x1148   : > { %v6988_v60 = vpop.eup %6987 }
0x1149   : > { %v5191_v45 = vadd.f32 %v9767_v46, %v5169_v30  ;;  %v5148_v49 = vmul.f32 %v6988_v60, %v9699_v19 }
0x114b   : > { %5207 = vst [vmem:[%s9774_s18 + $0x18] sm:$0xff] %v5191_v45  ;;  %v5170_v41 = vmul.f32 %v9761_v7, %v5148_v49 }
0x114c   : > { %v6990_v44 = vpop.eup %6989 }
0x114d   : > { %v5192_v51 = vadd.f32 %v9767_v46, %v5170_v41  ;;  %v5149_v25 = vmul.f32 %v6990_v44, %v9704_v21 }
0x114f   : > { %5208 = vst [vmem:[%s9774_s18 + $0x20] sm:$0xff] %v5192_v51  ;;  %v5171_v59 = vmul.f32 %v9761_v7, %v5149_v25 }
0x1150   : > { %v6992_v16 = vpop.eup %6991 }
0x1151   : > { %v5193_v55 = vadd.f32 %v9767_v46, %v5171_v59  ;;  %v5150_v26 = vmul.f32 %v6992_v16, %v9709_v34 }
0x1153   : > { %5209 = vst [vmem:[%s9774_s18 + $0x28] sm:$0xff] %v5193_v55  ;;  %v5172_v19 = vmul.f32 %v9761_v7, %v5150_v26 }
0x1154   : > { %v6994_v28 = vpop.eup %6993 }
0x1155   : > { %v5194_v52 = vadd.f32 %v9767_v46, %v5172_v19  ;;  %v5151_v63 = vmul.f32 %v6994_v28, %v9714_v11 }
0x1157   : > { %5210 = vst [vmem:[%s9774_s18 + $0x30] sm:$0xff] %v5194_v52  ;;  %v5173_v3 = vmul.f32 %v9761_v7, %v5151_v63 }
0x1159   : > { %v5195_v21 = vadd.f32 %v9767_v46, %v5173_v3 }
0x115b   : > { %5211 = vst [vmem:[%s9774_s18 + $0x38] sm:$0xff] %v5195_v21 }
0x1162   : > { %v5081_v36 = vpop.xlane.xlu0 %5080 }
0x1163   : > { %v5104_v4 = vmul.f32 0.0078125, %v5081_v36 }
0x1165   : > { %v5120_v54 = vadd.f32 1e-05, %v5104_v4 }
0x1166   : > { %v5083_v18 = vpop.xlane.xlu1 %5082 }
0x1167   : > { %6995 = vrsqrt.f32 %v5120_v54  ;;  %v5105_v34 = vmul.f32 0.0078125, %v5083_v18 }
0x1169   : > { %v5121_v53 = vadd.f32 1e-05, %v5105_v34 }
0x116a   : > { %v5085_v29 = vpop.xlane.xlu0 %5084 }
0x116b   : > { %6997 = vrsqrt.f32 %v5121_v53  ;;  %v5106_v6 = vmul.f32 0.0078125, %v5085_v29 }
0x116d   : > { %v5122_v58 = vadd.f32 1e-05, %v5106_v6 }
0x116e   : > { %v5087_v40 = vpop.xlane.xlu1 %5086 }
0x116f   : > { %6999 = vrsqrt.f32 %v5122_v58  ;;  %v5107_v11 = vmul.f32 0.0078125, %v5087_v40 }
0x1171   : > { %v5123_v8 = vadd.f32 1e-05, %v5107_v11 }
0x1173   : > { %7001 = vrsqrt.f32 %v5123_v8 }
0x1174   : > { %v6996_v57 = vpop.eup %6995 }
0x1175   : > { %v5152_v33 = vmul.f32 %v6996_v57, %v9719_v15 }
0x1177   : > { %v5174_v31 = vmul.f32 %v9761_v7, %v5152_v33 }
0x1178   : > { %v6998_v20 = vpop.eup %6997 }
0x1179   : > { %v5196_v32 = vadd.f32 %v9767_v46, %v5174_v31  ;;  %v5153_v48 = vmul.f32 %v6998_v20, %v9724_v2 }
0x117b   : > { %5212 = vst [vmem:[%s9774_s18 + $0x40] sm:$0xff] %v5196_v32  ;;  %v5175_v14 = vmul.f32 %v9761_v7, %v5153_v48 }
0x117c   : > { %v7000_v27 = vpop.eup %6999 }
0x117d   : > { %v5197_v17 = vadd.f32 %v9767_v46, %v5175_v14  ;;  %v5154_v35 = vmul.f32 %v7000_v27, %v9729_v9 }
0x117f   : > { %5213 = vst [vmem:[%s9774_s18 + $0x48] sm:$0xff] %v5197_v17  ;;  %v5176_v15 = vmul.f32 %v9761_v7, %v5154_v35 }
0x1180   : > { %v7002_v50 = vpop.eup %7001 }
0x1181   : > { %v5089_v39 = vpop.xlane.xlu0 %5088  ;;  %v5198_v62 = vadd.f32 %v9767_v46, %v5176_v15  ;;  %v5155_v0 = vmul.f32 %v7002_v50, %v9734_v24 }
0x1182   : > { %v5108_v38 = vmul.f32 0.0078125, %v5089_v39 }
0x1183   : > { %5214 = vst [vmem:[%s9774_s18 + $0x50] sm:$0xff] %v5198_v62  ;;  %v5177_v2 = vmul.f32 %v9761_v7, %v5155_v0 }
0x1184   : > { %v5124_v43 = vadd.f32 1e-05, %v5108_v38 }
0x1185   : > { %v5091_v56 = vpop.xlane.xlu1 %5090  ;;  %v5199_v12 = vadd.f32 %v9767_v46, %v5177_v2 }
0x1186   : > { %7003 = vrsqrt.f32 %v5124_v43  ;;  %v5109_v13 = vmul.f32 0.0078125, %v5091_v56 }
0x1187   : > { %5215 = vst [vmem:[%s9774_s18 + $0x58] sm:$0xff] %v5199_v12 }
0x1188   : > { %v5125_v9 = vadd.f32 1e-05, %v5109_v13 }
0x1189   : > { %v5093_v1 = vpop.xlane.xlu0 %5092 }
0x118a   : > { %7005 = vrsqrt.f32 %v5125_v9  ;;  %v5110_v22 = vmul.f32 0.0078125, %v5093_v1 }
0x118c   : > { %v5126_v5 = vadd.f32 1e-05, %v5110_v22 }
0x118d   : > { %v5095_v10 = vpop.xlane.xlu1 %5094 }
0x118e   : > { %7007 = vrsqrt.f32 %v5126_v5  ;;  %v5111_v24 = vmul.f32 0.0078125, %v5095_v10 }
0x1190   : > { %v5127_v23 = vadd.f32 1e-05, %v5111_v24 }
0x1192   : > { %7009 = vrsqrt.f32 %v5127_v23 }
0x1193   : > { %v7004_v30 = vpop.eup %7003 }
0x1194   : > { %v5156_v60 = vmul.f32 %v7004_v30, %v9739_v61 }
0x1196   : > { %v5178_v45 = vmul.f32 %v9761_v7, %v5156_v60 }
0x1197   : > { %v7006_v49 = vpop.eup %7005 }
0x1198   : > { %v5200_v41 = vadd.f32 %v9767_v46, %v5178_v45  ;;  %v5157_v44 = vmul.f32 %v7006_v49, %v9744_v47 }
0x119a   : > { %5216 = vst [vmem:[%s9774_s18 + $0x60] sm:$0xff] %v5200_v41  ;;  %v5179_v51 = vmul.f32 %v9761_v7, %v5157_v44 }
0x119b   : > { %v7008_v25 = vpop.eup %7007 }
0x119c   : > { %v5201_v59 = vadd.f32 %v9767_v46, %v5179_v51  ;;  %v5158_v16 = vmul.f32 %v7008_v25, %v9749_v42 }
0x119e   : > { %5217 = vst [vmem:[%s9774_s18 + $0x68] sm:$0xff] %v5201_v59  ;;  %v5180_v61 = vmul.f32 %v9761_v7, %v5158_v16 }
0x119f   : > { %v7010_v55 = vpop.eup %7009 }
0x11a0   : > { %v5202_v26 = vadd.f32 %v9767_v46, %v5180_v61  ;;  %v5159_v19 = vmul.f32 %v7010_v55, %v9754_v37 }
0x11a2   : > { %5218 = vst [vmem:[%s9774_s18 + $0x70] sm:$0xff] %v5202_v26  ;;  %v5181_v47 = vmul.f32 %v9761_v7, %v5159_v19 }
0x11a4   : > { %v5203_v42 = vadd.f32 %v9767_v46, %v5181_v47 }
0x11a6   : > { %5219 = vst [vmem:[%s9774_s18 + $0x78] sm:$0xff] %v5203_v42 }
0x11a7   : > { %7198 = shalt.err (!%p7195_p3)
}
0x11a8   : > { %s7199_s15 = scalar_lea.hbm %s9839_s16, 2048  ;;  %s7203_s18 = scalar_lea.hbm %s10111_s4, 4096 }
0x11a9   : > { %p7200_p8 = scmp.ne.s32.totalorder %s9839_s16, %s7199_s15  ;;  %p7204_p12 = scmp.lt.s32.totalorder %s9839_s16, %s10111_s4 }
0x11aa   : > { %p7205_p13 = scmp.lt.s32.totalorder %s7203_s18, %s7199_s15 }
0x11ab   : > { %p7201_p6 = pnand %p7200_p8, %p10112_p5 }
0x11ac   : > { %p7206_p2 = por %p7205_p13, %p7204_p12 }
0x11ad   : > { %p7202_p10 = pneg %p7201_p6 }
0x11af   : > { %p7207_p4 = pnand %p7206_p2, %p7202_p10 }
0x11b1   : > { %7210 = shalt.err (!%p7207_p4)
}
0x11b2   : > { %s7283_s24 = smov 128   ;;  %s7284_s29 = smov 8  }
0x11b3   : > { %6345 = dma.vmem_to_hbm [thread:$0]  (%p10112_p5), %s9841_s22, 2048, %s9839_s16, %s5221_s23, %s7283_s24, %s7283_s24, %s7284_s29  }
0x11b4 PF: > { %s5249_s14 = sand.u32 1, %s7249_s25   ;;  %p10113_p9 = scmp.ne.s32.totalorder %s9978_s17, 0 }
0x11b5   : > { %p10114_p11 = scmp.ge.s32.totalorder %s7261_s28, 2  ;;  %s5250_s1 = scalar_lea.sflag [#allocation5], %s5249_s14 }
0x11b7   : > { %p6368_p7 = pnand %p10114_p11, %p10113_p9 }
0x11b9   : > { %p6369_p0 = pneg %p6368_p7 }
0x11bb   : > { %7244 = dma.done.wait (%p6369_p0), %s5250_s1, 2048  }
0x11bc   : > { %7246 = vsyncadd (%p6369_p0), %s5250_s1, 4294965248  ;;  %p29_p1 = scmp.ge.s32.totalorder %s7450_s21, 4   ;;  %s10115_s25 = smov %s7253_s26 }
0x11bd   : > { %s10116_s26 = smov %s7257_s27  ;;  %s10117_s27 = smov %s7462_s30 }
0x11be   : > { %s10118_s28 = smov %s7450_s21  ;;  %31 = sbr.rel (!%p29_p1) target bundleno = 16 (0x10), region = 137 }
0x11c3   :  { %5255 = vsyncpa [#allocation4], 1 }
0x11c4   :  { %5257 = vsyncpa [#allocation4 + $0x1], 1 }
0x11c5   :  { %5258 = vsyncpa [#allocation7], 1 }
0x11c6   :  { %5259 = vsyncpa [#allocation10], 1 }
0x11c7   :  { %5260 = vsyncpa [#allocation13], 1 }
0x11c8   :  { %5261 = vsyncpa [#allocation5], 1 }
0x11c9   :  { %5263 = vsyncpa [#allocation5 + $0x1], 1 }

</bundles_post_ra>
